<compile_context>
chip_gen: v7x
topology: tpu7x:2x2x1
jax: 0.10.0
libtpu: 0.0.40
codegen_flags: <defaults>
</compile_context>

<pallas_src>
import functools
import math

import jax
import jax.numpy as jnp
from jax.experimental import pallas as pl
from jax.experimental.pallas import tpu as pltpu


# ------------------------------ fused kernel --------------------------------

def _vit_fused_kernel(patches_ref, base_ref, patch_w_ref,
                      ln1_g_ref, ln1_b_ref, wqkv_ref, bqkv_ref,
                      wo_ref, bo_ref, ln2_g_ref, ln2_b_ref,
                      w1_ref, b1_ref, w2_ref, b2_ref,
                      norm_g_ref, norm_b_ref, head_w_ref, head_b_ref,
                      out_ref, *, depth, num_heads, seq_len, eps):
    Sp = base_ref.shape[1]            # padded token count (multiple of 8)
    E = base_ref.shape[2]             # embedding dim
    Dh = E // num_heads
    scale = 1.0 / math.sqrt(Dh)

    def layernorm(v, g, b):
        mean = jnp.mean(v, axis=-1, keepdims=True)
        c = v - mean
        var = jnp.mean(c * c, axis=-1, keepdims=True)
        return c * jax.lax.rsqrt(var + eps) * g + b

    # Patch projection; cls token, positional embedding and conv bias are
    # pre-folded into `base` (padded rows are zero).
    x = base_ref[0] + jnp.dot(patches_ref[0], patch_w_ref[...],
                              preferred_element_type=jnp.float32)

    # Mask for padded key positions (token index >= seq_len).
    key_valid = jax.lax.broadcasted_iota(jnp.int32, (Sp, Sp), 1) < seq_len

    for d in range(depth):
        # -------------------- multi-head self-attention ---------------------
        xn = layernorm(x, ln1_g_ref[d], ln1_b_ref[d])
        qkv = jnp.dot(xn, wqkv_ref[d],
                      preferred_element_type=jnp.float32) + bqkv_ref[d]
        head_outs = []
        for h in range(num_heads):
            q = qkv[:, h * Dh:(h + 1) * Dh] * scale
            k = qkv[:, E + h * Dh:E + (h + 1) * Dh]
            v = qkv[:, 2 * E + h * Dh:2 * E + (h + 1) * Dh]
            s = jax.lax.dot_general(q, k, (((1,), (1,)), ((), ())),
                                    preferred_element_type=jnp.float32)
            s = jnp.where(key_valid, s, -1e30)
            s = s - jnp.max(s, axis=-1, keepdims=True)
            p = jnp.exp(s)
            p = p * pl.reciprocal(jnp.sum(p, axis=-1, keepdims=True),
                                  approx=True)
            head_outs.append(jnp.dot(p, v, preferred_element_type=jnp.float32))
        ao = jnp.concatenate(head_outs, axis=-1)                     # (Sp, E)
        ao = jnp.dot(ao, wo_ref[d],
                     preferred_element_type=jnp.float32) + bo_ref[d]
        x = x + ao

        # ------------------- MLP (dropout=0.0 -> identity) ------------------
        xn = layernorm(x, ln2_g_ref[d], ln2_b_ref[d])
        h1 = jnp.dot(xn, w1_ref[d],
                     preferred_element_type=jnp.float32) + b1_ref[d]
        # exact erf-based GELU (matches torch.nn.GELU default)
        h1 = 0.5 * h1 * (1.0 + jax.lax.erf(h1 * (1.0 / math.sqrt(2.0))))
        h2 = jnp.dot(h1, w2_ref[d],
                     preferred_element_type=jnp.float32) + b2_ref[d]
        x = x + h2

    # final LayerNorm on the cls token + classifier head
    cls = layernorm(x[0:1, :], norm_g_ref[...], norm_b_ref[...])
    out_ref[0] = (jnp.dot(cls, head_w_ref[...],
                          preferred_element_type=jnp.float32) + head_b_ref[...])


# ------------------------------ model glue (JAX) -----------------------------

def extract_patches(x, patch):
    """NCHW (B,C,H,W) -> (B, n_patches, C*P*P), row-major over (H/P, W/P)."""
    B, C, H, W = x.shape
    hp, wp = H // patch, W // patch
    x = x.reshape(B, C, hp, patch, wp, patch)
    x = jnp.transpose(x, (0, 2, 4, 1, 3, 5))              # (B, hp, wp, C, P, P)
    return x.reshape(B, hp * wp, C * patch * patch)


def vit_forward(x, params, cfg):
    B = x.shape[0]
    C, P, E, H = (cfg["in_channels"], cfg["patch_size"],
                  cfg["emb_size"], cfg["num_heads"])
    depth, NC = cfg["depth"], cfg["num_classes"]
    hidden = int(E * cfg["mlp_ratio"])
    Np = (cfg["img_size"] // P) ** 2
    S = Np + 1
    Sp = ((S + 7) // 8) * 8            # pad tokens to a sublane multiple (17 -> 24)
    CPP = C * P * P

    # Layout-only glue: patch extraction + zero padding to the padded token grid
    # (row 0 of each batch is the cls slot; trailing rows are padding).
    patches = extract_patches(x, P)                               # (B, Np, CPP)
    patches_p = jnp.zeros((B, Sp, CPP), jnp.float32)
    patches_p = patches_p.at[:, 1:1 + Np, :].set(patches)

    # Fold cls token, positional embedding and conv bias into one base slab,
    # shared by every batch element; padded rows stay zero.
    base = jnp.zeros((1, Sp, E), jnp.float32)
    base = base.at[0, 0, :].set(params["cls_token"][0, 0]
                                + params["pos_embedding"][0, 0])
    base = base.at[0, 1:1 + Np, :].set(params["pos_embedding"][0, 1:1 + Np]
                                       + params["patch_b"][None, :])

    def const_spec(shape):
        nd = len(shape)
        return pl.BlockSpec(shape, lambda b: (0,) * nd)

    in_specs = [
        pl.BlockSpec((1, Sp, CPP), lambda b: (b, 0, 0)),        # per-batch patches
        const_spec((1, Sp, E)),                                 # base slab
        const_spec((CPP, E)),                                   # patch_w
        const_spec((depth, 1, E)), const_spec((depth, 1, E)),           # ln1 g/b
        const_spec((depth, E, 3 * E)), const_spec((depth, 1, 3 * E)),   # qkv w/b
        const_spec((depth, E, E)), const_spec((depth, 1, E)),           # out-proj
        const_spec((depth, 1, E)), const_spec((depth, 1, E)),           # ln2 g/b
        const_spec((depth, E, hidden)), const_spec((depth, 1, hidden)), # mlp fc1
        const_spec((depth, hidden, E)), const_spec((depth, 1, E)),      # mlp fc2
        const_spec((1, E)), const_spec((1, E)),                          # final LN
        const_spec((E, NC)), const_spec((1, NC)),                        # head
    ]

    out = pl.pallas_call(
        functools.partial(_vit_fused_kernel, depth=depth, num_heads=H,
                          seq_len=S, eps=1e-5),
        out_shape=jax.ShapeDtypeStruct((B, 1, NC), jnp.float32),
        grid=(B,),
        in_specs=in_specs,
        out_specs=pl.BlockSpec((1, 1, NC), lambda b: (b, 0, 0)),
        compiler_params=pltpu.CompilerParams(
            dimension_semantics=("parallel",)),      # shards batch on v7x's 2 TCs
    )(patches_p, base, params["patch_w"],
      params["ln1_g"], params["ln1_b"],
      params["in_proj_w"], params["in_proj_b"],
      params["out_proj_w"], params["out_proj_b"],
      params["ln2_g"], params["ln2_b"],
      params["mlp_w1"], params["mlp_b1"],
      params["mlp_w2"], params["mlp_b2"],
      params["norm_g"], params["norm_b"],
      params["head_w"], params["head_b"])
    return out[:, 0, :]


# ------------------------------ parameter init -------------------------------

def init_params(key, cfg):
    C, P, E = cfg["in_channels"], cfg["patch_size"], cfg["emb_size"]
    Np = (cfg["img_size"] // P) ** 2
    hidden = int(E * cfg["mlp_ratio"])
    NC, depth = cfg["num_classes"], cfg["depth"]
    CPP = C * P * P

    keys = jax.random.split(key, 8)
    std = 0.02

    def w(k, shape):
        return (std * jax.random.normal(k, shape)).astype(jnp.float32)

    return {
        "patch_w": w(keys[0], (CPP, E)),
        "patch_b": jnp.zeros((E,), jnp.float32),
        "cls_token": jax.random.normal(keys[1], (1, 1, E), jnp.float32),
        "pos_embedding": jax.random.normal(keys[2], (1, Np + 1, E), jnp.float32),
        # per-block params stacked along a leading `depth` axis
        "ln1_g": jnp.ones((depth, 1, E), jnp.float32),
        "ln1_b": jnp.zeros((depth, 1, E), jnp.float32),
        "in_proj_w": w(keys[3], (depth, E, 3 * E)),   # columns packed [q | k | v]
        "in_proj_b": jnp.zeros((depth, 1, 3 * E), jnp.float32),
        "out_proj_w": w(keys[4], (depth, E, E)),
        "out_proj_b": jnp.zeros((depth, 1, E), jnp.float32),
        "ln2_g": jnp.ones((depth, 1, E), jnp.float32),
        "ln2_b": jnp.zeros((depth, 1, E), jnp.float32),
        "mlp_w1": w(keys[5], (depth, E, hidden)),
        "mlp_b1": jnp.zeros((depth, 1, hidden), jnp.float32),
        "mlp_w2": w(keys[6], (depth, hidden, E)),
        "mlp_b2": jnp.zeros((depth, 1, E), jnp.float32),
        "norm_g": jnp.ones((1, E), jnp.float32),
        "norm_b": jnp.zeros((1, E), jnp.float32),
        "head_w": w(keys[7], (E, NC)),
        "head_b": jnp.zeros((1, NC), jnp.float32),
    }


# ----------------------------------- main ------------------------------------

if __name__ == "__main__":
    cfg = dict(in_channels=4, patch_size=4, emb_size=32, img_size=16,
               num_heads=4, mlp_ratio=4.0, dropout=0.0, num_classes=10, depth=2)

    key = jax.random.PRNGKey(0)
    kx, kp = jax.random.split(key)
    x = jax.random.normal(kx, (2, cfg["in_channels"], cfg["img_size"],
                               cfg["img_size"]), jnp.float32)   # NCHW
    params = init_params(kp, cfg)

    logits = jax.jit(lambda a: vit_forward(a, params, cfg))(x)
    logits = jax.block_until_ready(logits)

    assert logits.shape == (2, cfg["num_classes"])
    assert bool(jnp.all(jnp.isfinite(logits)))
    print("KERNEL_OK")
</pallas_src>

<mosaic_0001>
module attributes {stable_mosaic.version = 11 : i64} {
  func.func @_vit_fused_kernel(%arg0: i32, %arg1: memref<1x24x64xf32, #tpu.memory_space<vmem>>, %arg2: memref<1x24x32xf32, #tpu.memory_space<vmem>>, %arg3: memref<64x32xf32, #tpu.memory_space<vmem>>, %arg4: memref<2x1x32xf32, #tpu.memory_space<vmem>>, %arg5: memref<2x1x32xf32, #tpu.memory_space<vmem>>, %arg6: memref<2x32x96xf32, #tpu.memory_space<vmem>>, %arg7: memref<2x1x96xf32, #tpu.memory_space<vmem>>, %arg8: memref<2x32x32xf32, #tpu.memory_space<vmem>>, %arg9: memref<2x1x32xf32, #tpu.memory_space<vmem>>, %arg10: memref<2x1x32xf32, #tpu.memory_space<vmem>>, %arg11: memref<2x1x32xf32, #tpu.memory_space<vmem>>, %arg12: memref<2x32x128xf32, #tpu.memory_space<vmem>>, %arg13: memref<2x1x128xf32, #tpu.memory_space<vmem>>, %arg14: memref<2x128x32xf32, #tpu.memory_space<vmem>>, %arg15: memref<2x1x32xf32, #tpu.memory_space<vmem>>, %arg16: memref<1x32xf32, #tpu.memory_space<vmem>>, %arg17: memref<1x32xf32, #tpu.memory_space<vmem>>, %arg18: memref<32x10xf32, #tpu.memory_space<vmem>>, %arg19: memref<1x10xf32, #tpu.memory_space<vmem>>, %arg20: memref<1x1x10xf32, #tpu.memory_space<vmem>>) attributes {dimension_semantics = [#tpu.dimension_semantics<parallel>], iteration_bounds = array<i64: 2>, scalar_prefetch = 0 : i64, scratch_operands = 0 : i64, tpu.core_type = #tpu.core_type<tc>, window_params = [{transform_indices = @transform_0, window_bounds = array<i64: 1, 24, 64>}, {pipeline_mode = #tpu.pipeline_mode<synchronous>, transform_indices = @transform_1, window_bounds = array<i64: 1, 24, 32>}, {pipeline_mode = #tpu.pipeline_mode<synchronous>, transform_indices = @transform_2, window_bounds = array<i64: 64, 32>}, {pipeline_mode = #tpu.pipeline_mode<synchronous>, transform_indices = @transform_3, window_bounds = array<i64: 2, 1, 32>}, {pipeline_mode = #tpu.pipeline_mode<synchronous>, transform_indices = @transform_4, window_bounds = array<i64: 2, 1, 32>}, {pipeline_mode = #tpu.pipeline_mode<synchronous>, transform_indices = @transform_5, window_bounds = array<i64: 2, 32, 96>}, {pipeline_mode = #tpu.pipeline_mode<synchronous>, transform_indices = @transform_6, window_bounds = array<i64: 2, 1, 96>}, {pipeline_mode = #tpu.pipeline_mode<synchronous>, transform_indices = @transform_7, window_bounds = array<i64: 2, 32, 32>}, {pipeline_mode = #tpu.pipeline_mode<synchronous>, transform_indices = @transform_8, window_bounds = array<i64: 2, 1, 32>}, {pipeline_mode = #tpu.pipeline_mode<synchronous>, transform_indices = @transform_9, window_bounds = array<i64: 2, 1, 32>}, {pipeline_mode = #tpu.pipeline_mode<synchronous>, transform_indices = @transform_10, window_bounds = array<i64: 2, 1, 32>}, {pipeline_mode = #tpu.pipeline_mode<synchronous>, transform_indices = @transform_11, window_bounds = array<i64: 2, 32, 128>}, {pipeline_mode = #tpu.pipeline_mode<synchronous>, transform_indices = @transform_12, window_bounds = array<i64: 2, 1, 128>}, {pipeline_mode = #tpu.pipeline_mode<synchronous>, transform_indices = @transform_13, window_bounds = array<i64: 2, 128, 32>}, {pipeline_mode = #tpu.pipeline_mode<synchronous>, transform_indices = @transform_14, window_bounds = array<i64: 2, 1, 32>}, {pipeline_mode = #tpu.pipeline_mode<synchronous>, transform_indices = @transform_15, window_bounds = array<i64: 1, 32>}, {pipeline_mode = #tpu.pipeline_mode<synchronous>, transform_indices = @transform_16, window_bounds = array<i64: 1, 32>}, {pipeline_mode = #tpu.pipeline_mode<synchronous>, transform_indices = @transform_17, window_bounds = array<i64: 32, 10>}, {pipeline_mode = #tpu.pipeline_mode<synchronous>, transform_indices = @transform_18, window_bounds = array<i64: 1, 10>}, {transform_indices = @transform_19, window_bounds = array<i64: 1, 1, 10>}]} {
    %c0 = arith.constant 0 : index
    %c0_0 = arith.constant 0 : index
    %c0_1 = arith.constant 0 : index
    %0 = vector.load %arg2[%c0, %c0_0, %c0_1] : memref<1x24x32xf32, #tpu.memory_space<vmem>>, vector<1x24x32xf32>
    %1 = vector.shape_cast %0 : vector<1x24x32xf32> to vector<24x32xf32>
    %c0_2 = arith.constant 0 : index
    %c0_3 = arith.constant 0 : index
    %c0_4 = arith.constant 0 : index
    %2 = vector.load %arg1[%c0_2, %c0_3, %c0_4] : memref<1x24x64xf32, #tpu.memory_space<vmem>>, vector<1x24x64xf32>
    %3 = vector.shape_cast %2 : vector<1x24x64xf32> to vector<24x64xf32>
    %c0_5 = arith.constant 0 : index
    %c0_6 = arith.constant 0 : index
    %4 = vector.load %arg3[%c0_5, %c0_6] : memref<64x32xf32, #tpu.memory_space<vmem>>, vector<64x32xf32>
    %cst = arith.constant dense<0.000000e+00> : vector<24x32xf32>
    %5 = tpu.matmul %3, %4, %cst {dimension_numbers = #tpu.dot_dimension_numbers<[1], [0], [0], [1], [0, 0, 1, 1], [], []>} : vector<24x64xf32>, vector<64x32xf32>, vector<24x32xf32> -> vector<24x32xf32>
    %6 = arith.addf %1, %5 : vector<24x32xf32>
    %7 = tpu.iota {dimensions = array<i32: 1>} : vector<24x24xi32>
    %c17_i32 = arith.constant 17 : i32
    %8 = vector.broadcast %c17_i32 : i32 to vector<24x24xi32>
    %9 = arith.cmpi slt, %7, %8 : vector<24x24xi32>
    %c0_7 = arith.constant 0 : index
    %c0_8 = arith.constant 0 : index
    %c0_9 = arith.constant 0 : index
    %10 = vector.load %arg4[%c0_7, %c0_8, %c0_9] : memref<2x1x32xf32, #tpu.memory_space<vmem>>, vector<1x1x32xf32>
    %11 = vector.shape_cast %10 : vector<1x1x32xf32> to vector<1x32xf32>
    %c0_10 = arith.constant 0 : index
    %c0_11 = arith.constant 0 : index
    %c0_12 = arith.constant 0 : index
    %12 = vector.load %arg5[%c0_10, %c0_11, %c0_12] : memref<2x1x32xf32, #tpu.memory_space<vmem>>, vector<1x1x32xf32>
    %13 = vector.shape_cast %12 : vector<1x1x32xf32> to vector<1x32xf32>
    %cst_13 = arith.constant dense<0.000000e+00> : vector<24xf32>
    %14 = vector.multi_reduction <add>, %6, %cst_13 [1] : vector<24x32xf32> to vector<24xf32>
    %15 = vector.shape_cast %14 : vector<24xf32> to vector<24x1xf32>
    %cst_14 = arith.constant 3.200000e+01 : f32
    %16 = vector.broadcast %cst_14 : f32 to vector<24x1xf32>
    %17 = arith.divf %15, %16 : vector<24x1xf32>
    %18 = vector.broadcast %17 : vector<24x1xf32> to vector<24x32xf32>
    %19 = arith.subf %6, %18 : vector<24x32xf32>
    %20 = arith.mulf %19, %19 : vector<24x32xf32>
    %cst_15 = arith.constant dense<0.000000e+00> : vector<24xf32>
    %21 = vector.multi_reduction <add>, %20, %cst_15 [1] : vector<24x32xf32> to vector<24xf32>
    %22 = vector.shape_cast %21 : vector<24xf32> to vector<24x1xf32>
    %cst_16 = arith.constant 3.200000e+01 : f32
    %23 = vector.broadcast %cst_16 : f32 to vector<24x1xf32>
    %24 = arith.divf %22, %23 : vector<24x1xf32>
    %cst_17 = arith.constant 9.99999974E-6 : f32
    %25 = vector.broadcast %cst_17 : f32 to vector<24x1xf32>
    %26 = arith.addf %24, %25 : vector<24x1xf32>
    %27 = math.rsqrt %26 : vector<24x1xf32>
    %28 = vector.broadcast %27 : vector<24x1xf32> to vector<24x32xf32>
    %29 = arith.mulf %19, %28 : vector<24x32xf32>
    %30 = vector.broadcast %11 : vector<1x32xf32> to vector<24x32xf32>
    %31 = arith.mulf %29, %30 : vector<24x32xf32>
    %32 = vector.broadcast %13 : vector<1x32xf32> to vector<24x32xf32>
    %33 = arith.addf %31, %32 : vector<24x32xf32>
    %c0_18 = arith.constant 0 : index
    %c0_19 = arith.constant 0 : index
    %c0_20 = arith.constant 0 : index
    %34 = vector.load %arg6[%c0_18, %c0_19, %c0_20] : memref<2x32x96xf32, #tpu.memory_space<vmem>>, vector<1x32x96xf32>
    %35 = vector.shape_cast %34 : vector<1x32x96xf32> to vector<32x96xf32>
    %cst_21 = arith.constant dense<0.000000e+00> : vector<24x96xf32>
    %36 = tpu.matmul %33, %35, %cst_21 {dimension_numbers = #tpu.dot_dimension_numbers<[1], [0], [0], [1], [0, 0, 1, 1], [], []>} : vector<24x32xf32>, vector<32x96xf32>, vector<24x96xf32> -> vector<24x96xf32>
    %c0_22 = arith.constant 0 : index
    %c0_23 = arith.constant 0 : index
    %c0_24 = arith.constant 0 : index
    %37 = vector.load %arg7[%c0_22, %c0_23, %c0_24] : memref<2x1x96xf32, #tpu.memory_space<vmem>>, vector<1x1x96xf32>
    %38 = vector.shape_cast %37 : vector<1x1x96xf32> to vector<1x96xf32>
    %39 = vector.broadcast %38 : vector<1x96xf32> to vector<24x96xf32>
    %40 = arith.addf %36, %39 : vector<24x96xf32>
    %41 = vector.extract_strided_slice %40 {offsets = [0, 0], sizes = [24, 8], strides = [1, 1]} : vector<24x96xf32> to vector<24x8xf32>
    %cst_25 = arith.constant 0.353553385 : f32
    %42 = vector.broadcast %cst_25 : f32 to vector<24x8xf32>
    %43 = arith.mulf %41, %42 : vector<24x8xf32>
    %44 = vector.extract_strided_slice %40 {offsets = [0, 32], sizes = [24, 8], strides = [1, 1]} : vector<24x96xf32> to vector<24x8xf32>
    %45 = vector.extract_strided_slice %40 {offsets = [0, 64], sizes = [24, 8], strides = [1, 1]} : vector<24x96xf32> to vector<24x8xf32>
    %cst_26 = arith.constant dense<0.000000e+00> : vector<24x24xf32>
    %46 = tpu.matmul %43, %44, %cst_26 {dimension_numbers = #tpu.dot_dimension_numbers<[1], [1], [0], [0], [0, 0, 1, 0], [], []>} : vector<24x8xf32>, vector<24x8xf32>, vector<24x24xf32> -> vector<24x24xf32>
    %cst_27 = arith.constant -1.000000e+30 : f32
    %47 = vector.broadcast %cst_27 : f32 to vector<24x24xf32>
    %48 = arith.select %9, %46, %47 : vector<24x24xi1>, vector<24x24xf32>
    %cst_28 = arith.constant dense<0xFF800000> : vector<24xf32>
    %49 = vector.multi_reduction <maximumf>, %48, %cst_28 [1] : vector<24x24xf32> to vector<24xf32>
    %50 = vector.shape_cast %49 : vector<24xf32> to vector<24x1xf32>
    %51 = vector.broadcast %50 : vector<24x1xf32> to vector<24x24xf32>
    %52 = arith.subf %48, %51 : vector<24x24xf32>
    %53 = math.exp %52 : vector<24x24xf32>
    %cst_29 = arith.constant dense<0.000000e+00> : vector<24xf32>
    %54 = vector.multi_reduction <add>, %53, %cst_29 [1] : vector<24x24xf32> to vector<24xf32>
    %55 = vector.shape_cast %54 : vector<24xf32> to vector<24x1xf32>
    %56 = tpu.reciprocal %55 {approx = true} : vector<24x1xf32> -> vector<24x1xf32>
    %57 = vector.broadcast %56 : vector<24x1xf32> to vector<24x24xf32>
    %58 = arith.mulf %53, %57 : vector<24x24xf32>
    %cst_30 = arith.constant dense<0.000000e+00> : vector<24x8xf32>
    %59 = tpu.matmul %58, %45, %cst_30 {dimension_numbers = #tpu.dot_dimension_numbers<[1], [0], [0], [1], [0, 0, 1, 1], [], []>} : vector<24x24xf32>, vector<24x8xf32>, vector<24x8xf32> -> vector<24x8xf32>
    %60 = vector.extract_strided_slice %40 {offsets = [0, 8], sizes = [24, 8], strides = [1, 1]} : vector<24x96xf32> to vector<24x8xf32>
    %cst_31 = arith.constant 0.353553385 : f32
    %61 = vector.broadcast %cst_31 : f32 to vector<24x8xf32>
    %62 = arith.mulf %60, %61 : vector<24x8xf32>
    %63 = vector.extract_strided_slice %40 {offsets = [0, 40], sizes = [24, 8], strides = [1, 1]} : vector<24x96xf32> to vector<24x8xf32>
    %64 = vector.extract_strided_slice %40 {offsets = [0, 72], sizes = [24, 8], strides = [1, 1]} : vector<24x96xf32> to vector<24x8xf32>
    %cst_32 = arith.constant dense<0.000000e+00> : vector<24x24xf32>
    %65 = tpu.matmul %62, %63, %cst_32 {dimension_numbers = #tpu.dot_dimension_numbers<[1], [1], [0], [0], [0, 0, 1, 0], [], []>} : vector<24x8xf32>, vector<24x8xf32>, vector<24x24xf32> -> vector<24x24xf32>
    %cst_33 = arith.constant -1.000000e+30 : f32
    %66 = vector.broadcast %cst_33 : f32 to vector<24x24xf32>
    %67 = arith.select %9, %65, %66 : vector<24x24xi1>, vector<24x24xf32>
    %cst_34 = arith.constant dense<0xFF800000> : vector<24xf32>
    %68 = vector.multi_reduction <maximumf>, %67, %cst_34 [1] : vector<24x24xf32> to vector<24xf32>
    %69 = vector.shape_cast %68 : vector<24xf32> to vector<24x1xf32>
    %70 = vector.broadcast %69 : vector<24x1xf32> to vector<24x24xf32>
    %71 = arith.subf %67, %70 : vector<24x24xf32>
    %72 = math.exp %71 : vector<24x24xf32>
    %cst_35 = arith.constant dense<0.000000e+00> : vector<24xf32>
    %73 = vector.multi_reduction <add>, %72, %cst_35 [1] : vector<24x24xf32> to vector<24xf32>
    %74 = vector.shape_cast %73 : vector<24xf32> to vector<24x1xf32>
    %75 = tpu.reciprocal %74 {approx = true} : vector<24x1xf32> -> vector<24x1xf32>
    %76 = vector.broadcast %75 : vector<24x1xf32> to vector<24x24xf32>
    %77 = arith.mulf %72, %76 : vector<24x24xf32>
    %cst_36 = arith.constant dense<0.000000e+00> : vector<24x8xf32>
    %78 = tpu.matmul %77, %64, %cst_36 {dimension_numbers = #tpu.dot_dimension_numbers<[1], [0], [0], [1], [0, 0, 1, 1], [], []>} : vector<24x24xf32>, vector<24x8xf32>, vector<24x8xf32> -> vector<24x8xf32>
    %79 = vector.extract_strided_slice %40 {offsets = [0, 16], sizes = [24, 8], strides = [1, 1]} : vector<24x96xf32> to vector<24x8xf32>
    %cst_37 = arith.constant 0.353553385 : f32
    %80 = vector.broadcast %cst_37 : f32 to vector<24x8xf32>
    %81 = arith.mulf %79, %80 : vector<24x8xf32>
    %82 = vector.extract_strided_slice %40 {offsets = [0, 48], sizes = [24, 8], strides = [1, 1]} : vector<24x96xf32> to vector<24x8xf32>
    %83 = vector.extract_strided_slice %40 {offsets = [0, 80], sizes = [24, 8], strides = [1, 1]} : vector<24x96xf32> to vector<24x8xf32>
    %cst_38 = arith.constant dense<0.000000e+00> : vector<24x24xf32>
    %84 = tpu.matmul %81, %82, %cst_38 {dimension_numbers = #tpu.dot_dimension_numbers<[1], [1], [0], [0], [0, 0, 1, 0], [], []>} : vector<24x8xf32>, vector<24x8xf32>, vector<24x24xf32> -> vector<24x24xf32>
    %cst_39 = arith.constant -1.000000e+30 : f32
    %85 = vector.broadcast %cst_39 : f32 to vector<24x24xf32>
    %86 = arith.select %9, %84, %85 : vector<24x24xi1>, vector<24x24xf32>
    %cst_40 = arith.constant dense<0xFF800000> : vector<24xf32>
    %87 = vector.multi_reduction <maximumf>, %86, %cst_40 [1] : vector<24x24xf32> to vector<24xf32>
    %88 = vector.shape_cast %87 : vector<24xf32> to vector<24x1xf32>
    %89 = vector.broadcast %88 : vector<24x1xf32> to vector<24x24xf32>
    %90 = arith.subf %86, %89 : vector<24x24xf32>
    %91 = math.exp %90 : vector<24x24xf32>
    %cst_41 = arith.constant dense<0.000000e+00> : vector<24xf32>
    %92 = vector.multi_reduction <add>, %91, %cst_41 [1] : vector<24x24xf32> to vector<24xf32>
    %93 = vector.shape_cast %92 : vector<24xf32> to vector<24x1xf32>
    %94 = tpu.reciprocal %93 {approx = true} : vector<24x1xf32> -> vector<24x1xf32>
    %95 = vector.broadcast %94 : vector<24x1xf32> to vector<24x24xf32>
    %96 = arith.mulf %91, %95 : vector<24x24xf32>
    %cst_42 = arith.constant dense<0.000000e+00> : vector<24x8xf32>
    %97 = tpu.matmul %96, %83, %cst_42 {dimension_numbers = #tpu.dot_dimension_numbers<[1], [0], [0], [1], [0, 0, 1, 1], [], []>} : vector<24x24xf32>, vector<24x8xf32>, vector<24x8xf32> -> vector<24x8xf32>
    %98 = vector.extract_strided_slice %40 {offsets = [0, 24], sizes = [24, 8], strides = [1, 1]} : vector<24x96xf32> to vector<24x8xf32>
    %cst_43 = arith.constant 0.353553385 : f32
    %99 = vector.broadcast %cst_43 : f32 to vector<24x8xf32>
    %100 = arith.mulf %98, %99 : vector<24x8xf32>
    %101 = vector.extract_strided_slice %40 {offsets = [0, 56], sizes = [24, 8], strides = [1, 1]} : vector<24x96xf32> to vector<24x8xf32>
    %102 = vector.extract_strided_slice %40 {offsets = [0, 88], sizes = [24, 8], strides = [1, 1]} : vector<24x96xf32> to vector<24x8xf32>
    %cst_44 = arith.constant dense<0.000000e+00> : vector<24x24xf32>
    %103 = tpu.matmul %100, %101, %cst_44 {dimension_numbers = #tpu.dot_dimension_numbers<[1], [1], [0], [0], [0, 0, 1, 0], [], []>} : vector<24x8xf32>, vector<24x8xf32>, vector<24x24xf32> -> vector<24x24xf32>
    %cst_45 = arith.constant -1.000000e+30 : f32
    %104 = vector.broadcast %cst_45 : f32 to vector<24x24xf32>
    %105 = arith.select %9, %103, %104 : vector<24x24xi1>, vector<24x24xf32>
    %cst_46 = arith.constant dense<0xFF800000> : vector<24xf32>
    %106 = vector.multi_reduction <maximumf>, %105, %cst_46 [1] : vector<24x24xf32> to vector<24xf32>
    %107 = vector.shape_cast %106 : vector<24xf32> to vector<24x1xf32>
    %108 = vector.broadcast %107 : vector<24x1xf32> to vector<24x24xf32>
    %109 = arith.subf %105, %108 : vector<24x24xf32>
    %110 = math.exp %109 : vector<24x24xf32>
    %cst_47 = arith.constant dense<0.000000e+00> : vector<24xf32>
    %111 = vector.multi_reduction <add>, %110, %cst_47 [1] : vector<24x24xf32> to vector<24xf32>
    %112 = vector.shape_cast %111 : vector<24xf32> to vector<24x1xf32>
    %113 = tpu.reciprocal %112 {approx = true} : vector<24x1xf32> -> vector<24x1xf32>
    %114 = vector.broadcast %113 : vector<24x1xf32> to vector<24x24xf32>
    %115 = arith.mulf %110, %114 : vector<24x24xf32>
    %cst_48 = arith.constant dense<0.000000e+00> : vector<24x8xf32>
    %116 = tpu.matmul %115, %102, %cst_48 {dimension_numbers = #tpu.dot_dimension_numbers<[1], [0], [0], [1], [0, 0, 1, 1], [], []>} : vector<24x24xf32>, vector<24x8xf32>, vector<24x8xf32> -> vector<24x8xf32>
    %117 = tpu.concatenate %59, %78, %97, %116 in 1 : vector<24x8xf32>, vector<24x8xf32>, vector<24x8xf32>, vector<24x8xf32> -> vector<24x32xf32>
    %c0_49 = arith.constant 0 : index
    %c0_50 = arith.constant 0 : index
    %c0_51 = arith.constant 0 : index
    %118 = vector.load %arg8[%c0_49, %c0_50, %c0_51] : memref<2x32x32xf32, #tpu.memory_space<vmem>>, vector<1x32x32xf32>
    %119 = vector.shape_cast %118 : vector<1x32x32xf32> to vector<32x32xf32>
    %cst_52 = arith.constant dense<0.000000e+00> : vector<24x32xf32>
    %120 = tpu.matmul %117, %119, %cst_52 {dimension_numbers = #tpu.dot_dimension_numbers<[1], [0], [0], [1], [0, 0, 1, 1], [], []>} : vector<24x32xf32>, vector<32x32xf32>, vector<24x32xf32> -> vector<24x32xf32>
    %c0_53 = arith.constant 0 : index
    %c0_54 = arith.constant 0 : index
    %c0_55 = arith.constant 0 : index
    %121 = vector.load %arg9[%c0_53, %c0_54, %c0_55] : memref<2x1x32xf32, #tpu.memory_space<vmem>>, vector<1x1x32xf32>
    %122 = vector.shape_cast %121 : vector<1x1x32xf32> to vector<1x32xf32>
    %123 = vector.broadcast %122 : vector<1x32xf32> to vector<24x32xf32>
    %124 = arith.addf %120, %123 : vector<24x32xf32>
    %125 = arith.addf %6, %124 : vector<24x32xf32>
    %c0_56 = arith.constant 0 : index
    %c0_57 = arith.constant 0 : index
    %c0_58 = arith.constant 0 : index
    %126 = vector.load %arg10[%c0_56, %c0_57, %c0_58] : memref<2x1x32xf32, #tpu.memory_space<vmem>>, vector<1x1x32xf32>
    %127 = vector.shape_cast %126 : vector<1x1x32xf32> to vector<1x32xf32>
    %c0_59 = arith.constant 0 : index
    %c0_60 = arith.constant 0 : index
    %c0_61 = arith.constant 0 : index
    %128 = vector.load %arg11[%c0_59, %c0_60, %c0_61] : memref<2x1x32xf32, #tpu.memory_space<vmem>>, vector<1x1x32xf32>
    %129 = vector.shape_cast %128 : vector<1x1x32xf32> to vector<1x32xf32>
    %cst_62 = arith.constant dense<0.000000e+00> : vector<24xf32>
    %130 = vector.multi_reduction <add>, %125, %cst_62 [1] : vector<24x32xf32> to vector<24xf32>
    %131 = vector.shape_cast %130 : vector<24xf32> to vector<24x1xf32>
    %cst_63 = arith.constant 3.200000e+01 : f32
    %132 = vector.broadcast %cst_63 : f32 to vector<24x1xf32>
    %133 = arith.divf %131, %132 : vector<24x1xf32>
    %134 = vector.broadcast %133 : vector<24x1xf32> to vector<24x32xf32>
    %135 = arith.subf %125, %134 : vector<24x32xf32>
    %136 = arith.mulf %135, %135 : vector<24x32xf32>
    %cst_64 = arith.constant dense<0.000000e+00> : vector<24xf32>
    %137 = vector.multi_reduction <add>, %136, %cst_64 [1] : vector<24x32xf32> to vector<24xf32>
    %138 = vector.shape_cast %137 : vector<24xf32> to vector<24x1xf32>
    %cst_65 = arith.constant 3.200000e+01 : f32
    %139 = vector.broadcast %cst_65 : f32 to vector<24x1xf32>
    %140 = arith.divf %138, %139 : vector<24x1xf32>
    %cst_66 = arith.constant 9.99999974E-6 : f32
    %141 = vector.broadcast %cst_66 : f32 to vector<24x1xf32>
    %142 = arith.addf %140, %141 : vector<24x1xf32>
    %143 = math.rsqrt %142 : vector<24x1xf32>
    %144 = vector.broadcast %143 : vector<24x1xf32> to vector<24x32xf32>
    %145 = arith.mulf %135, %144 : vector<24x32xf32>
    %146 = vector.broadcast %127 : vector<1x32xf32> to vector<24x32xf32>
    %147 = arith.mulf %145, %146 : vector<24x32xf32>
    %148 = vector.broadcast %129 : vector<1x32xf32> to vector<24x32xf32>
    %149 = arith.addf %147, %148 : vector<24x32xf32>
    %c0_67 = arith.constant 0 : index
    %c0_68 = arith.constant 0 : index
    %c0_69 = arith.constant 0 : index
    %150 = vector.load %arg12[%c0_67, %c0_68, %c0_69] : memref<2x32x128xf32, #tpu.memory_space<vmem>>, vector<1x32x128xf32>
    %151 = vector.shape_cast %150 : vector<1x32x128xf32> to vector<32x128xf32>
    %cst_70 = arith.constant dense<0.000000e+00> : vector<24x128xf32>
    %152 = tpu.matmul %149, %151, %cst_70 {dimension_numbers = #tpu.dot_dimension_numbers<[1], [0], [0], [1], [0, 0, 1, 1], [], []>} : vector<24x32xf32>, vector<32x128xf32>, vector<24x128xf32> -> vector<24x128xf32>
    %c0_71 = arith.constant 0 : index
    %c0_72 = arith.constant 0 : index
    %c0_73 = arith.constant 0 : index
    %153 = vector.load %arg13[%c0_71, %c0_72, %c0_73] : memref<2x1x128xf32, #tpu.memory_space<vmem>>, vector<1x1x128xf32>
    %154 = vector.shape_cast %153 : vector<1x1x128xf32> to vector<1x128xf32>
    %155 = vector.broadcast %154 : vector<1x128xf32> to vector<24x128xf32>
    %156 = arith.addf %152, %155 : vector<24x128xf32>
    %cst_74 = arith.constant 5.000000e-01 : f32
    %157 = vector.broadcast %cst_74 : f32 to vector<24x128xf32>
    %158 = arith.mulf %157, %156 : vector<24x128xf32>
    %cst_75 = arith.constant 0.707106769 : f32
    %159 = vector.broadcast %cst_75 : f32 to vector<24x128xf32>
    %160 = arith.mulf %156, %159 : vector<24x128xf32>
    %161 = math.erf %160 : vector<24x128xf32>
    %cst_76 = arith.constant 1.000000e+00 : f32
    %162 = vector.broadcast %cst_76 : f32 to vector<24x128xf32>
    %163 = arith.addf %162, %161 : vector<24x128xf32>
    %164 = arith.mulf %158, %163 : vector<24x128xf32>
    %c0_77 = arith.constant 0 : index
    %c0_78 = arith.constant 0 : index
    %c0_79 = arith.constant 0 : index
    %165 = vector.load %arg14[%c0_77, %c0_78, %c0_79] : memref<2x128x32xf32, #tpu.memory_space<vmem>>, vector<1x128x32xf32>
    %166 = vector.shape_cast %165 : vector<1x128x32xf32> to vector<128x32xf32>
    %cst_80 = arith.constant dense<0.000000e+00> : vector<24x32xf32>
    %167 = tpu.matmul %164, %166, %cst_80 {dimension_numbers = #tpu.dot_dimension_numbers<[1], [0], [0], [1], [0, 0, 1, 1], [], []>} : vector<24x128xf32>, vector<128x32xf32>, vector<24x32xf32> -> vector<24x32xf32>
    %c0_81 = arith.constant 0 : index
    %c0_82 = arith.constant 0 : index
    %c0_83 = arith.constant 0 : index
    %168 = vector.load %arg15[%c0_81, %c0_82, %c0_83] : memref<2x1x32xf32, #tpu.memory_space<vmem>>, vector<1x1x32xf32>
    %169 = vector.shape_cast %168 : vector<1x1x32xf32> to vector<1x32xf32>
    %170 = vector.broadcast %169 : vector<1x32xf32> to vector<24x32xf32>
    %171 = arith.addf %167, %170 : vector<24x32xf32>
    %172 = arith.addf %125, %171 : vector<24x32xf32>
    %c1 = arith.constant 1 : index
    %c0_84 = arith.constant 0 : index
    %c0_85 = arith.constant 0 : index
    %173 = vector.load %arg4[%c1, %c0_84, %c0_85] : memref<2x1x32xf32, #tpu.memory_space<vmem>>, vector<1x1x32xf32>
    %174 = vector.shape_cast %173 : vector<1x1x32xf32> to vector<1x32xf32>
    %c1_86 = arith.constant 1 : index
    %c0_87 = arith.constant 0 : index
    %c0_88 = arith.constant 0 : index
    %175 = vector.load %arg5[%c1_86, %c0_87, %c0_88] : memref<2x1x32xf32, #tpu.memory_space<vmem>>, vector<1x1x32xf32>
    %176 = vector.shape_cast %175 : vector<1x1x32xf32> to vector<1x32xf32>
    %cst_89 = arith.constant dense<0.000000e+00> : vector<24xf32>
    %177 = vector.multi_reduction <add>, %172, %cst_89 [1] : vector<24x32xf32> to vector<24xf32>
    %178 = vector.shape_cast %177 : vector<24xf32> to vector<24x1xf32>
    %cst_90 = arith.constant 3.200000e+01 : f32
    %179 = vector.broadcast %cst_90 : f32 to vector<24x1xf32>
    %180 = arith.divf %178, %179 : vector<24x1xf32>
    %181 = vector.broadcast %180 : vector<24x1xf32> to vector<24x32xf32>
    %182 = arith.subf %172, %181 : vector<24x32xf32>
    %183 = arith.mulf %182, %182 : vector<24x32xf32>
    %cst_91 = arith.constant dense<0.000000e+00> : vector<24xf32>
    %184 = vector.multi_reduction <add>, %183, %cst_91 [1] : vector<24x32xf32> to vector<24xf32>
    %185 = vector.shape_cast %184 : vector<24xf32> to vector<24x1xf32>
    %cst_92 = arith.constant 3.200000e+01 : f32
    %186 = vector.broadcast %cst_92 : f32 to vector<24x1xf32>
    %187 = arith.divf %185, %186 : vector<24x1xf32>
    %cst_93 = arith.constant 9.99999974E-6 : f32
    %188 = vector.broadcast %cst_93 : f32 to vector<24x1xf32>
    %189 = arith.addf %187, %188 : vector<24x1xf32>
    %190 = math.rsqrt %189 : vector<24x1xf32>
    %191 = vector.broadcast %190 : vector<24x1xf32> to vector<24x32xf32>
    %192 = arith.mulf %182, %191 : vector<24x32xf32>
    %193 = vector.broadcast %174 : vector<1x32xf32> to vector<24x32xf32>
    %194 = arith.mulf %192, %193 : vector<24x32xf32>
    %195 = vector.broadcast %176 : vector<1x32xf32> to vector<24x32xf32>
    %196 = arith.addf %194, %195 : vector<24x32xf32>
    %c1_94 = arith.constant 1 : index
    %c0_95 = arith.constant 0 : index
    %c0_96 = arith.constant 0 : index
    %197 = vector.load %arg6[%c1_94, %c0_95, %c0_96] : memref<2x32x96xf32, #tpu.memory_space<vmem>>, vector<1x32x96xf32>
    %198 = vector.shape_cast %197 : vector<1x32x96xf32> to vector<32x96xf32>
    %cst_97 = arith.constant dense<0.000000e+00> : vector<24x96xf32>
    %199 = tpu.matmul %196, %198, %cst_97 {dimension_numbers = #tpu.dot_dimension_numbers<[1], [0], [0], [1], [0, 0, 1, 1], [], []>} : vector<24x32xf32>, vector<32x96xf32>, vector<24x96xf32> -> vector<24x96xf32>
    %c1_98 = arith.constant 1 : index
    %c0_99 = arith.constant 0 : index
    %c0_100 = arith.constant 0 : index
    %200 = vector.load %arg7[%c1_98, %c0_99, %c0_100] : memref<2x1x96xf32, #tpu.memory_space<vmem>>, vector<1x1x96xf32>
    %201 = vector.shape_cast %200 : vector<1x1x96xf32> to vector<1x96xf32>
    %202 = vector.broadcast %201 : vector<1x96xf32> to vector<24x96xf32>
    %203 = arith.addf %199, %202 : vector<24x96xf32>
    %204 = vector.extract_strided_slice %203 {offsets = [0, 0], sizes = [24, 8], strides = [1, 1]} : vector<24x96xf32> to vector<24x8xf32>
    %cst_101 = arith.constant 0.353553385 : f32
    %205 = vector.broadcast %cst_101 : f32 to vector<24x8xf32>
    %206 = arith.mulf %204, %205 : vector<24x8xf32>
    %207 = vector.extract_strided_slice %203 {offsets = [0, 32], sizes = [24, 8], strides = [1, 1]} : vector<24x96xf32> to vector<24x8xf32>
    %208 = vector.extract_strided_slice %203 {offsets = [0, 64], sizes = [24, 8], strides = [1, 1]} : vector<24x96xf32> to vector<24x8xf32>
    %cst_102 = arith.constant dense<0.000000e+00> : vector<24x24xf32>
    %209 = tpu.matmul %206, %207, %cst_102 {dimension_numbers = #tpu.dot_dimension_numbers<[1], [1], [0], [0], [0, 0, 1, 0], [], []>} : vector<24x8xf32>, vector<24x8xf32>, vector<24x24xf32> -> vector<24x24xf32>
    %cst_103 = arith.constant -1.000000e+30 : f32
    %210 = vector.broadcast %cst_103 : f32 to vector<24x24xf32>
    %211 = arith.select %9, %209, %210 : vector<24x24xi1>, vector<24x24xf32>
    %cst_104 = arith.constant dense<0xFF800000> : vector<24xf32>
    %212 = vector.multi_reduction <maximumf>, %211, %cst_104 [1] : vector<24x24xf32> to vector<24xf32>
    %213 = vector.shape_cast %212 : vector<24xf32> to vector<24x1xf32>
    %214 = vector.broadcast %213 : vector<24x1xf32> to vector<24x24xf32>
    %215 = arith.subf %211, %214 : vector<24x24xf32>
    %216 = math.exp %215 : vector<24x24xf32>
    %cst_105 = arith.constant dense<0.000000e+00> : vector<24xf32>
    %217 = vector.multi_reduction <add>, %216, %cst_105 [1] : vector<24x24xf32> to vector<24xf32>
    %218 = vector.shape_cast %217 : vector<24xf32> to vector<24x1xf32>
    %219 = tpu.reciprocal %218 {approx = true} : vector<24x1xf32> -> vector<24x1xf32>
    %220 = vector.broadcast %219 : vector<24x1xf32> to vector<24x24xf32>
    %221 = arith.mulf %216, %220 : vector<24x24xf32>
    %cst_106 = arith.constant dense<0.000000e+00> : vector<24x8xf32>
    %222 = tpu.matmul %221, %208, %cst_106 {dimension_numbers = #tpu.dot_dimension_numbers<[1], [0], [0], [1], [0, 0, 1, 1], [], []>} : vector<24x24xf32>, vector<24x8xf32>, vector<24x8xf32> -> vector<24x8xf32>
    %223 = vector.extract_strided_slice %203 {offsets = [0, 8], sizes = [24, 8], strides = [1, 1]} : vector<24x96xf32> to vector<24x8xf32>
    %cst_107 = arith.constant 0.353553385 : f32
    %224 = vector.broadcast %cst_107 : f32 to vector<24x8xf32>
    %225 = arith.mulf %223, %224 : vector<24x8xf32>
    %226 = vector.extract_strided_slice %203 {offsets = [0, 40], sizes = [24, 8], strides = [1, 1]} : vector<24x96xf32> to vector<24x8xf32>
    %227 = vector.extract_strided_slice %203 {offsets = [0, 72], sizes = [24, 8], strides = [1, 1]} : vector<24x96xf32> to vector<24x8xf32>
    %cst_108 = arith.constant dense<0.000000e+00> : vector<24x24xf32>
    %228 = tpu.matmul %225, %226, %cst_108 {dimension_numbers = #tpu.dot_dimension_numbers<[1], [1], [0], [0], [0, 0, 1, 0], [], []>} : vector<24x8xf32>, vector<24x8xf32>, vector<24x24xf32> -> vector<24x24xf32>
    %cst_109 = arith.constant -1.000000e+30 : f32
    %229 = vector.broadcast %cst_109 : f32 to vector<24x24xf32>
    %230 = arith.select %9, %228, %229 : vector<24x24xi1>, vector<24x24xf32>
    %cst_110 = arith.constant dense<0xFF800000> : vector<24xf32>
    %231 = vector.multi_reduction <maximumf>, %230, %cst_110 [1] : vector<24x24xf32> to vector<24xf32>
    %232 = vector.shape_cast %231 : vector<24xf32> to vector<24x1xf32>
    %233 = vector.broadcast %232 : vector<24x1xf32> to vector<24x24xf32>
    %234 = arith.subf %230, %233 : vector<24x24xf32>
    %235 = math.exp %234 : vector<24x24xf32>
    %cst_111 = arith.constant dense<0.000000e+00> : vector<24xf32>
    %236 = vector.multi_reduction <add>, %235, %cst_111 [1] : vector<24x24xf32> to vector<24xf32>
    %237 = vector.shape_cast %236 : vector<24xf32> to vector<24x1xf32>
    %238 = tpu.reciprocal %237 {approx = true} : vector<24x1xf32> -> vector<24x1xf32>
    %239 = vector.broadcast %238 : vector<24x1xf32> to vector<24x24xf32>
    %240 = arith.mulf %235, %239 : vector<24x24xf32>
    %cst_112 = arith.constant dense<0.000000e+00> : vector<24x8xf32>
    %241 = tpu.matmul %240, %227, %cst_112 {dimension_numbers = #tpu.dot_dimension_numbers<[1], [0], [0], [1], [0, 0, 1, 1], [], []>} : vector<24x24xf32>, vector<24x8xf32>, vector<24x8xf32> -> vector<24x8xf32>
    %242 = vector.extract_strided_slice %203 {offsets = [0, 16], sizes = [24, 8], strides = [1, 1]} : vector<24x96xf32> to vector<24x8xf32>
    %cst_113 = arith.constant 0.353553385 : f32
    %243 = vector.broadcast %cst_113 : f32 to vector<24x8xf32>
    %244 = arith.mulf %242, %243 : vector<24x8xf32>
    %245 = vector.extract_strided_slice %203 {offsets = [0, 48], sizes = [24, 8], strides = [1, 1]} : vector<24x96xf32> to vector<24x8xf32>
    %246 = vector.extract_strided_slice %203 {offsets = [0, 80], sizes = [24, 8], strides = [1, 1]} : vector<24x96xf32> to vector<24x8xf32>
    %cst_114 = arith.constant dense<0.000000e+00> : vector<24x24xf32>
    %247 = tpu.matmul %244, %245, %cst_114 {dimension_numbers = #tpu.dot_dimension_numbers<[1], [1], [0], [0], [0, 0, 1, 0], [], []>} : vector<24x8xf32>, vector<24x8xf32>, vector<24x24xf32> -> vector<24x24xf32>
    %cst_115 = arith.constant -1.000000e+30 : f32
    %248 = vector.broadcast %cst_115 : f32 to vector<24x24xf32>
    %249 = arith.select %9, %247, %248 : vector<24x24xi1>, vector<24x24xf32>
    %cst_116 = arith.constant dense<0xFF800000> : vector<24xf32>
    %250 = vector.multi_reduction <maximumf>, %249, %cst_116 [1] : vector<24x24xf32> to vector<24xf32>
    %251 = vector.shape_cast %250 : vector<24xf32> to vector<24x1xf32>
    %252 = vector.broadcast %251 : vector<24x1xf32> to vector<24x24xf32>
    %253 = arith.subf %249, %252 : vector<24x24xf32>
    %254 = math.exp %253 : vector<24x24xf32>
    %cst_117 = arith.constant dense<0.000000e+00> : vector<24xf32>
    %255 = vector.multi_reduction <add>, %254, %cst_117 [1] : vector<24x24xf32> to vector<24xf32>
    %256 = vector.shape_cast %255 : vector<24xf32> to vector<24x1xf32>
    %257 = tpu.reciprocal %256 {approx = true} : vector<24x1xf32> -> vector<24x1xf32>
    %258 = vector.broadcast %257 : vector<24x1xf32> to vector<24x24xf32>
    %259 = arith.mulf %254, %258 : vector<24x24xf32>
    %cst_118 = arith.constant dense<0.000000e+00> : vector<24x8xf32>
    %260 = tpu.matmul %259, %246, %cst_118 {dimension_numbers = #tpu.dot_dimension_numbers<[1], [0], [0], [1], [0, 0, 1, 1], [], []>} : vector<24x24xf32>, vector<24x8xf32>, vector<24x8xf32> -> vector<24x8xf32>
    %261 = vector.extract_strided_slice %203 {offsets = [0, 24], sizes = [24, 8], strides = [1, 1]} : vector<24x96xf32> to vector<24x8xf32>
    %cst_119 = arith.constant 0.353553385 : f32
    %262 = vector.broadcast %cst_119 : f32 to vector<24x8xf32>
    %263 = arith.mulf %261, %262 : vector<24x8xf32>
    %264 = vector.extract_strided_slice %203 {offsets = [0, 56], sizes = [24, 8], strides = [1, 1]} : vector<24x96xf32> to vector<24x8xf32>
    %265 = vector.extract_strided_slice %203 {offsets = [0, 88], sizes = [24, 8], strides = [1, 1]} : vector<24x96xf32> to vector<24x8xf32>
    %cst_120 = arith.constant dense<0.000000e+00> : vector<24x24xf32>
    %266 = tpu.matmul %263, %264, %cst_120 {dimension_numbers = #tpu.dot_dimension_numbers<[1], [1], [0], [0], [0, 0, 1, 0], [], []>} : vector<24x8xf32>, vector<24x8xf32>, vector<24x24xf32> -> vector<24x24xf32>
    %cst_121 = arith.constant -1.000000e+30 : f32
    %267 = vector.broadcast %cst_121 : f32 to vector<24x24xf32>
    %268 = arith.select %9, %266, %267 : vector<24x24xi1>, vector<24x24xf32>
    %cst_122 = arith.constant dense<0xFF800000> : vector<24xf32>
    %269 = vector.multi_reduction <maximumf>, %268, %cst_122 [1] : vector<24x24xf32> to vector<24xf32>
    %270 = vector.shape_cast %269 : vector<24xf32> to vector<24x1xf32>
    %271 = vector.broadcast %270 : vector<24x1xf32> to vector<24x24xf32>
    %272 = arith.subf %268, %271 : vector<24x24xf32>
    %273 = math.exp %272 : vector<24x24xf32>
    %cst_123 = arith.constant dense<0.000000e+00> : vector<24xf32>
    %274 = vector.multi_reduction <add>, %273, %cst_123 [1] : vector<24x24xf32> to vector<24xf32>
    %275 = vector.shape_cast %274 : vector<24xf32> to vector<24x1xf32>
    %276 = tpu.reciprocal %275 {approx = true} : vector<24x1xf32> -> vector<24x1xf32>
    %277 = vector.broadcast %276 : vector<24x1xf32> to vector<24x24xf32>
    %278 = arith.mulf %273, %277 : vector<24x24xf32>
    %cst_124 = arith.constant dense<0.000000e+00> : vector<24x8xf32>
    %279 = tpu.matmul %278, %265, %cst_124 {dimension_numbers = #tpu.dot_dimension_numbers<[1], [0], [0], [1], [0, 0, 1, 1], [], []>} : vector<24x24xf32>, vector<24x8xf32>, vector<24x8xf32> -> vector<24x8xf32>
    %280 = tpu.concatenate %222, %241, %260, %279 in 1 : vector<24x8xf32>, vector<24x8xf32>, vector<24x8xf32>, vector<24x8xf32> -> vector<24x32xf32>
    %c1_125 = arith.constant 1 : index
    %c0_126 = arith.constant 0 : index
    %c0_127 = arith.constant 0 : index
    %281 = vector.load %arg8[%c1_125, %c0_126, %c0_127] : memref<2x32x32xf32, #tpu.memory_space<vmem>>, vector<1x32x32xf32>
    %282 = vector.shape_cast %281 : vector<1x32x32xf32> to vector<32x32xf32>
    %cst_128 = arith.constant dense<0.000000e+00> : vector<24x32xf32>
    %283 = tpu.matmul %280, %282, %cst_128 {dimension_numbers = #tpu.dot_dimension_numbers<[1], [0], [0], [1], [0, 0, 1, 1], [], []>} : vector<24x32xf32>, vector<32x32xf32>, vector<24x32xf32> -> vector<24x32xf32>
    %c1_129 = arith.constant 1 : index
    %c0_130 = arith.constant 0 : index
    %c0_131 = arith.constant 0 : index
    %284 = vector.load %arg9[%c1_129, %c0_130, %c0_131] : memref<2x1x32xf32, #tpu.memory_space<vmem>>, vector<1x1x32xf32>
    %285 = vector.shape_cast %284 : vector<1x1x32xf32> to vector<1x32xf32>
    %286 = vector.broadcast %285 : vector<1x32xf32> to vector<24x32xf32>
    %287 = arith.addf %283, %286 : vector<24x32xf32>
    %288 = arith.addf %172, %287 : vector<24x32xf32>
    %c1_132 = arith.constant 1 : index
    %c0_133 = arith.constant 0 : index
    %c0_134 = arith.constant 0 : index
    %289 = vector.load %arg10[%c1_132, %c0_133, %c0_134] : memref<2x1x32xf32, #tpu.memory_space<vmem>>, vector<1x1x32xf32>
    %290 = vector.shape_cast %289 : vector<1x1x32xf32> to vector<1x32xf32>
    %c1_135 = arith.constant 1 : index
    %c0_136 = arith.constant 0 : index
    %c0_137 = arith.constant 0 : index
    %291 = vector.load %arg11[%c1_135, %c0_136, %c0_137] : memref<2x1x32xf32, #tpu.memory_space<vmem>>, vector<1x1x32xf32>
    %292 = vector.shape_cast %291 : vector<1x1x32xf32> to vector<1x32xf32>
    %cst_138 = arith.constant dense<0.000000e+00> : vector<24xf32>
    %293 = vector.multi_reduction <add>, %288, %cst_138 [1] : vector<24x32xf32> to vector<24xf32>
    %294 = vector.shape_cast %293 : vector<24xf32> to vector<24x1xf32>
    %cst_139 = arith.constant 3.200000e+01 : f32
    %295 = vector.broadcast %cst_139 : f32 to vector<24x1xf32>
    %296 = arith.divf %294, %295 : vector<24x1xf32>
    %297 = vector.broadcast %296 : vector<24x1xf32> to vector<24x32xf32>
    %298 = arith.subf %288, %297 : vector<24x32xf32>
    %299 = arith.mulf %298, %298 : vector<24x32xf32>
    %cst_140 = arith.constant dense<0.000000e+00> : vector<24xf32>
    %300 = vector.multi_reduction <add>, %299, %cst_140 [1] : vector<24x32xf32> to vector<24xf32>
    %301 = vector.shape_cast %300 : vector<24xf32> to vector<24x1xf32>
    %cst_141 = arith.constant 3.200000e+01 : f32
    %302 = vector.broadcast %cst_141 : f32 to vector<24x1xf32>
    %303 = arith.divf %301, %302 : vector<24x1xf32>
    %cst_142 = arith.constant 9.99999974E-6 : f32
    %304 = vector.broadcast %cst_142 : f32 to vector<24x1xf32>
    %305 = arith.addf %303, %304 : vector<24x1xf32>
    %306 = math.rsqrt %305 : vector<24x1xf32>
    %307 = vector.broadcast %306 : vector<24x1xf32> to vector<24x32xf32>
    %308 = arith.mulf %298, %307 : vector<24x32xf32>
    %309 = vector.broadcast %290 : vector<1x32xf32> to vector<24x32xf32>
    %310 = arith.mulf %308, %309 : vector<24x32xf32>
    %311 = vector.broadcast %292 : vector<1x32xf32> to vector<24x32xf32>
    %312 = arith.addf %310, %311 : vector<24x32xf32>
    %c1_143 = arith.constant 1 : index
    %c0_144 = arith.constant 0 : index
    %c0_145 = arith.constant 0 : index
    %313 = vector.load %arg12[%c1_143, %c0_144, %c0_145] : memref<2x32x128xf32, #tpu.memory_space<vmem>>, vector<1x32x128xf32>
    %314 = vector.shape_cast %313 : vector<1x32x128xf32> to vector<32x128xf32>
    %cst_146 = arith.constant dense<0.000000e+00> : vector<24x128xf32>
    %315 = tpu.matmul %312, %314, %cst_146 {dimension_numbers = #tpu.dot_dimension_numbers<[1], [0], [0], [1], [0, 0, 1, 1], [], []>} : vector<24x32xf32>, vector<32x128xf32>, vector<24x128xf32> -> vector<24x128xf32>
    %c1_147 = arith.constant 1 : index
    %c0_148 = arith.constant 0 : index
    %c0_149 = arith.constant 0 : index
    %316 = vector.load %arg13[%c1_147, %c0_148, %c0_149] : memref<2x1x128xf32, #tpu.memory_space<vmem>>, vector<1x1x128xf32>
    %317 = vector.shape_cast %316 : vector<1x1x128xf32> to vector<1x128xf32>
    %318 = vector.broadcast %317 : vector<1x128xf32> to vector<24x128xf32>
    %319 = arith.addf %315, %318 : vector<24x128xf32>
    %cst_150 = arith.constant 5.000000e-01 : f32
    %320 = vector.broadcast %cst_150 : f32 to vector<24x128xf32>
    %321 = arith.mulf %320, %319 : vector<24x128xf32>
    %cst_151 = arith.constant 0.707106769 : f32
    %322 = vector.broadcast %cst_151 : f32 to vector<24x128xf32>
    %323 = arith.mulf %319, %322 : vector<24x128xf32>
    %324 = math.erf %323 : vector<24x128xf32>
    %cst_152 = arith.constant 1.000000e+00 : f32
    %325 = vector.broadcast %cst_152 : f32 to vector<24x128xf32>
    %326 = arith.addf %325, %324 : vector<24x128xf32>
    %327 = arith.mulf %321, %326 : vector<24x128xf32>
    %c1_153 = arith.constant 1 : index
    %c0_154 = arith.constant 0 : index
    %c0_155 = arith.constant 0 : index
    %328 = vector.load %arg14[%c1_153, %c0_154, %c0_155] : memref<2x128x32xf32, #tpu.memory_space<vmem>>, vector<1x128x32xf32>
    %329 = vector.shape_cast %328 : vector<1x128x32xf32> to vector<128x32xf32>
    %cst_156 = arith.constant dense<0.000000e+00> : vector<24x32xf32>
    %330 = tpu.matmul %327, %329, %cst_156 {dimension_numbers = #tpu.dot_dimension_numbers<[1], [0], [0], [1], [0, 0, 1, 1], [], []>} : vector<24x128xf32>, vector<128x32xf32>, vector<24x32xf32> -> vector<24x32xf32>
    %c1_157 = arith.constant 1 : index
    %c0_158 = arith.constant 0 : index
    %c0_159 = arith.constant 0 : index
    %331 = vector.load %arg15[%c1_157, %c0_158, %c0_159] : memref<2x1x32xf32, #tpu.memory_space<vmem>>, vector<1x1x32xf32>
    %332 = vector.shape_cast %331 : vector<1x1x32xf32> to vector<1x32xf32>
    %333 = vector.broadcast %332 : vector<1x32xf32> to vector<24x32xf32>
    %334 = arith.addf %330, %333 : vector<24x32xf32>
    %335 = arith.addf %288, %334 : vector<24x32xf32>
    %336 = vector.extract_strided_slice %335 {offsets = [0, 0], sizes = [1, 32], strides = [1, 1]} : vector<24x32xf32> to vector<1x32xf32>
    %c0_160 = arith.constant 0 : index
    %c0_161 = arith.constant 0 : index
    %337 = vector.load %arg16[%c0_160, %c0_161] : memref<1x32xf32, #tpu.memory_space<vmem>>, vector<1x32xf32>
    %c0_162 = arith.constant 0 : index
    %c0_163 = arith.constant 0 : index
    %338 = vector.load %arg17[%c0_162, %c0_163] : memref<1x32xf32, #tpu.memory_space<vmem>>, vector<1x32xf32>
    %cst_164 = arith.constant dense<0.000000e+00> : vector<1xf32>
    %339 = vector.multi_reduction <add>, %336, %cst_164 [1] : vector<1x32xf32> to vector<1xf32>
    %340 = vector.shape_cast %339 : vector<1xf32> to vector<1x1xf32>
    %cst_165 = arith.constant 3.200000e+01 : f32
    %341 = vector.broadcast %cst_165 : f32 to vector<1x1xf32>
    %342 = arith.divf %340, %341 : vector<1x1xf32>
    %343 = vector.broadcast %342 : vector<1x1xf32> to vector<1x32xf32>
    %344 = arith.subf %336, %343 : vector<1x32xf32>
    %345 = arith.mulf %344, %344 : vector<1x32xf32>
    %cst_166 = arith.constant dense<0.000000e+00> : vector<1xf32>
    %346 = vector.multi_reduction <add>, %345, %cst_166 [1] : vector<1x32xf32> to vector<1xf32>
    %347 = vector.shape_cast %346 : vector<1xf32> to vector<1x1xf32>
    %cst_167 = arith.constant 3.200000e+01 : f32
    %348 = vector.broadcast %cst_167 : f32 to vector<1x1xf32>
    %349 = arith.divf %347, %348 : vector<1x1xf32>
    %cst_168 = arith.constant 9.99999974E-6 : f32
    %350 = vector.broadcast %cst_168 : f32 to vector<1x1xf32>
    %351 = arith.addf %349, %350 : vector<1x1xf32>
    %352 = math.rsqrt %351 : vector<1x1xf32>
    %353 = vector.broadcast %352 : vector<1x1xf32> to vector<1x32xf32>
    %354 = arith.mulf %344, %353 : vector<1x32xf32>
    %355 = arith.mulf %354, %337 : vector<1x32xf32>
    %356 = arith.addf %355, %338 : vector<1x32xf32>
    %c0_169 = arith.constant 0 : index
    %c0_170 = arith.constant 0 : index
    %357 = vector.load %arg18[%c0_169, %c0_170] : memref<32x10xf32, #tpu.memory_space<vmem>>, vector<32x10xf32>
    %cst_171 = arith.constant dense<0.000000e+00> : vector<1x10xf32>
    %358 = tpu.matmul %356, %357, %cst_171 {dimension_numbers = #tpu.dot_dimension_numbers<[1], [0], [0], [1], [0, 0, 1, 1], [], []>} : vector<1x32xf32>, vector<32x10xf32>, vector<1x10xf32> -> vector<1x10xf32>
    %c0_172 = arith.constant 0 : index
    %c0_173 = arith.constant 0 : index
    %359 = vector.load %arg19[%c0_172, %c0_173] : memref<1x10xf32, #tpu.memory_space<vmem>>, vector<1x10xf32>
    %360 = arith.addf %358, %359 : vector<1x10xf32>
    %c0_174 = arith.constant 0 : index
    %c0_175 = arith.constant 0 : index
    %c0_176 = arith.constant 0 : index
    %361 = vector.load %arg20[%c0_174, %c0_175, %c0_176] : memref<1x1x10xf32, #tpu.memory_space<vmem>>, vector<1x1x10xf32>
    %362 = vector.shape_cast %361 : vector<1x1x10xf32> to vector<1x10xf32>
    %363 = vector.shape_cast %360 : vector<1x10xf32> to vector<1x1x10xf32>
    tpu.vector_store %arg20[%c0_174, %c0_175, %c0_176], %363 {strides = array<i32>} : memref<1x1x10xf32, #tpu.memory_space<vmem>>, vector<1x1x10xf32>,
    return
  }
  func.func @transform_0(%arg0: i32) -> (i32, i32, i32) {
    %c0_i32 = arith.constant 0 : i32
    %c0_i32_0 = arith.constant 0 : i32
    %c0_i32_1 = arith.constant 0 : i32
    return %arg0, %c0_i32, %c0_i32_0 : i32, i32, i32
  }
  func.func @transform_1(%arg0: i32) -> (i32, i32, i32) {
    %c0_i32 = arith.constant 0 : i32
    %c0_i32_0 = arith.constant 0 : i32
    %c0_i32_1 = arith.constant 0 : i32
    %c0_i32_2 = arith.constant 0 : i32
    return %c0_i32, %c0_i32_0, %c0_i32_1 : i32, i32, i32
  }
  func.func @transform_2(%arg0: i32) -> (i32, i32) {
    %c0_i32 = arith.constant 0 : i32
    %c0_i32_0 = arith.constant 0 : i32
    %c0_i32_1 = arith.constant 0 : i32
    return %c0_i32, %c0_i32_0 : i32, i32
  }
  func.func @transform_3(%arg0: i32) -> (i32, i32, i32) {
    %c0_i32 = arith.constant 0 : i32
    %c0_i32_0 = arith.constant 0 : i32
    %c0_i32_1 = arith.constant 0 : i32
    %c0_i32_2 = arith.constant 0 : i32
    return %c0_i32, %c0_i32_0, %c0_i32_1 : i32, i32, i32
  }
  func.func @transform_4(%arg0: i32) -> (i32, i32, i32) {
    %c0_i32 = arith.constant 0 : i32
    %c0_i32_0 = arith.constant 0 : i32
    %c0_i32_1 = arith.constant 0 : i32
    %c0_i32_2 = arith.constant 0 : i32
    return %c0_i32, %c0_i32_0, %c0_i32_1 : i32, i32, i32
  }
  func.func @transform_5(%arg0: i32) -> (i32, i32, i32) {
    %c0_i32 = arith.constant 0 : i32
    %c0_i32_0 = arith.constant 0 : i32
    %c0_i32_1 = arith.constant 0 : i32
    %c0_i32_2 = arith.constant 0 : i32
    return %c0_i32, %c0_i32_0, %c0_i32_1 : i32, i32, i32
  }
  func.func @transform_6(%arg0: i32) -> (i32, i32, i32) {
    %c0_i32 = arith.constant 0 : i32
    %c0_i32_0 = arith.constant 0 : i32
    %c0_i32_1 = arith.constant 0 : i32
    %c0_i32_2 = arith.constant 0 : i32
    return %c0_i32, %c0_i32_0, %c0_i32_1 : i32, i32, i32
  }
  func.func @transform_7(%arg0: i32) -> (i32, i32, i32) {
    %c0_i32 = arith.constant 0 : i32
    %c0_i32_0 = arith.constant 0 : i32
    %c0_i32_1 = arith.constant 0 : i32
    %c0_i32_2 = arith.constant 0 : i32
    return %c0_i32, %c0_i32_0, %c0_i32_1 : i32, i32, i32
  }
  func.func @transform_8(%arg0: i32) -> (i32, i32, i32) {
    %c0_i32 = arith.constant 0 : i32
    %c0_i32_0 = arith.constant 0 : i32
    %c0_i32_1 = arith.constant 0 : i32
    %c0_i32_2 = arith.constant 0 : i32
    return %c0_i32, %c0_i32_0, %c0_i32_1 : i32, i32, i32
  }
  func.func @transform_9(%arg0: i32) -> (i32, i32, i32) {
    %c0_i32 = arith.constant 0 : i32
    %c0_i32_0 = arith.constant 0 : i32
    %c0_i32_1 = arith.constant 0 : i32
    %c0_i32_2 = arith.constant 0 : i32
    return %c0_i32, %c0_i32_0, %c0_i32_1 : i32, i32, i32
  }
  func.func @transform_10(%arg0: i32) -> (i32, i32, i32) {
    %c0_i32 = arith.constant 0 : i32
    %c0_i32_0 = arith.constant 0 : i32
    %c0_i32_1 = arith.constant 0 : i32
    %c0_i32_2 = arith.constant 0 : i32
    return %c0_i32, %c0_i32_0, %c0_i32_1 : i32, i32, i32
  }
  func.func @transform_11(%arg0: i32) -> (i32, i32, i32) {
    %c0_i32 = arith.constant 0 : i32
    %c0_i32_0 = arith.constant 0 : i32
    %c0_i32_1 = arith.constant 0 : i32
    %c0_i32_2 = arith.constant 0 : i32
    return %c0_i32, %c0_i32_0, %c0_i32_1 : i32, i32, i32
  }
  func.func @transform_12(%arg0: i32) -> (i32, i32, i32) {
    %c0_i32 = arith.constant 0 : i32
    %c0_i32_0 = arith.constant 0 : i32
    %c0_i32_1 = arith.constant 0 : i32
    %c0_i32_2 = arith.constant 0 : i32
    return %c0_i32, %c0_i32_0, %c0_i32_1 : i32, i32, i32
  }
  func.func @transform_13(%arg0: i32) -> (i32, i32, i32) {
    %c0_i32 = arith.constant 0 : i32
    %c0_i32_0 = arith.constant 0 : i32
    %c0_i32_1 = arith.constant 0 : i32
    %c0_i32_2 = arith.constant 0 : i32
    return %c0_i32, %c0_i32_0, %c0_i32_1 : i32, i32, i32
  }
  func.func @transform_14(%arg0: i32) -> (i32, i32, i32) {
    %c0_i32 = arith.constant 0 : i32
    %c0_i32_0 = arith.constant 0 : i32
    %c0_i32_1 = arith.constant 0 : i32
    %c0_i32_2 = arith.constant 0 : i32
    return %c0_i32, %c0_i32_0, %c0_i32_1 : i32, i32, i32
  }
  func.func @transform_15(%arg0: i32) -> (i32, i32) {
    %c0_i32 = arith.constant 0 : i32
    %c0_i32_0 = arith.constant 0 : i32
    %c0_i32_1 = arith.constant 0 : i32
    return %c0_i32, %c0_i32_0 : i32, i32
  }
  func.func @transform_16(%arg0: i32) -> (i32, i32) {
    %c0_i32 = arith.constant 0 : i32
    %c0_i32_0 = arith.constant 0 : i32
    %c0_i32_1 = arith.constant 0 : i32
    return %c0_i32, %c0_i32_0 : i32, i32
  }
  func.func @transform_17(%arg0: i32) -> (i32, i32) {
    %c0_i32 = arith.constant 0 : i32
    %c0_i32_0 = arith.constant 0 : i32
    %c0_i32_1 = arith.constant 0 : i32
    return %c0_i32, %c0_i32_0 : i32, i32
  }
  func.func @transform_18(%arg0: i32) -> (i32, i32) {
    %c0_i32 = arith.constant 0 : i32
    %c0_i32_0 = arith.constant 0 : i32
    %c0_i32_1 = arith.constant 0 : i32
    return %c0_i32, %c0_i32_0 : i32, i32
  }
  func.func @transform_19(%arg0: i32) -> (i32, i32, i32) {
    %c0_i32 = arith.constant 0 : i32
    %c0_i32_0 = arith.constant 0 : i32
    %c0_i32_1 = arith.constant 0 : i32
    return %arg0, %c0_i32, %c0_i32_0 : i32, i32, i32
  }
}

</mosaic_0001>

<bundles_post_ra>
// kernel: _lambda_.1
= control target key start
LH: loop header
LB: loop body
LE: loop exit
PB: predicated region body
PF: predicated region fallthrough
CT: control target
= control target key end

     0   :  { %s6576_s0 = inlined_call_operand.vmem [shape: f32[2,24,64], index: 0, kind: input, shape index: {}]   ;;  %s6577_s1 = inlined_call_operand.vmem [shape: f32[1,24,32], index: 1, kind: input, shape index: {}]   ;;  %s6578_s2 = inlined_call_operand.vmem [shape: f32[64,32], index: 2, kind: input, shape index: {}]   ;;  %s6579_s3 = inlined_call_operand.vmem [shape: f32[2,1,32], index: 3, kind: input, shape index: {}, may-alias: {3,9}]   ;;  %s6580_s4 = inlined_call_operand.vmem [shape: f32[2,1,32], index: 4, kind: input, shape index: {}, may-alias: {4,8,10,14}]   ;;  %s6581_s5 = inlined_call_operand.vmem [shape: f32[2,32,96], index: 5, kind: input, shape index: {}]   ;;  %s6582_s6 = inlined_call_operand.vmem [shape: f32[2,1,96], index: 6, kind: input, shape index: {}]   ;;  %s6583_s7 = inlined_call_operand.vmem [shape: f32[2,32,32], index: 7, kind: input, shape index: {}]   ;;  %s6584_s8 = inlined_call_operand.vmem [shape: f32[2,1,32], index: 8, kind: input, shape index: {}, may-alias: {4,8,10,14}]   ;;  %s6585_s9 = inlined_call_operand.vmem [shape: f32[2,1,32], index: 9, kind: input, shape index: {}, may-alias: {3,9}]   ;;  %s6586_s10 = inlined_call_operand.vmem [shape: f32[2,1,32], index: 10, kind: input, shape index: {}, may-alias: {4,8,10,14}]   ;;  %s6587_s11 = inlined_call_operand.vmem [shape: f32[2,32,128], index: 11, kind: input, shape index: {}]   ;;  %s6588_s12 = inlined_call_operand.vmem [shape: f32[2,1,128], index: 12, kind: input, shape index: {}]   ;;  %s6589_s13 = inlined_call_operand.vmem [shape: f32[2,128,32], index: 13, kind: input, shape index: {}]   ;;  %s6590_s14 = inlined_call_operand.vmem [shape: f32[2,1,32], index: 14, kind: input, shape index: {}, may-alias: {4,8,10,14}]   ;;  %s6591_s15 = inlined_call_operand.vmem [shape: f32[1,32], index: 15, kind: input, shape index: {}]   ;;  %s6592_s16 = inlined_call_operand.vmem [shape: f32[1,32], index: 16, kind: input, shape index: {}]   ;;  %s6593_s17 = inlined_call_operand.vmem [shape: f32[32,10], index: 17, kind: input, shape index: {}]   ;;  %s6594_s18 = inlined_call_operand.vmem [shape: f32[1,10], index: 18, kind: input, shape index: {}]   ;;  %s6595_s19 = inlined_call_operand.hbm [shape: f32[2,1,10], index: 19, kind: output, shape index: {}]  }
   0x1   :  { %6635 = sst [smem:[#allocation10_spill]] %s6576_s0 }
   0x2   :  { %6636 = sst [smem:[#allocation11_spill]] %s6577_s1 }
   0x3   :  { %6637 = sst [smem:[#allocation12_spill]] %s6578_s2 }
   0x4   :  { %6638 = sst [smem:[#allocation13_spill]] %s6579_s3 }
   0x5   :  { %24 = vsyncpa [#allocation3], 0 }
   0x6   :  { %26 = vsyncpa [#allocation3 + $0x1], 0  ;;  %s5390_s0 = smov 0   ;;  %s5392_s30 = smov 0  }
   0x7   :  { %s5394_s20 = smov 0   ;;  %s5396_s21 = smov 0  }
   0x8 LB: > { %6639 = sst [smem:[#allocation5_spill]] %s5258_s0  ;;  %s5411_s1 = sadd.s32 4294967295, %s5270_s21   ;;  %s5270_s21 = sphi %s5396_s21, %s6669_s21   ;;  %s5266_s20 = sphi %s5394_s20, %s6671_s20   ;;  %s5262_s30 = sphi %s5392_s30, %s6673_s30   ;;  %s5258_s0 = sphi %s5390_s0, %s6672_s0  }
   0x9   : > { %6640 = sst [smem:[#allocation6_spill]] %s5266_s20  ;;  %s3973_s22 = sadd.s32 4294967294, %s5270_s21  }
   0xa   : > { %s5415_s2 = sadd.s32 1, %s5270_s21   ;;  %s443_s23 = sadd.s32 1, %s5266_s20 }
   0xb   : > { %6641 = sst [smem:[#allocation7_spill]] %s5415_s2  ;;  %s440_s24 = ssub.s32 %s5270_s21, %s5415_s2 }
   0xc   : > { %p453_p0 = scmp.ne.s32.totalorder %s5266_s20, %s5262_s30  ;;  %p441_p1 = scmp.eq.s32.totalorder %s440_s24, 0 }
   0xd   : > { %p454_p2 = scmp.eq.s32.totalorder %s5411_s1, 1  ;;  %p459_p3 = scmp.ne.s32.totalorder %s5262_s30, %s5258_s0 }
   0xe   : > { %p460_p4 = scmp.eq.s32.totalorder %s3973_s22, 1  ;;  %p3976_p7 = scmp.ge.s32.totalorder %s5270_s21, 1 }
   0xf   : > { %s5426_s25 = scalar_select %p441_p1, %s5266_s20, %s443_s23  }
  0x10   : > { %p5428_p5 = por %p454_p2, %p453_p0  ;;  %p5432_p6 = por %p460_p4, %p459_p3 }
  0x11   : > { %6642 = sst [smem:[#allocation8_spill]] %s5426_s25  ;;  %p540_p8 = scmp.lt.s32.totalorder %s5270_s21, 3 }
  0x12   : > { %s6644_s26 = scalar_select %p5432_p6, 1, 0 }
  0x13   : > { %p541_p9 = pnand %p3976_p7, %p540_p8 }
  0x14   : > { %6645 = sst [smem:[#allocation9_spill]] %s6644_s26  ;;  %s6646_s29 = sld [smem:[#allocation12_spill]] (!%p541_p9)  ;;  %v5272_v3 = vmov (!%p541_p9), 0.0|0.0   ;;  %vm5273_vm0 = vmmov (!%p541_p9), 0   ;;  %v5274_v6 = vmov (!%p541_p9), 0.0   ;;  %vm614_vm1 = vcmask (!%p541_p9), 523264  }
  0x15   : > { %544 = sbr.rel (%p541_p9) target bundleno = 6023 (0x1787), region = 96  ;;  %4779 = vmatprep.subr.bf16.mxu0 (!%p541_p9), %v5272_v3  ;;  %4335 = vmatprep.mubr.msk.f32.mxu0 (!%p541_p9), %vm5273_vm0, %v5274_v6  ;;  %p595_p10 = scmp.lt.s32.totalorder (!%p541_p9), %s5411_s1, 1  ;;  %vm712_vm2 = vcmask (!%p541_p9), 261120   ;;  %v771_v47 = vld [vmem:[%s6581_s5] sm:$0xff] (!%p541_p9)  ;;  %v772_v48 = vld [vmem:[%s6581_s5 + $0x8] sm:$0xff] (!%p541_p9)  ;;  %v773_v50 = vld [vmem:[%s6581_s5 + $0x10] sm:$0xff] (!%p541_p9) }
  0x16   : > { %4797 = vmatprep.subr.bf16.mxu1 (!%p541_p9), %v5272_v3  ;;  %4367 = vmatprep.mubr.msk.f32.mxu1 (!%p541_p9), %vm5273_vm0, %v5274_v6  ;;  %s6647_s20 = sld [smem:[#allocation10_spill]] (!%p541_p9)  ;;  %v4792_v49 = vpack.c.bf16 (!%p541_p9), %v772_v48, %v771_v47  ;;  %v774_v51 = vld [vmem:[%s6581_s5 + $0x18] sm:$0xff] (!%p541_p9)  ;;  %s6624_s24 = smov (!%p541_p9), 96   ;;  %vm883_vm3 = vcmask (!%p541_p9), 64512   ;;  %vm982_vm6 = vcmask (!%p541_p9), 195584   ;;  %vm1867_vm7 = vcmask (!%p541_p9), 130048  }
  0x17   : > { %v4795_v52 = vpack.c.bf16 (!%p541_p9), %v774_v51, %v773_v50  ;;  %s6618_s25 = smov (!%p541_p9), 80   ;;  %s6622_s27 = smov (!%p541_p9), 88   ;;  %vm5578_vm4 = vmpackc.low (!%p541_p9), %vm883_vm3, %vm883_vm3  ;;  %vm3809_vm8 = vcmask (!%p541_p9), 253952   ;;  %vm3903_vm9 = vcmask (!%p541_p9), 73728  }
  0x18   : > { %s6616_s26 = smov (!%p541_p9), 72   ;;  %s6604_s22 = smov (!%p541_p9), 104  }
  0x19   : > { %s6612_s23 = smov (!%p541_p9), 64  }
  0x1a   : > { %v606_v0 = vld [vmem:[%s6646_s29] sm:$0xff] (!%p541_p9)  ;;  %v607_v1 = vld [vmem:[%s6646_s29 + $0x8] sm:$0xff] (!%p541_p9)  ;;  %v608_v2 = vld [vmem:[%s6646_s29 + $0x10] sm:$0xff] (!%p541_p9) }
  0x1b   : > { %v4780_v4 = vpack.c.bf16 (!%p541_p9), %v607_v1, %v606_v0  ;;  %v609_v5 = vld [vmem:[%s6646_s29 + $0x18] sm:$0xff] (!%p541_p9)  ;;  %v610_v8 = vld [vmem:[%s6646_s29 + $0x20] sm:$0xff] (!%p541_p9)  ;;  %v611_v9 = vld [vmem:[%s6646_s29 + $0x28] sm:$0xff] (!%p541_p9) }
  0x1c   : > { %v4783_v7 = vpack.c.bf16 %v609_v5, %v608_v2  ;;  %s596_s28 = scalar_select %p595_p10, %s5411_s1, 1  ;;  %v4786_v10 = vpack.c.bf16 %v611_v9, %v610_v8  ;;  %v612_v11 = vld [vmem:[%s6646_s29 + $0x30] sm:$0xff]  ;;  %v613_v12 = vld [vmem:[%s6646_s29 + $0x38] sm:$0xff]  ;;  %v3982_v1 = vld [vmem:[%s6580_s4] ss:$0 sm:$0xff] }
  0x1d   : > { %4781 = vmatpush3.bf16.msra.mxu0 %v4780_v4  ;;  %v4789_v13 = vpack.c.bf16 %v613_v12, %v612_v11  ;;  %s6661_s29 = smov 56  }
  0x1e   : > { %4782 = vmatprep.subr.bf16.mxu0 %v5272_v3  ;;  %s4937_s0 = smul.u32 24, %s596_s28  ;;  %s6648_s28 = sld [smem:[#allocation11_spill]] }
  0x20   : > { %s599_s2 = scalar_lea.vmem %s6647_s20, %s4937_s0  ;;  %s6649_s20 = sld [smem:[#allocation13_spill]] }
  0x21   : > { %4784 = vmatpush3.bf16.msra.mxu0 %v4783_v7  ;;  %v603_v14 = vld [vmem:[%s599_s2] sm:$0xff]  ;;  %v604_v15 = vld [vmem:[%s599_s2 + $0x8] sm:$0xff]  ;;  %v605_v16 = vld [vmem:[%s599_s2 + $0x10] sm:$0xff]  ;;  %s6614_s0 = smov 112  }
  0x22   : > { %4785 = vmatprep.subr.bf16.mxu0 %v5272_v3 }
  0x24   : > { %v600_v17 = vld [vmem:[%s6648_s28] sm:$0xff]  ;;  %v601_v21 = vld [vmem:[%s6648_s28 + $0x8] sm:$0xff]  ;;  %v602_v26 = vld [vmem:[%s6648_s28 + $0x10] sm:$0xff]  ;;  %s6655_s28 = smov 120  }
  0x25   : > { %4787 = vmatpush3.bf16.msra.mxu0 %v4786_v10 }
  0x26   : > { %4788 = vmatprep.subr.bf16.mxu0 %v5272_v3  ;;  %s6650_s2 = smov %s6649_s20  ;;  %v3981_v63 = vld [vmem:[%s6649_s20] ss:$0 sm:$0xff]  ;;  %s6620_s20 = smov 120  }
  0x29   : > { %4790 = vmatpush3.bf16.msra.mxu0 %v4789_v13 }
  0x2a   : > { %4791 = vmatprep.subr.bf16.mxu0 %v5272_v3 }
  0x2c   : > { %4336 = vmatmul.mubr.msk.f32.vlgmr.msra.gmra.mrb[0].mxu0 %vm614_vm1, %v603_v14 }
  0x2d   : > { %4338 = vmatprep.mubr.msk.f32.mxu0 %vm5273_vm0, %v5274_v6  ;;  %4793 = vmatpush3.bf16.msra.mxu0 %v4792_v49 }
  0x2e   : > { %4794 = vmatprep.subr.bf16.mxu0 %v5272_v3 }
  0x30   : > { %4339 = vmatmul.mubr.msk.f32.gmra.mrb[2].mxu0 %vm614_vm1, %v604_v15 }
  0x31   : > { %4341 = vmatprep.mubr.msk.f32.mxu0 %vm5273_vm0, %v5274_v6  ;;  %4796 = vmatpush3.bf16.msra.mxu0 %v4795_v52 }
  0x32   : > { %4801 = vmatprep.subr.bf16.mxu0 %v5272_v3 }
  0x34   : > { %4342 = vmatmul.mubr.msk.f32.gmra.mrb[4].mxu0 %vm614_vm1, %v605_v16  ;;  %v3983_v16 = vld [vmem:[%s6582_s6] ss:$0 sm:$0xff] }
  0x35   : > { %4352 = vmatprep.mubr.msk.f32.mxu0 %vm5273_vm0, %v5274_v6 }
  0xff   : > { %v690_v18 = vpop.f32.mrb[0].mxu0 }
 0x100   : > { %v5486_v19 = vadd.f32 %v690_v18, %v600_v17  ;;  %v4337_v20 = vpop.f32.mrb[1].mxu0 }
 0x102   : > { %v713_v22 = vsel %vm712_vm2, %v5486_v19, 0.0 }
 0x103   : > { %714 = vadd.xlane.f32.xlu0 %v713_v22  ;;  %v695_v23 = vpop.f32.mrb[2].mxu0 }
 0x104   : > { %v5493_v24 = vadd.f32 %v695_v23, %v601_v21  ;;  %v4340_v25 = vpop.f32.mrb[3].mxu0 }
 0x106   : > { %v716_v27 = vsel %vm712_vm2, %v5493_v24, 0.0 }
 0x107   : > { %717 = vadd.xlane.f32.xlu0 %v716_v27  ;;  %v700_v28 = vpop.f32.mrb[4].mxu0 }
 0x108   : > { %v5500_v29 = vadd.f32 %v700_v28, %v602_v26  ;;  %v4343_v30 = vpop.f32.mrb[5].mxu0 }
 0x10a   : > { %v719_v31 = vsel %vm712_vm2, %v5500_v29, 0.0 }
 0x10b   : > { %720 = vadd.xlane.f32.xlu1 %v719_v31 }
 0x190   : > { %v715_v32 = vpop.xlane.xlu0 %714 }
 0x191   : > { %v723_v33 = vmul.f32 0.03125, %v715_v32 }
 0x193   : > { %v726_v34 = vsub.f32 %v5486_v19, %v723_v33 }
 0x194   : > { %v718_v35 = vpop.xlane.xlu0 %717 }
 0x195   : > { %v724_v36 = vmul.f32 0.03125, %v718_v35  ;;  %v729_v37 = vmul.f32 %v726_v34, %v726_v34 }
 0x197   : > { %v727_v38 = vsub.f32 %v5493_v24, %v724_v36  ;;  %v732_v39 = vsel %vm712_vm2, %v729_v37, 0.0 }
 0x198   : > { %733 = vadd.xlane.f32.xlu1 %v732_v39  ;;  %v721_v40 = vpop.xlane.xlu1 %720 }
 0x199   : > { %v725_v41 = vmul.f32 0.03125, %v721_v40  ;;  %v730_v42 = vmul.f32 %v727_v38, %v727_v38 }
 0x19b   : > { %v728_v43 = vsub.f32 %v5500_v29, %v725_v41  ;;  %v735_v44 = vsel %vm712_vm2, %v730_v42, 0.0 }
 0x19c   : > { %736 = vadd.xlane.f32.xlu0 %v735_v44 }
 0x19d   : > { %v731_v45 = vmul.f32 %v728_v43, %v728_v43 }
 0x19f   : > { %v738_v46 = vsel %vm712_vm2, %v731_v45, 0.0 }
 0x1a0   : > { %739 = vadd.xlane.f32.xlu1 %v738_v46 }
 0x225   : > { %v734_v53 = vpop.xlane.xlu1 %733 }
 0x226   : > { %v741_v54 = vmul.f32 0.03125, %v734_v53 }
 0x228   : > { %v744_v55 = vadd.f32 1e-05, %v741_v54 }
 0x229   : > { %v737_v56 = vpop.xlane.xlu0 %736 }
 0x22a   : > { %5074 = vrsqrt.f32 %v744_v55  ;;  %v742_v57 = vmul.f32 0.03125, %v737_v56 }
 0x22c   : > { %v745_v58 = vadd.f32 1e-05, %v742_v57 }
 0x22d   : > { %v740_v59 = vpop.xlane.xlu1 %739 }
 0x22e   : > { %5076 = vrsqrt.f32 %v745_v58  ;;  %v743_v60 = vmul.f32 0.03125, %v740_v59 }
 0x230   : > { %v746_v61 = vadd.f32 1e-05, %v743_v60 }
 0x232   : > { %5078 = vrsqrt.f32 %v746_v61 }
 0x234   : > { %v5075_v62 = vpop.eup %5074 }
 0x235   : > { %v750_v0 = vmul.f32 %v5075_v62, %v726_v34 }
 0x237   : > { %v759_v2 = vmul.f32 %v3981_v63, %v750_v0 }
 0x238   : > { %v5077_v4 = vpop.eup %5076 }
 0x239   : > { %v768_v5 = vadd.f32 %v3982_v1, %v759_v2  ;;  %v751_v7 = vmul.f32 %v5077_v4, %v727_v38  ;;  %v707_v2 = vlaneseq }
 0x23b   : > { %4353 = vmatmul.mubr.msk.f32.vlgmr.msra.gmra.mrb[6].mxu0 %vm712_vm2, %v768_v5  ;;  %v760_v8 = vmul.f32 %v3981_v63, %v751_v7  ;;  %v5640_v4 = vand.u32 127, %v707_v2 }
 0x23c   : > { %v5079_v9 = vpop.eup %5078  ;;  %4355 = vmatprep.mubr.msk.f32.mxu0 %vm5273_vm0, %v5274_v6 }
 0x23d   : > { %v769_v10 = vadd.f32 %v3982_v1, %v760_v8  ;;  %v752_v11 = vmul.f32 %v5079_v9, %v728_v43  ;;  %vm709_vm5 = vcmp.lt.s32.totalorder %v5640_v4, 17 }
 0x23f   : > { %4356 = vmatmul.mubr.msk.f32.gmra.mrb[8].mxu0 %vm712_vm2, %v769_v10  ;;  %v761_v12 = vmul.f32 %v3981_v63, %v752_v11 }
 0x240   : > { %4358 = vmatprep.mubr.msk.f32.mxu0 %vm5273_vm0, %v5274_v6 }
 0x241   : > { %v770_v13 = vadd.f32 %v3982_v1, %v761_v12 }
 0x243   : > { %4359 = vmatmul.mubr.msk.f32.gmra.mrb[10].mxu0 %vm712_vm2, %v770_v13 }
 0x244   : > { %4382 = vmatprep.mubr.msk.f32.mxu0 %vm5273_vm0, %v5274_v6 }
 0x30e   : > { %v857_v14 = vpop.f32.mrb[6].mxu0 }
 0x30f   : > { %v4354_v15 = vpop.f32.mrb[7].mxu0  ;;  %v858_v18 = vadd.f32 %v3983_v16, %v857_v14 }
 0x311   : > { %v871_v28 = vmul.f32 0.35355338, %v858_v18 }
 0x312   : > { %v862_v17 = vpop.f32.mrb[8].mxu0 }
 0x313   : > { %v863_v20 = vadd.f32 %v3983_v16, %v862_v17  ;;  %v4357_v21 = vpop.f32.mrb[9].mxu0 }
 0x315   : > { %v5542_v22 = vpack.i.bf16 %v863_v20, %v858_v18  ;;  %v872_v27 = vmul.f32 0.35355338, %v863_v20 }
 0x316   : > { %v867_v23 = vpop.f32.mrb[10].mxu0 }
 0x317   : > { %v5544_v25 = vadd.f32 %v3983_v16, %v867_v23  ;;  %4995 = vrot.lane.b32.xlu0 %v5542_v22, %s6624_s24  ;;  %v4360_v26 = vpop.f32.mrb[11].mxu0 }
 0x319   : > { %881 = vrot.lane.b32.xlu1 %v5544_v25, %s6624_s24  ;;  %v873_v30 = vmul.f32 0.35355338, %v5544_v25  ;;  %s6658_s24 = smov 112  }
 0x31b   : > { %5005 = vrot.lane.b32.xlu0 %v5542_v22, %s6618_s25 }
 0x31d   : > { %5000 = vrot.lane.b32.xlu1 %v5542_v22, %s6622_s27 }
 0x31f   : > { %1116 = vrot.lane.b32.xlu0 %v872_v27, %s6620_s20 }
 0x321   : > { %1124 = vrot.lane.b32.xlu1 %v5544_v25, %s6622_s27  ;;  %s6659_s27 = smov 64  }
 0x323   : > { %1362 = vrot.lane.b32.xlu0 %v5544_v25, %s6618_s25  ;;  %s6627_s25 = smov 24  }
 0x325   : > { %1114 = vrot.lane.b32.xlu1 %v871_v28, %s6620_s20 }
 0x327   : > { %1352 = vrot.lane.b32.xlu0 %v871_v28, %s6614_s0 }
 0x329   : > { %1118 = vrot.lane.b32.xlu1 %v873_v30, %s6620_s20  ;;  %s6660_s20 = smov 104  }
 0x32b   : > { %1356 = vrot.lane.b32.xlu0 %v873_v30, %s6614_s0 }
 0x32d   : > { %5010 = vrot.lane.b32.xlu1 %v5542_v22, %s6616_s26 }
 0x32f   : > { %1590 = vrot.lane.b32.xlu0 %v871_v28, %s6604_s22 }
 0x331   : > { %1354 = vrot.lane.b32.xlu1 %v872_v27, %s6614_s0  ;;  %s6629_s0 = smov 16  }
 0x333   : > { %1594 = vrot.lane.b32.xlu0 %v873_v30, %s6604_s22 }
 0x335   : > { %1600 = vrot.lane.b32.xlu1 %v5544_v25, %s6616_s26  ;;  %s6653_s26 = smov 96  }
 0x337   : > { %5015 = vrot.lane.b32.xlu0 %v5542_v22, %s6612_s23 }
 0x339   : > { %1592 = vrot.lane.b32.xlu1 %v872_v27, %s6604_s22  ;;  %s6606_s22 = smov 56  }
 0x33d   : > { %1020 = vrot.lane.b32.xlu1 %v5544_v25, %s6612_s23  ;;  %s6654_s23 = smov 88  }
 0x389   : > { %v4996_v31 = vpop.permute.xlu0 %4995 }
 0x38a   : > { %v4998_v32 = vunpack.i.h.bf16 %v4996_v31  ;;  %v4997_v33 = vunpack.i.l.bf16 %v4996_v31 }
 0x38b   : > { %v882_v34 = vpop.permute.xlu1 %881 }
 0x38c   : > { %v4798_v36 = vpack.c.bf16 %v4998_v32, %v4997_v33 }
 0x38d   : > { %v5006_v37 = vpop.permute.xlu0 %5005 }
 0x38e   : > { %4800 = vmatpush3.bf16.xpose.msk.msra.mxu1 %vm5578_vm4, %v4798_v36  ;;  %v5008_v50 = vunpack.i.h.bf16 %v5006_v37  ;;  %v5007_v51 = vunpack.i.l.bf16 %v5006_v37 }
 0x38f   : > { %v5001_v38 = vpop.permute.xlu1 %5000  ;;  %4365 = vmatprep.subr.mxu1 %v5274_v6 }
 0x390   : > { %v5003_v41 = vunpack.i.h.bf16 %v5001_v38  ;;  %v5002_v42 = vunpack.i.l.bf16 %v5001_v38  ;;  %v4812_v54 = vpack.c.bf16 %v5008_v50, %v5007_v51 }
 0x391   : > { %v1117_v39 = vpop.permute.xlu0 %1116 }
 0x392   : > { %v4805_v45 = vpack.c.bf16 %v5003_v41, %v5002_v42 }
 0x393   : > { %v1125_v40 = vpop.permute.xlu1 %1124 }
 0x395   : > { %v1363_v43 = vpop.permute.xlu0 %1362 }
 0x396   : > { %4366 = vmatpush3.xpose.msk.msra.mxu1 %vm883_vm3, %v882_v34 }
 0x397   : > { %v1115_v44 = vpop.permute.xlu1 %1114  ;;  %4804 = vmatprep.subr.bf16.mxu1 %v5272_v3 }
 0x399   : > { %v1353_v46 = vpop.permute.xlu0 %1352  ;;  %4368 = vmatmul.mubr.msk.f32.vlgmr.msra.gmra.mrb[0].mxu1 %vm883_vm3, %v871_v28 }
 0x39a   : > { %4807 = vmatpush3.bf16.xpose.msk.msra.mxu1 %vm5578_vm4, %v4805_v45  ;;  %4370 = vmatprep.mubr.msk.f32.mxu1 %vm5273_vm0, %v5274_v6 }
 0x39b   : > { %v1119_v47 = vpop.permute.xlu1 %1118  ;;  %4395 = vmatprep.subr.mxu1 %v5274_v6 }
 0x39d   : > { %4371 = vmatmul.mubr.msk.f32.gmra.mrb[2].mxu1 %vm883_vm3, %v872_v27  ;;  %v1357_v48 = vpop.permute.xlu0 %1356 }
 0x39e   : > { %4373 = vmatprep.mubr.msk.f32.mxu1 %vm5273_vm0, %v5274_v6 }
 0x39f   : > { %v5011_v49 = vpop.permute.xlu1 %5010 }
 0x3a0   : > { %v5013_v61 = vunpack.i.h.bf16 %v5011_v49  ;;  %v5012_v62 = vunpack.i.l.bf16 %v5011_v49 }
 0x3a1   : > { %v1591_v52 = vpop.permute.xlu0 %1590  ;;  %4374 = vmatmul.mubr.msk.f32.gmra.mrb[4].mxu1 %vm883_vm3, %v873_v30 }
 0x3a2   : > { %4396 = vmatpush3.xpose.msk.msra.mxu1 %vm883_vm3, %v1125_v40  ;;  %4397 = vmatprep.mubr.msk.f32.mxu1 %vm5273_vm0, %v5274_v6  ;;  %v4819_v0 = vpack.c.bf16 %v5013_v61, %v5012_v62 }
 0x3a3   : > { %v1355_v53 = vpop.permute.xlu1 %1354  ;;  %4811 = vmatprep.subr.bf16.mxu1 %v5272_v3 }
 0x3a5   : > { %v1595_v55 = vpop.permute.xlu0 %1594  ;;  %4398 = vmatmul.mubr.msk.f32.vlgmr.msra.gmra.mrb[6].mxu1 %vm883_vm3, %v1115_v44 }
 0x3a6   : > { %4814 = vmatpush3.bf16.xpose.msk.msra.mxu1 %vm5578_vm4, %v4812_v54  ;;  %4400 = vmatprep.mubr.msk.f32.mxu1 %vm5273_vm0, %v5274_v6 }
 0x3a7   : > { %v1601_v56 = vpop.permute.xlu1 %1600  ;;  %4425 = vmatprep.subr.mxu1 %v5274_v6 }
 0x3a9   : > { %v5016_v57 = vpop.permute.xlu0 %5015  ;;  %4401 = vmatmul.mubr.msk.f32.gmra.mrb[8].mxu1 %vm883_vm3, %v1117_v39 }
 0x3aa   : > { %v5018_v58 = vunpack.i.h.bf16 %v5016_v57  ;;  %v5017_v59 = vunpack.i.l.bf16 %v5016_v57  ;;  %4403 = vmatprep.mubr.msk.f32.mxu1 %vm5273_vm0, %v5274_v6 }
 0x3ab   : > { %v1593_v60 = vpop.permute.xlu1 %1592 }
 0x3ac   : > { %v4802_v63 = vpack.c.bf16 %v5018_v58, %v5017_v59 }
 0x3ad   : > { %4404 = vmatmul.mubr.msk.f32.gmra.mrb[10].mxu1 %vm883_vm3, %v1119_v47 }
 0x3ae   : > { %4803 = vmatpush3.bf16.msra.mxu0 %v4802_v63  ;;  %4426 = vmatpush3.xpose.msk.msra.mxu1 %vm883_vm3, %v1363_v43 }
 0x3af   : > { %4427 = vmatprep.mubr.msk.f32.mxu1 %vm5273_vm0, %v5274_v6  ;;  %4380 = vmatprep.subr.mxu0 %v5274_v6  ;;  %v1021_v1 = vpop.permute.xlu1 %1020 }
 0x3b0   : > { %4818 = vmatprep.subr.bf16.mxu1 %v5272_v3 }
 0x3b1   : > { %4428 = vmatmul.mubr.msk.f32.vlgmr.msra.gmra.mrb[12].mxu1 %vm883_vm3, %v1353_v46 }
 0x3b2   : > { %4381 = vmatpush3.msra.mxu0 %v1021_v1  ;;  %4821 = vmatpush3.bf16.xpose.msk.msra.mxu1 %vm5578_vm4, %v4819_v0 }
 0x3b3   : > { %4430 = vmatprep.mubr.msk.f32.mxu1 %vm5273_vm0, %v5274_v6  ;;  %4455 = vmatprep.subr.mxu1 %v5274_v6 }
 0x3b4   : > { %4808 = vmatprep.subr.bf16.mxu0 %v5272_v3 }
 0x3b5   : > { %4431 = vmatmul.mubr.msk.f32.gmra.mrb[14].mxu1 %vm883_vm3, %v1355_v53 }
 0x3b6   : > { %4433 = vmatprep.mubr.msk.f32.mxu1 %vm5273_vm0, %v5274_v6 }
 0x3b9   : > { %4434 = vmatmul.mubr.msk.f32.gmra.mrb[16].mxu1 %vm883_vm3, %v1357_v48 }
 0x3ba   : > { %4456 = vmatpush3.xpose.msk.msra.mxu1 %vm883_vm3, %v1601_v56  ;;  %4457 = vmatprep.mubr.msk.f32.mxu1 %vm5273_vm0, %v5274_v6 }
 0x3bb   : > { %4825 = vmatprep.subr.bf16.mxu1 %v5272_v3 }
 0x3bd   : > { %4458 = vmatmul.mubr.msk.f32.vlgmr.msra.gmra.mrb[18].mxu1 %vm883_vm3, %v1591_v52 }
 0x3be   : > { %4460 = vmatprep.mubr.msk.f32.mxu1 %vm5273_vm0, %v5274_v6 }
 0x3c1   : > { %4461 = vmatmul.mubr.msk.f32.gmra.mrb[20].mxu1 %vm883_vm3, %v1593_v60 }
 0x3c2   : > { %4463 = vmatprep.mubr.msk.f32.mxu1 %vm5273_vm0, %v5274_v6 }
 0x3c5   : > { %4464 = vmatmul.mubr.msk.f32.gmra.mrb[22].mxu1 %vm883_vm3, %v1595_v55 }
 0x3c6   : > { %4489 = vmatprep.mubr.msk.f32.mxu1 %vm5273_vm0, %v5274_v6 }
 0x46c   : > { %v965_v5 = vpop.f32.mrb[0].mxu1 }
 0x46d   : > { %v5645_v7 = vsel %vm709_vm5, %v965_v5, -1e+30  ;;  %v4369_v8 = vpop.f32.mrb[1].mxu1 }
 0x46e   : > { %v983_v9 = vsel %vm982_vm6, %v5645_v7, -inf }
 0x46f   : > { %984 = vmax.xlane.f32.xlu1 %v983_v9 }
 0x470   : > { %v970_v10 = vpop.f32.mrb[2].mxu1 }
 0x471   : > { %v5651_v11 = vsel %vm709_vm5, %v970_v10, -1e+30  ;;  %v4372_v12 = vpop.f32.mrb[3].mxu1 }
 0x472   : > { %v986_v13 = vsel %vm982_vm6, %v5651_v11, -inf }
 0x473   : > { %987 = vmax.xlane.f32.xlu0 %v986_v13 }
 0x474   : > { %v975_v14 = vpop.f32.mrb[4].mxu1 }
 0x475   : > { %v5657_v15 = vsel %vm709_vm5, %v975_v14, -1e+30  ;;  %v4375_v16 = vpop.f32.mrb[5].mxu1 }
 0x476   : > { %v989_v17 = vsel %vm982_vm6, %v5657_v15, -inf }
 0x477   : > { %990 = vmax.xlane.f32.xlu0 %v989_v17 }
 0x478   : > { %v1204_v18 = vpop.f32.mrb[6].mxu1 }
 0x479   : > { %v5663_v20 = vsel %vm709_vm5, %v1204_v18, -1e+30  ;;  %v4399_v21 = vpop.f32.mrb[7].mxu1 }
 0x47a   : > { %v1221_v23 = vsel %vm982_vm6, %v5663_v20, -inf }
 0x47b   : > { %1222 = vmax.xlane.f32.xlu0 %v1221_v23 }
 0x47c   : > { %v1209_v26 = vpop.f32.mrb[8].mxu1 }
 0x47d   : > { %v5669_v27 = vsel %vm709_vm5, %v1209_v26, -1e+30  ;;  %v4402_v28 = vpop.f32.mrb[9].mxu1 }
 0x47e   : > { %v1224_v30 = vsel %vm982_vm6, %v5669_v27, -inf }
 0x47f   : > { %1225 = vmax.xlane.f32.xlu1 %v1224_v30 }
 0x480   : > { %v1214_v31 = vpop.f32.mrb[10].mxu1 }
 0x481   : > { %v5675_v32 = vsel %vm709_vm5, %v1214_v31, -1e+30  ;;  %v4405_v33 = vpop.f32.mrb[11].mxu1 }
 0x482   : > { %v1227_v34 = vsel %vm982_vm6, %v5675_v32, -inf }
 0x483   : > { %1228 = vmax.xlane.f32.xlu0 %v1227_v34 }
 0x484   : > { %v1442_v36 = vpop.f32.mrb[12].mxu1 }
 0x485   : > { %v4429_v37 = vpop.f32.mrb[13].mxu1  ;;  %v5701_v54 = vsel %vm709_vm5, %v1442_v36, -1e+30 }
 0x486   : > { %v1459_v55 = vsel %vm982_vm6, %v5701_v54, -inf }
 0x488   : > { %v1447_v38 = vpop.f32.mrb[14].mxu1 }
 0x489   : > { %v5681_v39 = vsel %vm709_vm5, %v1447_v38, -1e+30  ;;  %v4432_v40 = vpop.f32.mrb[15].mxu1 }
 0x48a   : > { %v1462_v41 = vsel %vm982_vm6, %v5681_v39, -inf }
 0x48b   : > { %1463 = vmax.xlane.f32.xlu0 %v1462_v41 }
 0x48c   : > { %v1452_v42 = vpop.f32.mrb[16].mxu1 }
 0x48d   : > { %v4435_v43 = vpop.f32.mrb[17].mxu1  ;;  %v5709_v56 = vsel %vm709_vm5, %v1452_v42, -1e+30 }
 0x48e   : > { %v1465_v57 = vsel %vm982_vm6, %v5709_v56, -inf }
 0x490   : > { %5020 = vrot.lane.b32.xlu1 %v5542_v22, %s6606_s22  ;;  %v1680_v44 = vpop.f32.mrb[18].mxu1 }
 0x491   : > { %v5689_v45 = vsel %vm709_vm5, %v1680_v44, -1e+30  ;;  %v4459_v46 = vpop.f32.mrb[19].mxu1 }
 0x492   : > { %v1697_v47 = vsel %vm982_vm6, %v5689_v45, -inf }
 0x493   : > { %1698 = vmax.xlane.f32.xlu0 %v1697_v47 }
 0x494   : > { %v1685_v48 = vpop.f32.mrb[20].mxu1 }
 0x495   : > { %v4462_v49 = vpop.f32.mrb[21].mxu1  ;;  %v5715_v58 = vsel %vm709_vm5, %v1685_v48, -1e+30 }
 0x496   : > { %v1700_v59 = vsel %vm982_vm6, %v5715_v58, -inf }
 0x498   : > { %v1690_v50 = vpop.f32.mrb[22].mxu1 }
 0x499   : > { %v5695_v51 = vsel %vm709_vm5, %v1690_v50, -1e+30  ;;  %v4465_v52 = vpop.f32.mrb[23].mxu1 }
 0x49a   : > { %v1703_v53 = vsel %vm982_vm6, %v5695_v51, -inf }
 0x49b   : > { %1704 = vmax.xlane.f32.xlu0 %v1703_v53 }
 0x4b1   : > { %1258 = vrot.lane.b32.xlu0 %v5544_v25, %s6606_s22  ;;  %s6608_s22 = smov 48  }
 0x4b4   : > { %1460 = vmax.xlane.f32.xlu1 %v1459_v55 }
 0x4b8   : > { %1466 = vmax.xlane.f32.xlu1 %v1465_v57 }
 0x4bc   : > { %1701 = vmax.xlane.f32.xlu1 %v1700_v59 }
 0x4cd   : > { %5025 = vrot.lane.b32.xlu1 %v5542_v22, %s6608_s22 }
 0x4fc   : > { %v985_v60 = vpop.xlane.xlu1 %984 }
 0x4fd   : > { %v992_v61 = vsub.f32 %v5645_v7, %v985_v60 }
 0x4ff   : > { %v995_v62 = vmul.f32 1.442695, %v992_v61 }
 0x500   : > { %v988_v63 = vpop.xlane.xlu0 %987 }
 0x501   : > { %5080 = vpow2.f32 %v995_v62  ;;  %v993_v0 = vsub.f32 %v5651_v11, %v988_v63 }
 0x503   : > { %v997_v1 = vmul.f32 1.442695, %v993_v0 }
 0x504   : > { %v991_v2 = vpop.xlane.xlu0 %990 }
 0x505   : > { %5082 = vpow2.f32 %v997_v1  ;;  %v994_v5 = vsub.f32 %v5657_v15, %v991_v2 }
 0x507   : > { %v999_v8 = vmul.f32 1.442695, %v994_v5 }
 0x508   : > { %v1223_v9 = vpop.xlane.xlu0 %1222 }
 0x509   : > { %5084 = vpow2.f32 %v999_v8  ;;  %v1230_v10 = vsub.f32 %v5663_v20, %v1223_v9 }
 0x50b   : > { %v5725_v12 = vpop.eup %5080  ;;  %v1233_v13 = vmul.f32 1.442695, %v1230_v10 }
 0x50c   : > { %v1226_v14 = vpop.xlane.xlu1 %1225  ;;  %v1001_v7 = vsel %vm982_vm6, %v5725_v12, 0.0 }
 0x50d   : > { %5086 = vpow2.f32 %v1233_v13  ;;  %v1231_v11 = vsub.f32 %v5669_v27, %v1226_v14  ;;  %1002 = vadd.xlane.f32.xlu1 %v1001_v7 }
 0x50f   : > { %v5730_v16 = vpop.eup %5082  ;;  %v1235_v17 = vmul.f32 1.442695, %v1231_v11 }
 0x510   : > { %v1229_v15 = vpop.xlane.xlu0 %1228  ;;  %v1004_v18 = vsel %vm982_vm6, %v5730_v16, 0.0  ;;  %v5021_v46 = vpop.permute.xlu1 %5020 }
 0x511   : > { %5088 = vpow2.f32 %v1235_v17  ;;  %v1232_v20 = vsub.f32 %v5675_v32, %v1229_v15  ;;  %1005 = vadd.xlane.f32.xlu0 %v1004_v18  ;;  %v5023_v13 = vunpack.i.h.bf16 %v5021_v46  ;;  %v5022_v14 = vunpack.i.l.bf16 %v5021_v46 }
 0x513   : > { %v5735_v21 = vpop.eup %5084  ;;  %v1237_v23 = vmul.f32 1.442695, %v1232_v20  ;;  %v4809_v15 = vpack.c.bf16 %v5023_v13, %v5022_v14  ;;  %v1874_v13 = vld [vmem:[%s6583_s7] sm:$0xff]  ;;  %v1875_v14 = vld [vmem:[%s6583_s7 + $0x8] sm:$0xff] }
 0x514   : > { %v1007_v26 = vsel %vm982_vm6, %v5735_v21, 0.0 }
 0x515   : > { %5090 = vpow2.f32 %v1237_v23  ;;  %1008 = vadd.xlane.f32.xlu1 %v1007_v26 }
 0x517   : > { %v5739_v27 = vpop.eup %5086 }
 0x518   : > { %v1464_v28 = vpop.xlane.xlu0 %1463  ;;  %v1239_v30 = vsel %vm982_vm6, %v5739_v27, 0.0 }
 0x519   : > { %v1469_v31 = vsub.f32 %v5681_v39, %v1464_v28  ;;  %1240 = vadd.xlane.f32.xlu0 %v1239_v30 }
 0x51b   : > { %v5744_v33 = vpop.eup %5088  ;;  %v1473_v32 = vmul.f32 1.442695, %v1469_v31 }
 0x51c   : > { %v1242_v34 = vsel %vm982_vm6, %v5744_v33, 0.0 }
 0x51d   : > { %5092 = vpow2.f32 %v1473_v32  ;;  %1243 = vadd.xlane.f32.xlu1 %v1242_v34 }
 0x51f   : > { %v5748_v36 = vpop.eup %5090 }
 0x520   : > { %v1699_v37 = vpop.xlane.xlu0 %1698  ;;  %v1245_v38 = vsel %vm982_vm6, %v5748_v36, 0.0 }
 0x521   : > { %v1706_v40 = vsub.f32 %v5689_v45, %v1699_v37  ;;  %1246 = vadd.xlane.f32.xlu1 %v1245_v38 }
 0x523   : > { %v1709_v41 = vmul.f32 1.442695, %v1706_v40 }
 0x525   : > { %5094 = vpow2.f32 %v1709_v41 }
 0x527   : > { %v5753_v39 = vpop.eup %5092 }
 0x528   : > { %v1480_v42 = vsel %vm982_vm6, %v5753_v39, 0.0  ;;  %v1705_v59 = vpop.xlane.xlu0 %1704 }
 0x529   : > { %1481 = vadd.xlane.f32.xlu0 %v1480_v42 }
 0x52c   : > { %v1259_v5 = vpop.permute.xlu0 %1258 }
 0x52f   : > { %v5757_v43 = vpop.eup %5094 }
 0x530   : > { %v1715_v44 = vsel %vm982_vm6, %v5757_v43, 0.0 }
 0x531   : > { %1716 = vadd.xlane.f32.xlu0 %v1715_v44 }
 0x541   : > { %v1461_v47 = vpop.xlane.xlu1 %1460 }
 0x542   : > { %v1468_v48 = vsub.f32 %v5701_v54, %v1461_v47  ;;  %v1708_v54 = vsub.f32 %v5695_v51, %v1705_v59 }
 0x544   : > { %v1471_v45 = vmul.f32 1.442695, %v1468_v48  ;;  %v1713_v62 = vmul.f32 1.442695, %v1708_v54 }
 0x545   : > { %v1467_v49 = vpop.xlane.xlu1 %1466 }
 0x546   : > { %5096 = vpow2.f32 %v1471_v45  ;;  %v1470_v50 = vsub.f32 %v5709_v56, %v1467_v49 }
 0x547   : > { %1496 = vrot.lane.b32.xlu0 %v5544_v25, %s6608_s22  ;;  %s6610_s22 = smov 40  }
 0x548   : > { %v1475_v52 = vmul.f32 1.442695, %v1470_v50 }
 0x549   : > { %v1702_v53 = vpop.xlane.xlu1 %1701 }
 0x54a   : > { %5098 = vpow2.f32 %v1475_v52  ;;  %v1707_v55 = vsub.f32 %v5715_v58, %v1702_v53 }
 0x54c   : > { %v1711_v57 = vmul.f32 1.442695, %v1707_v55 }
 0x54d   : > { %v5026_v2 = vpop.permute.xlu1 %5025 }
 0x54e   : > { %5100 = vpow2.f32 %v1711_v57  ;;  %v5028_v26 = vunpack.i.h.bf16 %v5026_v2  ;;  %v5027_v28 = vunpack.i.l.bf16 %v5026_v2 }
 0x54f   : > { %5102 = vpow2.f32 %v1713_v62 }
 0x550   : > { %v5766_v60 = vpop.eup %5096  ;;  %v4816_v31 = vpack.c.bf16 %v5028_v26, %v5027_v28 }
 0x551   : > { %v1477_v61 = vsel %vm982_vm6, %v5766_v60, 0.0 }
 0x552   : > { %1478 = vadd.xlane.f32.xlu1 %v1477_v61 }
 0x554   : > { %v5771_v56 = vpop.eup %5098 }
 0x555   : > { %v1483_v63 = vsel %vm982_vm6, %v5771_v56, 0.0 }
 0x556   : > { %1484 = vadd.xlane.f32.xlu1 %v1483_v63 }
 0x558   : > { %v5775_v0 = vpop.eup %5100 }
 0x559   : > { %v1718_v58 = vsel %vm982_vm6, %v5775_v0, 0.0  ;;  %v5779_v1 = vpop.eup %5102 }
 0x55a   : > { %1719 = vadd.xlane.f32.xlu1 %v1718_v58  ;;  %v1721_v51 = vsel %vm982_vm6, %v5779_v1, 0.0 }
 0x566   : > { %1722 = vadd.xlane.f32.xlu0 %v1721_v51 }
 0x56b   : > { %5030 = vrot.lane.b32.xlu1 %v5542_v22, %s6610_s22 }
 0x56f   : > { %1734 = vrot.lane.b32.xlu1 %v5544_v25, %s6610_s22  ;;  %s6631_s22 = smov 8  }
 0x59a   : > { %v1003_v8 = vpop.xlane.xlu1 %1002 }
 0x59b   : > { %5104 = vrcp.f32 %v1003_v8 }
 0x59e   : > { %v1006_v9 = vpop.xlane.xlu0 %1005 }
 0x59f   : > { %5106 = vrcp.f32 %v1006_v9 }
 0x5a2   : > { %v1009_v10 = vpop.xlane.xlu1 %1008 }
 0x5a3   : > { %5108 = vrcp.f32 %v1009_v10 }
 0x5a5   : > { %v5105_v7 = vpop.eup %5104 }
 0x5a6   : > { %v1013_v11 = vmul.f32 %v5105_v7, %v5725_v12  ;;  %v1241_v17 = vpop.xlane.xlu0 %1240  ;;  %v1876_v7 = vld [vmem:[%s6583_s7 + $0x10] sm:$0xff] }
 0x5a7   : > { %5110 = vrcp.f32 %v1241_v17  ;;  %v1877_v17 = vld [vmem:[%s6583_s7 + $0x18] sm:$0xff] }
 0x5a8   : > { %4383 = vmatmul.mubr.msk.f32.vlgmr.msra.gmra.mrb[12].mxu0 %vm982_vm6, %v1013_v11  ;;  %v4826_v11 = vpack.c.bf16 %v1875_v14, %v1874_v13 }
 0x5a9   : > { %v5107_v22 = vpop.eup %5106  ;;  %4810 = vmatpush3.bf16.msra.mxu0 %v4809_v15  ;;  %4385 = vmatprep.mubr.msk.f32.mxu0 %vm5273_vm0, %v5274_v6  ;;  %v4829_v15 = vpack.c.bf16 %v1877_v17, %v1876_v7 }
 0x5aa   : > { %v1244_v25 = vpop.xlane.xlu1 %1243  ;;  %4410 = vmatprep.subr.mxu0 %v5274_v6  ;;  %v1014_v18 = vmul.f32 %v5107_v22, %v5730_v16  ;;  %4827 = vmatpush3.bf16.msra.mxu1 %v4826_v11 }
 0x5ab   : > { %5112 = vrcp.f32 %v1244_v25  ;;  %4828 = vmatprep.subr.bf16.mxu1 %v5272_v3 }
 0x5ac   : > { %4386 = vmatmul.mubr.msk.f32.gmra.mrb[14].mxu0 %vm982_vm6, %v1014_v18 }
 0x5ad   : > { %v5109_v20 = vpop.eup %5108  ;;  %4411 = vmatpush3.msra.mxu0 %v1259_v5  ;;  %4388 = vmatprep.mubr.msk.f32.mxu0 %vm5273_vm0, %v5274_v6 }
 0x5ae   : > { %v1247_v12 = vpop.xlane.xlu1 %1246  ;;  %v1015_v23 = vmul.f32 %v5109_v20, %v5735_v21  ;;  %4815 = vmatprep.subr.bf16.mxu0 %v5272_v3  ;;  %4830 = vmatpush3.bf16.msra.mxu1 %v4829_v15 }
 0x5af   : > { %5114 = vrcp.f32 %v1247_v12  ;;  %4837 = vmatprep.subr.bf16.mxu1 %v5272_v3 }
 0x5b0   : > { %4389 = vmatmul.mubr.msk.f32.gmra.mrb[16].mxu0 %vm982_vm6, %v1015_v23 }
 0x5b1   : > { %v5111_v30 = vpop.eup %5110  ;;  %4412 = vmatprep.mubr.msk.f32.mxu0 %vm5273_vm0, %v5274_v6 }
 0x5b2   : > { %v1251_v16 = vmul.f32 %v5111_v30, %v5739_v27 }
 0x5b4   : > { %4413 = vmatmul.mubr.msk.f32.vlgmr.msra.gmra.mrb[18].mxu0 %vm982_vm6, %v1251_v16 }
 0x5b5   : > { %v5113_v32 = vpop.eup %5112  ;;  %4817 = vmatpush3.bf16.msra.mxu0 %v4816_v31  ;;  %4415 = vmatprep.mubr.msk.f32.mxu0 %vm5273_vm0, %v5274_v6 }
 0x5b6   : > { %v1252_v21 = vmul.f32 %v5113_v32, %v5744_v33  ;;  %4440 = vmatprep.subr.mxu0 %v5274_v6  ;;  %v1482_v37 = vpop.xlane.xlu0 %1481 }
 0x5b8   : > { %4416 = vmatmul.mubr.msk.f32.gmra.mrb[20].mxu0 %vm982_vm6, %v1252_v21 }
 0x5b9   : > { %v5115_v34 = vpop.eup %5114  ;;  %4418 = vmatprep.mubr.msk.f32.mxu0 %vm5273_vm0, %v5274_v6 }
 0x5ba   : > { %v1253_v27 = vmul.f32 %v5115_v34, %v5748_v36 }
 0x5bc   : > { %4419 = vmatmul.mubr.msk.f32.gmra.mrb[22].mxu0 %vm982_vm6, %v1253_v27 }
 0x5bd   : > { %4442 = vmatprep.mubr.msk.f32.mxu0 %vm5273_vm0, %v5274_v6 }
 0x5be   : > { %v1717_v38 = vpop.xlane.xlu0 %1716 }
 0x5c2   : > { %v1497_v40 = vpop.permute.xlu0 %1496 }
 0x5c3   : > { %4441 = vmatpush3.msra.mxu0 %v1497_v40 }
 0x5c4   : > { %4822 = vmatprep.subr.bf16.mxu0 %v5272_v3 }
 0x5df   : > { %v1479_v33 = vpop.xlane.xlu1 %1478 }
 0x5e0   : > { %5116 = vrcp.f32 %v1479_v33 }
 0x5e1   : > { %5118 = vrcp.f32 %v1482_v37 }
 0x5e3   : > { %v1485_v41 = vpop.xlane.xlu1 %1484 }
 0x5e4   : > { %5120 = vrcp.f32 %v1485_v41 }
 0x5e5   : > { %5122 = vrcp.f32 %v1717_v38 }
 0x5e7   : > { %v1720_v42 = vpop.xlane.xlu1 %1719 }
 0x5e8   : > { %5124 = vrcp.f32 %v1720_v42 }
 0x5ea   : > { %v5117_v44 = vpop.eup %5116 }
 0x5eb   : > { %v1489_v36 = vmul.f32 %v5117_v44, %v5766_v60  ;;  %v5031_v46 = vpop.permute.xlu1 %5030  ;;  %v5119_v47 = vpop.eup %5118 }
 0x5ec   : > { %v5033_v48 = vunpack.i.h.bf16 %v5031_v46  ;;  %v5032_v45 = vunpack.i.l.bf16 %v5031_v46  ;;  %v1490_v50 = vmul.f32 %v5119_v47, %v5753_v39 }
 0x5ed   : > { %4443 = vmatmul.mubr.msk.f32.vlgmr.msra.gmra.mrb[24].mxu0 %vm982_vm6, %v1489_v36 }
 0x5ee   : > { %v4823_v49 = vpack.c.bf16 %v5033_v48, %v5032_v45  ;;  %4445 = vmatprep.mubr.msk.f32.mxu0 %vm5273_vm0, %v5274_v6  ;;  %v5121_v52 = vpop.eup %5120 }
 0x5ef   : > { %v1735_v53 = vpop.permute.xlu1 %1734  ;;  %v1491_v57 = vmul.f32 %v5121_v52, %v5771_v56  ;;  %v5123_v59 = vpop.eup %5122 }
 0x5f0   : > { %4824 = vmatpush3.bf16.msra.mxu0 %v4823_v49  ;;  %v1727_v39 = vmul.f32 %v5123_v59, %v5757_v43 }
 0x5f1   : > { %4446 = vmatmul.mubr.msk.f32.gmra.mrb[26].mxu0 %vm982_vm6, %v1490_v50  ;;  %4470 = vmatprep.subr.mxu0 %v5274_v6 }
 0x5f2   : > { %4448 = vmatprep.mubr.msk.f32.mxu0 %vm5273_vm0, %v5274_v6  ;;  %v5125_v60 = vpop.eup %5124 }
 0x5f3   : > { %v1723_v55 = vpop.xlane.xlu0 %1722  ;;  %v1728_v54 = vmul.f32 %v5125_v60, %v5775_v0 }
 0x5f4   : > { %5126 = vrcp.f32 %v1723_v55  ;;  %4471 = vmatpush3.msra.mxu0 %v1735_v53  ;;  %v4023_v53 = vld [vmem:[%s6584_s8] ss:$0 sm:$0xff] }
 0x5f5   : > { %4449 = vmatmul.mubr.msk.f32.gmra.mrb[28].mxu0 %vm982_vm6, %v1491_v57  ;;  %4831 = vmatprep.subr.bf16.mxu0 %v5272_v3 }
 0x5f6   : > { %4472 = vmatprep.mubr.msk.f32.mxu0 %vm5273_vm0, %v5274_v6 }
 0x5f9   : > { %4473 = vmatmul.mubr.msk.f32.vlgmr.msra.gmra.mrb[30].mxu0 %vm982_vm6, %v1727_v39 }
 0x5fa   : > { %4475 = vmatprep.mubr.msk.f32.mxu0 %vm5273_vm0, %v5274_v6 }
 0x5fd   : > { %4476 = vmatmul.mubr.msk.f32.gmra.mrb[32].mxu0 %vm982_vm6, %v1728_v54 }
 0x5fe   : > { %v5127_v61 = vpop.eup %5126  ;;  %4478 = vmatprep.mubr.msk.f32.mxu0 %vm5273_vm0, %v5274_v6 }
 0x5ff   : > { %v1729_v56 = vmul.f32 %v5127_v61, %v5779_v1 }
 0x601   : > { %4479 = vmatmul.mubr.msk.f32.gmra.mrb[34].mxu0 %vm982_vm6, %v1729_v56 }
 0x602   : > { %4506 = vmatprep.mubr.msk.f32.mxu0 %vm5273_vm0, %v5274_v6 }
 0x67b   : > { %v1100_v43 = vpop.f32.mrb[12].mxu0 }
 0x67c   : > { %v4384_v62 = vpop.f32.mrb[13].mxu0 }
 0x67f   : > { %v1105_v63 = vpop.f32.mrb[14].mxu0 }
 0x680   : > { %v4387_v58 = vpop.f32.mrb[15].mxu0 }
 0x683   : > { %v1110_v51 = vpop.f32.mrb[16].mxu0 }
 0x684   : > { %v4390_v2 = vpop.f32.mrb[17].mxu0 }
 0x687   : > { %v1338_v0 = vpop.f32.mrb[18].mxu0 }
 0x688   : > { %1831 = vrot.lane.b32.xlu1 %v1338_v0, %s6631_s22  ;;  %v4414_v5 = vpop.f32.mrb[19].mxu0 }
 0x68b   : > { %v1343_v8 = vpop.f32.mrb[20].mxu0 }
 0x68c   : > { %1833 = vrot.lane.b32.xlu1 %v1343_v8, %s6631_s22  ;;  %v4417_v1 = vpop.f32.mrb[21].mxu0 }
 0x68f   : > { %v1348_v9 = vpop.f32.mrb[22].mxu0 }
 0x690   : > { %v4420_v10 = vpop.f32.mrb[23].mxu0 }
 0x6c0   : > { %v1576_v22 = vpop.f32.mrb[24].mxu0 }
 0x6c1   : > { %1843 = vrot.lane.b32.xlu1 %v1576_v22, %s6629_s0  ;;  %v4444_v25 = vpop.f32.mrb[25].mxu0 }
 0x6c2   : > { %v2036_v25 = vld [vmem:[%s6587_s11] sm:$0xff] }
 0x6c4   : > { %v1581_v18 = vpop.f32.mrb[26].mxu0 }
 0x6c5   : > { %v4447_v20 = vpop.f32.mrb[27].mxu0 }
 0x6c8   : > { %v1586_v12 = vpop.f32.mrb[28].mxu0 }
 0x6c9   : > { %v4450_v23 = vpop.f32.mrb[29].mxu0 }
 0x6ca   : > { %v2039_v23 = vld [vmem:[%s6587_s11 + $0x18] sm:$0xff] }
 0x6cc   : > { %v1814_v26 = vpop.f32.mrb[30].mxu0 }
 0x6cd   : > { %1855 = vrot.lane.b32.xlu1 %v1814_v26, %s6627_s25  ;;  %v4474_v28 = vpop.f32.mrb[31].mxu0 }
 0x6ce   : > { %v2151_v28 = vld [vmem:[%s6589_s13] sm:$0xff] }
 0x6d0   : > { %v1819_v30 = vpop.f32.mrb[32].mxu0 }
 0x6d1   : > { %1845 = vrot.lane.b32.xlu1 %v1581_v18, %s6629_s0  ;;  %1857 = vrot.lane.b32.xlu0 %v1819_v30, %s6627_s25  ;;  %v4477_v16 = vpop.f32.mrb[33].mxu0  ;;  %v2037_v18 = vld [vmem:[%s6587_s11 + $0x8] sm:$0xff] }
 0x6d2   : > { %v4832_v20 = vpack.c.bf16 %v2037_v18, %v2036_v25  ;;  %v2152_v30 = vld [vmem:[%s6589_s13 + $0x8] sm:$0xff]  ;;  %v2153_v16 = vld [vmem:[%s6589_s13 + $0x10] sm:$0xff] }
 0x6d4   : > { %v1824_v31 = vpop.f32.mrb[34].mxu0  ;;  %4833 = vmatpush3.bf16.msra.mxu0 %v4832_v20 }
 0x6d5   : > { %1835 = vrot.lane.b32.xlu1 %v1348_v9, %s6631_s22  ;;  %v4480_v32 = vpop.f32.mrb[35].mxu0  ;;  %4834 = vmatprep.subr.bf16.mxu0 %v5272_v3  ;;  %s6662_s22 = smov 48  }
 0x6d6   : > { %v2154_v32 = vld [vmem:[%s6589_s13 + $0x18] sm:$0xff] }
 0x6d9   : > { %1847 = vrot.lane.b32.xlu1 %v1586_v12, %s6629_s0  ;;  %v2038_v12 = vld [vmem:[%s6587_s11 + $0x10] sm:$0xff]  ;;  %s6656_s0 = smov 80  }
 0x6da   : > { %v4835_v26 = vpack.c.bf16 %v2039_v23, %v2038_v12 }
 0x6dc   : > { %4836 = vmatpush3.bf16.msra.mxu0 %v4835_v26 }
 0x6dd   : > { %1859 = vrot.lane.b32.xlu1 %v1824_v31, %s6627_s25  ;;  %4861 = vmatprep.subr.bf16.mxu0 %v5272_v3  ;;  %v4838_v31 = vpack.c.bf16 %v2152_v30, %v2151_v28  ;;  %s6657_s25 = smov 72  }
 0x6fa   : > { %v1832_v21 = vpop.permute.xlu1 %1831 }
 0x6fb   : > { %v1864_v27 = vsel %vm883_vm3, %v1100_v43, %v1832_v21  ;;  %v4841_v21 = vpack.c.bf16 %v2154_v32, %v2153_v16 }
 0x6fe   : > { %v1834_v34 = vpop.permute.xlu1 %1833 }
 0x6ff   : > { %v1865_v41 = vsel %vm883_vm3, %v1105_v63, %v1834_v34  ;;  %v2155_v34 = vld [vmem:[%s6589_s13 + $0x20] sm:$0xff] }
 0x733   : > { %v1844_v37 = vpop.permute.xlu1 %1843 }
 0x734   : > { %v1868_v38 = vsel %vm1867_vm7, %v1864_v27, %v1844_v37  ;;  %v2156_v37 = vld [vmem:[%s6589_s13 + $0x28] sm:$0xff] }
 0x735   : > { %v4844_v27 = vpack.c.bf16 %v2156_v37, %v2155_v34 }
 0x73f   : > { %v1856_v40 = vpop.permute.xlu1 %1855 }
 0x740   : > { %v1871_v33 = vsel %vm982_vm6, %v1868_v38, %v1856_v40 }
 0x741   : > { %4490 = vmatmul.mubr.msk.f32.vlgmr.msra.gmra.mrb[24].mxu1 %vm712_vm2, %v1871_v33 }
 0x742   : > { %4492 = vmatprep.mubr.msk.f32.mxu1 %vm5273_vm0, %v5274_v6  ;;  %4839 = vmatpush3.bf16.msra.mxu1 %v4838_v31 }
 0x743   : > { %v1846_v42 = vpop.permute.xlu1 %1845  ;;  %v1858_v44 = vpop.permute.xlu0 %1857  ;;  %4840 = vmatprep.subr.bf16.mxu1 %v5272_v3 }
 0x744   : > { %v1869_v36 = vsel %vm1867_vm7, %v1865_v41, %v1846_v42 }
 0x745   : > { %v1872_v46 = vsel %vm982_vm6, %v1869_v36, %v1858_v44 }
 0x746   : > { %4493 = vmatmul.mubr.msk.f32.gmra.mrb[26].mxu1 %vm712_vm2, %v1872_v46  ;;  %v4027_v46 = vld [vmem:[%s6585_s9] ss:$0 sm:$0xff] }
 0x747   : > { %v1836_v47 = vpop.permute.xlu1 %1835  ;;  %4495 = vmatprep.mubr.msk.f32.mxu1 %vm5273_vm0, %v5274_v6  ;;  %4842 = vmatpush3.bf16.msra.mxu1 %v4841_v21 }
 0x748   : > { %v1866_v45 = vsel %vm883_vm3, %v1110_v51, %v1836_v47  ;;  %4843 = vmatprep.subr.bf16.mxu1 %v5272_v3 }
 0x74b   : > { %v1848_v48 = vpop.permute.xlu1 %1847  ;;  %4845 = vmatpush3.bf16.msra.mxu1 %v4844_v27 }
 0x74c   : > { %v1870_v49 = vsel %vm1867_vm7, %v1866_v45, %v1848_v48  ;;  %4846 = vmatprep.subr.bf16.mxu1 %v5272_v3  ;;  %v4028_v45 = vld [vmem:[%s6586_s10] ss:$0 sm:$0xff] }
 0x74f   : > { %v1860_v50 = vpop.permute.xlu1 %1859 }
 0x750   : > { %v1873_v52 = vsel %vm982_vm6, %v1870_v49, %v1860_v50 }
 0x751   : > { %4496 = vmatmul.mubr.msk.f32.gmra.mrb[28].mxu1 %vm712_vm2, %v1873_v52 }
 0x752   : > { %4547 = vmatprep.mubr.msk.f32.mxu1 %vm5273_vm0, %v5274_v6 }
 0x814   : > { %v1960_v55 = vpop.f32.mrb[24].mxu1 }
 0x815   : > { %v1961_v57 = vadd.f32 %v4023_v53, %v1960_v55  ;;  %v4491_v59 = vpop.f32.mrb[25].mxu1 }
 0x817   : > { %v5886_v39 = vadd.f32 %v1961_v57, %v5486_v19 }
 0x819   : > { %v1965_v60 = vpop.f32.mrb[26].mxu1  ;;  %v1979_v54 = vsel %vm712_vm2, %v5886_v39, 0.0 }
 0x81a   : > { %v1966_v61 = vadd.f32 %v4023_v53, %v1965_v60  ;;  %v4494_v56 = vpop.f32.mrb[27].mxu1  ;;  %1980 = vadd.xlane.f32.xlu1 %v1979_v54 }
 0x81c   : > { %v5891_v43 = vadd.f32 %v1966_v61, %v5493_v24 }
 0x81e   : > { %v1982_v62 = vsel %vm712_vm2, %v5891_v43, 0.0 }
 0x81f   : > { %1983 = vadd.xlane.f32.xlu0 %v1982_v62 }
 0x824   : > { %v1970_v63 = vpop.f32.mrb[28].mxu1 }
 0x825   : > { %v1971_v58 = vadd.f32 %v4023_v53, %v1970_v63  ;;  %v4497_v51 = vpop.f32.mrb[29].mxu1  ;;  %v2157_v63 = vld [vmem:[%s6589_s13 + $0x30] sm:$0xff] }
 0x827   : > { %v5896_v19 = vadd.f32 %v1971_v58, %v5500_v29  ;;  %v2158_v58 = vld [vmem:[%s6589_s13 + $0x38] sm:$0xff] }
 0x828   : > { %v4847_v51 = vpack.c.bf16 %v2158_v58, %v2157_v63 }
 0x829   : > { %v1985_v2 = vsel %vm712_vm2, %v5896_v19, 0.0 }
 0x82a   : > { %1986 = vadd.xlane.f32.xlu1 %v1985_v2  ;;  %4848 = vmatpush3.bf16.msra.mxu1 %v4847_v51  ;;  %v2159_v2 = vld [vmem:[%s6589_s13 + $0x40] sm:$0xff] }
 0x82b   : > { %4849 = vmatprep.subr.bf16.mxu1 %v5272_v3 }
 0x8a7   : > { %v1981_v0 = vpop.xlane.xlu1 %1980 }
 0x8a8   : > { %v1988_v5 = vmul.f32 0.03125, %v1981_v0  ;;  %v2160_v0 = vld [vmem:[%s6589_s13 + $0x48] sm:$0xff] }
 0x8aa   : > { %v1991_v8 = vsub.f32 %v5886_v39, %v1988_v5  ;;  %v4850_v5 = vpack.c.bf16 %v2160_v0, %v2159_v2 }
 0x8ac   : > { %v1984_v24 = vpop.xlane.xlu0 %1983  ;;  %v1994_v1 = vmul.f32 %v1991_v8, %v1991_v8  ;;  %4851 = vmatpush3.bf16.msra.mxu1 %v4850_v5 }
 0x8ad   : > { %v1989_v9 = vmul.f32 0.03125, %v1984_v24  ;;  %4852 = vmatprep.subr.bf16.mxu1 %v5272_v3  ;;  %v2162_v24 = vld [vmem:[%s6589_s13 + $0x58] sm:$0xff] }
 0x8ae   : > { %v1997_v10 = vsel %vm712_vm2, %v1994_v1, 0.0 }
 0x8af   : > { %v1992_v13 = vsub.f32 %v5891_v43, %v1989_v9  ;;  %1998 = vadd.xlane.f32.xlu1 %v1997_v10  ;;  %v2163_v9 = vld [vmem:[%s6589_s13 + $0x60] sm:$0xff]  ;;  %v2164_v10 = vld [vmem:[%s6589_s13 + $0x68] sm:$0xff] }
 0x8b1   : > { %v1995_v14 = vmul.f32 %v1992_v13, %v1992_v13 }
 0x8b3   : > { %v2000_v29 = vsel %vm712_vm2, %v1995_v14, 0.0  ;;  %v2165_v14 = vld [vmem:[%s6589_s13 + $0x70] sm:$0xff] }
 0x8b4   : > { %2001 = vadd.xlane.f32.xlu0 %v2000_v29  ;;  %v2166_v29 = vld [vmem:[%s6589_s13 + $0x78] sm:$0xff] }
 0x8b7   : > { %v1987_v7 = vpop.xlane.xlu1 %1986 }
 0x8b8   : > { %v1990_v11 = vmul.f32 0.03125, %v1987_v7  ;;  %v4859_v7 = vpack.c.bf16 %v2166_v29, %v2165_v14  ;;  %v4039_v14 = vld [vmem:[%s6581_s5 + $0x28] sm:$0xff] }
 0x8ba   : > { %v1993_v17 = vsub.f32 %v5896_v19, %v1990_v11  ;;  %v4029_v11 = vld [vmem:[%s6588_s12] ss:$0 sm:$0xff] }
 0x8bc   : > { %v1996_v15 = vmul.f32 %v1993_v17, %v1993_v17 }
 0x8be   : > { %v2003_v22 = vsel %vm712_vm2, %v1996_v15, 0.0 }
 0x8bf   : > { %2004 = vadd.xlane.f32.xlu1 %v2003_v22 }
 0x93c   : > { %v1999_v38 = vpop.xlane.xlu1 %1998 }
 0x93d   : > { %v2006_v40 = vmul.f32 0.03125, %v1999_v38 }
 0x93f   : > { %v2009_v33 = vadd.f32 1e-05, %v2006_v40 }
 0x941   : > { %5128 = vrsqrt.f32 %v2009_v33  ;;  %v2002_v41 = vpop.xlane.xlu0 %2001 }
 0x942   : > { %v2007_v42 = vmul.f32 0.03125, %v2002_v41 }
 0x944   : > { %v2010_v44 = vadd.f32 1e-05, %v2007_v42 }
 0x946   : > { %5130 = vrsqrt.f32 %v2010_v44 }
 0x94b   : > { %v5129_v36 = vpop.eup %5128 }
 0x94c   : > { %v2015_v47 = vmul.f32 %v5129_v36, %v1991_v8  ;;  %v2005_v48 = vpop.xlane.xlu1 %2004  ;;  %v2161_v8 = vld [vmem:[%s6589_s13 + $0x50] sm:$0xff]  ;;  %v4033_v36 = vld [vmem:[%s6590_s14] ss:$0 sm:$0xff] }
 0x94d   : > { %v2008_v49 = vmul.f32 0.03125, %v2005_v48  ;;  %v4853_v1 = vpack.c.bf16 %v2162_v24, %v2161_v8 }
 0x94e   : > { %v2024_v50 = vmul.f32 %v4027_v46, %v2015_v47 }
 0x94f   : > { %v2011_v52 = vadd.f32 1e-05, %v2008_v49  ;;  %4854 = vmatpush3.bf16.msra.mxu1 %v4853_v1 }
 0x950   : > { %v5131_v53 = vpop.eup %5130  ;;  %v2033_v55 = vadd.f32 %v4028_v45, %v2024_v50  ;;  %4855 = vmatprep.subr.bf16.mxu1 %v5272_v3 }
 0x951   : > { %5132 = vrsqrt.f32 %v2011_v52  ;;  %v2016_v57 = vmul.f32 %v5131_v53, %v1992_v13  ;;  %v4856_v13 = vpack.c.bf16 %v2164_v10, %v2163_v9 }
 0x952   : > { %4507 = vmatmul.mubr.msk.f32.vlgmr.msra.gmra.mrb[36].mxu0 %vm712_vm2, %v2033_v55 }
 0x953   : > { %4509 = vmatprep.mubr.msk.f32.mxu0 %vm5273_vm0, %v5274_v6  ;;  %v2025_v59 = vmul.f32 %v4027_v46, %v2016_v57  ;;  %4857 = vmatpush3.bf16.msra.mxu1 %v4856_v13  ;;  %v4038_v13 = vld [vmem:[%s6581_s5 + $0x20] sm:$0xff] }
 0x954   : > { %4858 = vmatprep.subr.bf16.mxu1 %v5272_v3  ;;  %v4862_v29 = vpack.c.bf16 %v4039_v14, %v4038_v13 }
 0x955   : > { %v2034_v60 = vadd.f32 %v4028_v45, %v2025_v59 }
 0x956   : > { %4863 = vmatpush3.bf16.msra.mxu0 %v4862_v29 }
 0x957   : > { %4510 = vmatmul.mubr.msk.f32.gmra.mrb[38].mxu0 %vm712_vm2, %v2034_v60  ;;  %4860 = vmatpush3.bf16.msra.mxu1 %v4859_v7  ;;  %v4040_v7 = vld [vmem:[%s6581_s5 + $0x30] sm:$0xff] }
 0x958   : > { %4512 = vmatprep.mubr.msk.f32.mxu0 %vm5273_vm0, %v5274_v6  ;;  %4874 = vmatprep.subr.bf16.mxu1 %v5272_v3 }
 0x959   : > { %4864 = vmatprep.subr.bf16.mxu0 %v5272_v3 }
 0x95b   : > { %v5133_v54 = vpop.eup %5132 }
 0x95c   : > { %v2017_v61 = vmul.f32 %v5133_v54, %v1993_v17 }
 0x95e   : > { %v2026_v56 = vmul.f32 %v4027_v46, %v2017_v61 }
 0x960   : > { %v2035_v62 = vadd.f32 %v4028_v45, %v2026_v56 }
 0x962   : > { %4513 = vmatmul.mubr.msk.f32.gmra.mrb[40].mxu0 %vm712_vm2, %v2035_v62 }
 0x963   : > { %4564 = vmatprep.mubr.msk.f32.mxu0 %vm5273_vm0, %v5274_v6 }
 0xa25   : > { %v2122_v17 = vpop.f32.mrb[36].mxu0 }
 0xa26   : > { %v2123_v15 = vadd.f32 %v4029_v11, %v2122_v17  ;;  %v4508_v22 = vpop.f32.mrb[37].mxu0 }
 0xa28   : > { %v2139_v25 = vmul.f32 0.70710677, %v2123_v15  ;;  %v2136_v28 = vmul.f32 0.5, %v2123_v15 }
 0xa2a   : > { %5134 = verf.f32 %v2139_v25  ;;  %v2127_v18 = vpop.f32.mrb[38].mxu0 }
 0xa2b   : > { %v2128_v20 = vadd.f32 %v4029_v11, %v2127_v18  ;;  %v4511_v12 = vpop.f32.mrb[39].mxu0 }
 0xa2d   : > { %v2140_v23 = vmul.f32 0.70710677, %v2128_v20  ;;  %v2137_v27 = vmul.f32 0.5, %v2128_v20 }
 0xa2f   : > { %5136 = verf.f32 %v2140_v23 }
 0xa34   : > { %v5135_v26 = vpop.eup %5134 }
 0xa35   : > { %v2145_v30 = vadd.f32 1.0, %v5135_v26  ;;  %v2132_v16 = vpop.f32.mrb[40].mxu0  ;;  %v4036_v26 = vld [vmem:[%s6650_s2 + $0x1] ss:$0 sm:$0xff] }
 0xa36   : > { %v2133_v31 = vadd.f32 %v4029_v11, %v2132_v16  ;;  %v4514_v32 = vpop.f32.mrb[41].mxu0  ;;  %v4041_v11 = vld [vmem:[%s6581_s5 + $0x38] sm:$0xff]  ;;  %v4037_v16 = vld [vmem:[%s6580_s4 + $0x1] ss:$0 sm:$0xff] }
 0xa37   : > { %v2148_v21 = vmul.f32 %v2145_v30, %v2136_v28  ;;  %v4865_v17 = vpack.c.bf16 %v4041_v11, %v4040_v7 }
 0xa38   : > { %v2141_v34 = vmul.f32 0.70710677, %v2133_v31  ;;  %v2138_v41 = vmul.f32 0.5, %v2133_v31 }
 0xa39   : > { %v5137_v37 = vpop.eup %5136  ;;  %4548 = vmatmul.mubr.f32.vlgmr.msra.gmra.mrb[30].mxu1 %v2148_v21  ;;  %4866 = vmatpush3.bf16.msra.mxu0 %v4865_v17 }
 0xa3a   : > { %v2146_v38 = vadd.f32 1.0, %v5137_v37  ;;  %5138 = verf.f32 %v2141_v34  ;;  %4550 = vmatprep.mubr.msk.f32.mxu1 %vm5273_vm0, %v5274_v6  ;;  %4867 = vmatprep.subr.bf16.mxu0 %v5272_v3 }
 0xa3c   : > { %v2149_v40 = vmul.f32 %v2146_v38, %v2137_v27 }
 0xa3e   : > { %4551 = vmatmul.mubr.f32.gmra.mrb[32].mxu1 %v2149_v40 }
 0xa3f   : > { %4553 = vmatprep.mubr.msk.f32.mxu1 %vm5273_vm0, %v5274_v6 }
 0xa44   : > { %v5139_v33 = vpop.eup %5138 }
 0xa45   : > { %v2147_v42 = vadd.f32 1.0, %v5139_v33 }
 0xa47   : > { %v2150_v44 = vmul.f32 %v2147_v42, %v2138_v41 }
 0xa49   : > { %4554 = vmatmul.mubr.f32.gmra.mrb[34].mxu1 %v2150_v44 }
 0xa4a   : > { %4609 = vmatprep.mubr.msk.f32.mxu1 %vm5273_vm0, %v5274_v6 }
 0xb0c   : > { %v2240_v46 = vpop.f32.mrb[30].mxu1 }
 0xb0d   : > { %v2241_v47 = vadd.f32 %v4033_v36, %v2240_v46  ;;  %v4549_v48 = vpop.f32.mrb[31].mxu1 }
 0xb0f   : > { %v6004_v45 = vadd.f32 %v2241_v47, %v5886_v39  ;;  %v4043_v47 = vld [vmem:[%s6582_s6 + $0x1] ss:$0 sm:$0xff] }
 0xb11   : > { %v2245_v49 = vpop.f32.mrb[32].mxu1  ;;  %v2261_v50 = vsel %vm712_vm2, %v6004_v45, 0.0 }
 0xb12   : > { %v2246_v52 = vadd.f32 %v4033_v36, %v2245_v49  ;;  %2262 = vadd.xlane.f32.xlu0 %v2261_v50  ;;  %v4552_v53 = vpop.f32.mrb[33].mxu1 }
 0xb14   : > { %v6009_v55 = vadd.f32 %v2246_v52, %v5891_v43 }
 0xb16   : > { %v2264_v57 = vsel %vm712_vm2, %v6009_v55, 0.0 }
 0xb17   : > { %2265 = vadd.xlane.f32.xlu1 %v2264_v57 }
 0xb1c   : > { %v2250_v59 = vpop.f32.mrb[34].mxu1 }
 0xb1d   : > { %v2251_v60 = vadd.f32 %v4033_v36, %v2250_v59  ;;  %v4555_v54 = vpop.f32.mrb[35].mxu1 }
 0xb1f   : > { %v6014_v39 = vadd.f32 %v2251_v60, %v5896_v19 }
 0xb21   : > { %v2267_v61 = vsel %vm712_vm2, %v6014_v39, 0.0 }
 0xb22   : > { %2268 = vadd.xlane.f32.xlu0 %v2267_v61 }
 0xb9f   : > { %v2263_v56 = vpop.xlane.xlu0 %2262 }
 0xba0   : > { %v2270_v62 = vmul.f32 0.03125, %v2263_v56 }
 0xba2   : > { %v2273_v63 = vsub.f32 %v6004_v45, %v2270_v62 }
 0xba4   : > { %v2266_v43 = vpop.xlane.xlu1 %2265  ;;  %v2276_v58 = vmul.f32 %v2273_v63, %v2273_v63 }
 0xba5   : > { %v2271_v51 = vmul.f32 0.03125, %v2266_v43 }
 0xba6   : > { %v2279_v2 = vsel %vm712_vm2, %v2276_v58, 0.0 }
 0xba7   : > { %v2274_v0 = vsub.f32 %v6009_v55, %v2271_v51  ;;  %2280 = vadd.xlane.f32.xlu1 %v2279_v2 }
 0xba9   : > { %v2277_v5 = vmul.f32 %v2274_v0, %v2274_v0 }
 0xbab   : > { %v2282_v19 = vsel %vm712_vm2, %v2277_v5, 0.0 }
 0xbac   : > { %2283 = vadd.xlane.f32.xlu0 %v2282_v19 }
 0xbaf   : > { %v2269_v8 = vpop.xlane.xlu0 %2268 }
 0xbb0   : > { %v2272_v24 = vmul.f32 0.03125, %v2269_v8 }
 0xbb2   : > { %v2275_v1 = vsub.f32 %v6014_v39, %v2272_v24 }
 0xbb4   : > { %v2278_v9 = vmul.f32 %v2275_v1, %v2275_v1 }
 0xbb6   : > { %v2285_v10 = vsel %vm712_vm2, %v2278_v9, 0.0 }
 0xbb7   : > { %2286 = vadd.xlane.f32.xlu1 %v2285_v10 }
 0xc34   : > { %v2281_v15 = vpop.xlane.xlu1 %2280 }
 0xc35   : > { %v2288_v22 = vmul.f32 0.03125, %v2281_v15 }
 0xc37   : > { %v2291_v25 = vadd.f32 1e-05, %v2288_v22 }
 0xc39   : > { %5140 = vrsqrt.f32 %v2291_v25  ;;  %v2284_v18 = vpop.xlane.xlu0 %2283 }
 0xc3a   : > { %v2289_v20 = vmul.f32 0.03125, %v2284_v18 }
 0xc3c   : > { %v2292_v12 = vadd.f32 1e-05, %v2289_v20 }
 0xc3e   : > { %5142 = vrsqrt.f32 %v2292_v12 }
 0xc43   : > { %v5141_v23 = vpop.eup %5140 }
 0xc44   : > { %v2297_v28 = vmul.f32 %v5141_v23, %v2273_v63  ;;  %v2287_v30 = vpop.xlane.xlu1 %2286 }
 0xc45   : > { %v2290_v31 = vmul.f32 0.03125, %v2287_v30 }
 0xc46   : > { %v2306_v32 = vmul.f32 %v4036_v26, %v2297_v28 }
 0xc47   : > { %v2293_v21 = vadd.f32 1e-05, %v2290_v31 }
 0xc48   : > { %v5143_v34 = vpop.eup %5142  ;;  %v2315_v37 = vadd.f32 %v4037_v16, %v2306_v32 }
 0xc49   : > { %5144 = vrsqrt.f32 %v2293_v21  ;;  %v2298_v27 = vmul.f32 %v5143_v34, %v2274_v0 }
 0xc4a   : > { %4565 = vmatmul.mubr.msk.f32.vlgmr.msra.gmra.mrb[42].mxu0 %vm712_vm2, %v2315_v37 }
 0xc4b   : > { %4567 = vmatprep.mubr.msk.f32.mxu0 %vm5273_vm0, %v5274_v6  ;;  %v2307_v38 = vmul.f32 %v4036_v26, %v2298_v27 }
 0xc4d   : > { %v2316_v40 = vadd.f32 %v4037_v16, %v2307_v38 }
 0xc4f   : > { %4568 = vmatmul.mubr.msk.f32.gmra.mrb[44].mxu0 %vm712_vm2, %v2316_v40 }
 0xc50   : > { %4570 = vmatprep.mubr.msk.f32.mxu0 %vm5273_vm0, %v5274_v6 }
 0xc53   : > { %v5145_v33 = vpop.eup %5144 }
 0xc54   : > { %v2299_v41 = vmul.f32 %v5145_v33, %v2275_v1 }
 0xc56   : > { %v2308_v42 = vmul.f32 %v4036_v26, %v2299_v41 }
 0xc58   : > { %v2317_v44 = vadd.f32 %v4037_v16, %v2308_v42 }
 0xc5a   : > { %4571 = vmatmul.mubr.msk.f32.gmra.mrb[46].mxu0 %vm712_vm2, %v2317_v44 }
 0xc5b   : > { %4579 = vmatprep.mubr.msk.f32.mxu0 %vm5273_vm0, %v5274_v6 }
 0xd1d   : > { %v2406_v36 = vpop.f32.mrb[42].mxu0 }
 0xd1e   : > { %v4566_v46 = vpop.f32.mrb[43].mxu0  ;;  %v2407_v49 = vadd.f32 %v4043_v47, %v2406_v36 }
 0xd20   : > { %v2420_v54 = vmul.f32 0.35355338, %v2407_v49 }
 0xd22   : > { %v2411_v48 = vpop.f32.mrb[44].mxu0 }
 0xd23   : > { %v2412_v50 = vadd.f32 %v4043_v47, %v2411_v48  ;;  %v4569_v52 = vpop.f32.mrb[45].mxu0 }
 0xd25   : > { %v6056_v53 = vpack.i.bf16 %v2412_v50, %v2407_v49  ;;  %v6076_v56 = vmul.f32 0.35355338, %v2412_v50 }
 0xd27   : > { %5035 = vrot.lane.b32.xlu0 %v6056_v53, %s6653_s26 }
 0xd2d   : > { %v2416_v57 = vpop.f32.mrb[46].mxu0 }
 0xd2e   : > { %v6060_v59 = vadd.f32 %v4043_v47, %v2416_v57  ;;  %v4572_v60 = vpop.f32.mrb[47].mxu0 }
 0xd30   : > { %2671 = vrot.lane.b32.xlu0 %v6060_v59, %s6654_s23  ;;  %2430 = vrot.lane.b32.xlu1 %v6060_v59, %s6653_s26  ;;  %v6070_v61 = vmul.f32 0.35355338, %v6060_v59  ;;  %s6663_s26 = smov 40  }
 0xd34   : > { %2661 = vrot.lane.b32.xlu0 %v2420_v54, %s6655_s28  ;;  %5040 = vrot.lane.b32.xlu1 %v6056_v53, %s6654_s23  ;;  %s6666_s23 = smov 24  }
 0xd38   : > { %5045 = vrot.lane.b32.xlu1 %v6056_v53, %s6656_s0  ;;  %2665 = vrot.lane.b32.xlu0 %v6070_v61, %s6655_s28 }
 0xd3c   : > { %2663 = vrot.lane.b32.xlu1 %v6076_v56, %s6655_s28  ;;  %5050 = vrot.lane.b32.xlu0 %v6056_v53, %s6657_s25 }
 0xd40   : > { %2909 = vrot.lane.b32.xlu1 %v6060_v59, %s6656_s0  ;;  %2901 = vrot.lane.b32.xlu0 %v6076_v56, %s6658_s24 }
 0xd44   : > { %2899 = vrot.lane.b32.xlu1 %v2420_v54, %s6658_s24  ;;  %3147 = vrot.lane.b32.xlu0 %v6060_v59, %s6657_s25  ;;  %s593_s25 = sand.u32 1, %s5262_s30  }
 0xd45   : > { %s3906_s0 = scalar_lea.sflag [#allocation3], %s593_s25 }
 0xd48   : > { %2903 = vrot.lane.b32.xlu1 %v6070_v61, %s6658_s24  ;;  %5055 = vrot.lane.b32.xlu0 %v6056_v53, %s6659_s27 }
 0xd4c   : > { %3137 = vrot.lane.b32.xlu1 %v2420_v54, %s6660_s20  ;;  %2805 = vrot.lane.b32.xlu0 %v6060_v59, %s6661_s29 }
 0xd50   : > { %2567 = vrot.lane.b32.xlu1 %v6060_v59, %s6659_s27 }
 0xd54   : > { %5060 = vrot.lane.b32.xlu1 %v6056_v53, %s6661_s29  ;;  %s594_s29 = scalar_lea.vmem [#allocation2], %s593_s25 }
 0xd99   : > { %v5036_v62 = vpop.permute.xlu0 %5035 }
 0xd9a   : > { %v5038_v63 = vunpack.i.h.bf16 %v5036_v62  ;;  %v5037_v43 = vunpack.i.l.bf16 %v5036_v62 }
 0xd9c   : > { %v4868_v58 = vpack.c.bf16 %v5038_v63, %v5037_v43 }
 0xd9e   : > { %4870 = vmatpush3.bf16.xpose.msk.msra.mxu0 %vm5578_vm4, %v4868_v58 }
 0xd9f   : > { %4577 = vmatprep.subr.mxu0 %v5274_v6 }
 0xda2   : > { %v2672_v51 = vpop.permute.xlu0 %2671  ;;  %v2431_v2 = vpop.permute.xlu1 %2430 }
 0xda6   : > { %v2662_v0 = vpop.permute.xlu0 %2661  ;;  %4578 = vmatpush3.xpose.msk.msra.mxu0 %vm883_vm3, %v2431_v2  ;;  %v5041_v5 = vpop.permute.xlu1 %5040 }
 0xda7   : > { %v5043_v19 = vunpack.i.h.bf16 %v5041_v5  ;;  %v5042_v8 = vunpack.i.l.bf16 %v5041_v5  ;;  %4871 = vmatprep.subr.bf16.mxu0 %v5272_v3 }
 0xda9   : > { %v4875_v24 = vpack.c.bf16 %v5043_v19, %v5042_v8  ;;  %4580 = vmatmul.mubr.msk.f32.vlgmr.msra.gmra.mrb[48].mxu0 %vm883_vm3, %v2420_v54 }
 0xdaa   : > { %v5046_v1 = vpop.permute.xlu1 %5045  ;;  %v2666_v9 = vpop.permute.xlu0 %2665  ;;  %4582 = vmatprep.mubr.msk.f32.mxu0 %vm5273_vm0, %v5274_v6 }
 0xdab   : > { %4877 = vmatpush3.bf16.xpose.msk.msra.mxu1 %vm5578_vm4, %v4875_v24  ;;  %v5048_v14 = vunpack.i.h.bf16 %v5046_v1  ;;  %v5047_v29 = vunpack.i.l.bf16 %v5046_v1 }
 0xdac   : > { %4607 = vmatprep.subr.mxu1 %v5274_v6 }
 0xdad   : > { %4583 = vmatmul.mubr.msk.f32.gmra.mrb[50].mxu0 %vm883_vm3, %v6076_v56  ;;  %v4882_v17 = vpack.c.bf16 %v5048_v14, %v5047_v29 }
 0xdae   : > { %v2664_v10 = vpop.permute.xlu1 %2663  ;;  %v5051_v13 = vpop.permute.xlu0 %5050  ;;  %4585 = vmatprep.mubr.msk.f32.mxu0 %vm5273_vm0, %v5274_v6 }
 0xdaf   : > { %v5053_v23 = vunpack.i.h.bf16 %v5051_v13  ;;  %v5052_v26 = vunpack.i.l.bf16 %v5051_v13 }
 0xdb1   : > { %4586 = vmatmul.mubr.msk.f32.gmra.mrb[52].mxu0 %vm883_vm3, %v6070_v61  ;;  %v4889_v16 = vpack.c.bf16 %v5053_v23, %v5052_v26 }
 0xdb2   : > { %v2910_v7 = vpop.permute.xlu1 %2909  ;;  %v2902_v11 = vpop.permute.xlu0 %2901  ;;  %4594 = vmatprep.mubr.msk.f32.mxu0 %vm5273_vm0, %v5274_v6 }
 0xdb3   : > { %4608 = vmatpush3.xpose.msk.msra.mxu1 %vm883_vm3, %v2672_v51 }
 0xdb4   : > { %4881 = vmatprep.subr.bf16.mxu1 %v5272_v3 }
 0xdb6   : > { %v2900_v15 = vpop.permute.xlu1 %2899  ;;  %4610 = vmatmul.mubr.msk.f32.vlgmr.msra.gmra.mrb[36].mxu1 %vm883_vm3, %v2662_v0  ;;  %v3148_v22 = vpop.permute.xlu0 %3147 }
 0xdb7   : > { %4884 = vmatpush3.bf16.xpose.msk.msra.mxu1 %vm5578_vm4, %v4882_v17  ;;  %4612 = vmatprep.mubr.msk.f32.mxu1 %vm5273_vm0, %v5274_v6 }
 0xdb8   : > { %4637 = vmatprep.subr.mxu1 %v5274_v6 }
 0xdba   : > { %4613 = vmatmul.mubr.msk.f32.gmra.mrb[38].mxu1 %vm883_vm3, %v2664_v10  ;;  %v2904_v25 = vpop.permute.xlu1 %2903  ;;  %v5056_v18 = vpop.permute.xlu0 %5055 }
 0xdbb   : > { %v5058_v20 = vunpack.i.h.bf16 %v5056_v18  ;;  %v5057_v12 = vunpack.i.l.bf16 %v5056_v18  ;;  %4615 = vmatprep.mubr.msk.f32.mxu1 %vm5273_vm0, %v5274_v6 }
 0xdbd   : > { %v4872_v28 = vpack.c.bf16 %v5058_v20, %v5057_v12 }
 0xdbe   : > { %v3138_v30 = vpop.permute.xlu1 %3137  ;;  %4616 = vmatmul.mubr.msk.f32.gmra.mrb[40].mxu1 %vm883_vm3, %v2666_v9 }
 0xdbf   : > { %4873 = vmatpush3.bf16.msra.mxu0 %v4872_v28  ;;  %4638 = vmatpush3.xpose.msk.msra.mxu1 %vm883_vm3, %v2910_v7 }
 0xdc0   : > { %4639 = vmatprep.mubr.msk.f32.mxu1 %vm5273_vm0, %v5274_v6  ;;  %4888 = vmatprep.subr.bf16.mxu1 %v5272_v3 }
 0xdc1   : > { %4592 = vmatprep.subr.mxu0 %v5274_v6 }
 0xdc2   : > { %v2568_v31 = vpop.permute.xlu1 %2567  ;;  %4640 = vmatmul.mubr.msk.f32.vlgmr.msra.gmra.mrb[42].mxu1 %vm883_vm3, %v2900_v15 }
 0xdc3   : > { %4593 = vmatpush3.msra.mxu0 %v2568_v31  ;;  %4891 = vmatpush3.bf16.xpose.msk.msra.mxu1 %vm5578_vm4, %v4889_v16 }
 0xdc4   : > { %4642 = vmatprep.mubr.msk.f32.mxu1 %vm5273_vm0, %v5274_v6  ;;  %4667 = vmatprep.subr.mxu1 %v5274_v6 }
 0xdc5   : > { %4878 = vmatprep.subr.bf16.mxu0 %v5272_v3 }
 0xdc6   : > { %4643 = vmatmul.mubr.msk.f32.gmra.mrb[44].mxu1 %vm883_vm3, %v2902_v11  ;;  %v6194_v11 = vpop.permute.xlu0 %2805 }
 0xdc7   : > { %4645 = vmatprep.mubr.msk.f32.mxu1 %vm5273_vm0, %v5274_v6 }
 0xdca   : > { %4646 = vmatmul.mubr.msk.f32.gmra.mrb[46].mxu1 %vm883_vm3, %v2904_v25  ;;  %v6196_v25 = vpop.permute.xlu1 %5060 }
 0xdcb   : > { %4668 = vmatpush3.xpose.msk.msra.mxu1 %vm883_vm3, %v3148_v22  ;;  %4669 = vmatprep.mubr.msk.f32.mxu1 %vm5273_vm0, %v5274_v6 }
 0xdcc   : > { %4895 = vmatprep.subr.bf16.mxu1 %v5272_v3 }
 0xdce   : > { %4670 = vmatmul.mubr.msk.f32.vlgmr.msra.gmra.mrb[48].mxu1 %vm883_vm3, %v3138_v30 }
 0xdcf   : > { %4672 = vmatprep.mubr.msk.f32.mxu1 %vm5273_vm0, %v5274_v6 }
 0xe7c   : > { %v2513_v35 = vpop.f32.mrb[48].mxu0 }
 0xe7d   : > { %v2527_v32 = vsel %vm709_vm5, %v2513_v35, -1e+30  ;;  %v4581_v21 = vpop.f32.mrb[49].mxu0 }
 0xe7e   : > { %v2530_v34 = vsel %vm982_vm6, %v2527_v32, -inf }
 0xe7f   : > { %2531 = vmax.xlane.f32.xlu0 %v2530_v34 }
 0xe80   : > { %v2518_v37 = vpop.f32.mrb[50].mxu0 }
 0xe81   : > { %v2528_v27 = vsel %vm709_vm5, %v2518_v37, -1e+30  ;;  %v4584_v38 = vpop.f32.mrb[51].mxu0 }
 0xe82   : > { %v2533_v40 = vsel %vm982_vm6, %v2528_v27, -inf }
 0xe83   : > { %2534 = vmax.xlane.f32.xlu1 %v2533_v40 }
 0xe84   : > { %v2523_v33 = vpop.f32.mrb[52].mxu0 }
 0xe85   : > { %v4587_v41 = vpop.f32.mrb[53].mxu0  ;;  %v2529_v47 = vsel %vm709_vm5, %v2523_v33, -1e+30 }
 0xe86   : > { %v2536_v57 = vsel %vm982_vm6, %v2529_v47, -inf }
 0xe89   : > { %v2751_v42 = vpop.f32.mrb[36].mxu1 }
 0xe8a   : > { %v2765_v44 = vsel %vm709_vm5, %v2751_v42, -1e+30  ;;  %v4611_v36 = vpop.f32.mrb[37].mxu1 }
 0xe8b   : > { %v2768_v46 = vsel %vm982_vm6, %v2765_v44, -inf }
 0xe8c   : > { %2769 = vmax.xlane.f32.xlu0 %v2768_v46 }
 0xe8d   : > { %v2756_v48 = vpop.f32.mrb[38].mxu1 }
 0xe8e   : > { %v2766_v49 = vsel %vm709_vm5, %v2756_v48, -1e+30  ;;  %v4614_v50 = vpop.f32.mrb[39].mxu1 }
 0xe8f   : > { %v2771_v52 = vsel %vm982_vm6, %v2766_v49, -inf }
 0xe90   : > { %2772 = vmax.xlane.f32.xlu1 %v2771_v52  ;;  %2537 = vmax.xlane.f32.xlu0 %v2536_v57 }
 0xe91   : > { %v2761_v60 = vpop.f32.mrb[40].mxu1 }
 0xe92   : > { %v2767_v54 = vsel %vm709_vm5, %v2761_v60, -1e+30  ;;  %v4617_v62 = vpop.f32.mrb[41].mxu1 }
 0xe93   : > { %v2774_v63 = vsel %vm982_vm6, %v2767_v54, -inf }
 0xe94   : > { %2775 = vmax.xlane.f32.xlu0 %v2774_v63 }
 0xe95   : > { %v2989_v43 = vpop.f32.mrb[42].mxu1 }
 0xe96   : > { %v3003_v58 = vsel %vm709_vm5, %v2989_v43, -1e+30  ;;  %v4641_v51 = vpop.f32.mrb[43].mxu1 }
 0xe97   : > { %v3006_v2 = vsel %vm982_vm6, %v3003_v58, -inf }
 0xe98   : > { %3007 = vmax.xlane.f32.xlu1 %v3006_v2 }
 0xe99   : > { %v2994_v0 = vpop.f32.mrb[44].mxu1 }
 0xe9a   : > { %v3004_v5 = vsel %vm709_vm5, %v2994_v0, -1e+30  ;;  %v4644_v19 = vpop.f32.mrb[45].mxu1 }
 0xe9b   : > { %v3009_v8 = vsel %vm982_vm6, %v3004_v5, -inf }
 0xe9c   : > { %3010 = vmax.xlane.f32.xlu0 %v3009_v8 }
 0xe9d   : > { %v2999_v24 = vpop.f32.mrb[46].mxu1 }
 0xe9e   : > { %v6180_v1 = vsel %vm709_vm5, %v2999_v24, -1e+30  ;;  %v4647_v9 = vpop.f32.mrb[47].mxu1 }
 0xe9f   : > { %v3012_v10 = vsel %vm982_vm6, %v6180_v1, -inf }
 0xea0   : > { %3013 = vmax.xlane.f32.xlu1 %v3012_v10 }
 0xea1   : > { %v3227_v13 = vpop.f32.mrb[48].mxu1 }
 0xea2   : > { %v6186_v14 = vsel %vm709_vm5, %v3227_v13, -1e+30  ;;  %v4671_v29 = vpop.f32.mrb[49].mxu1 }
 0xea3   : > { %v3244_v7 = vsel %vm982_vm6, %v6186_v14, -inf  ;;  %v5063_v29 = vunpack.i.h.bf16 %v6196_v25 }
 0xea4   : > { %3245 = vmax.xlane.f32.xlu0 %v3244_v7  ;;  %v5062_v7 = vunpack.i.l.bf16 %v6196_v25 }
 0xeb1   : > { %5065 = vrot.lane.b32.xlu1 %v6056_v53, %s6662_s22 }
 0xeba   : > { %3043 = vrot.lane.b32.xlu0 %v6060_v59, %s6662_s22  ;;  %s3918_s22 = sshll.u32 %s594_s29, 4  ;;  %s6536_s22 = int_to_ptr.vmem [resolvable:$true] %s3918_s22 }
 0xebb   : > { %s5208_s24 = scalar_lea.vmem %s6536_s22, 16 }
 0xebc   : > { %p5209_p11 = scmp.ne.s32.totalorder %s6536_s22, %s5208_s24 }
 0xebe   : > { %p5210_p12 = pnand %p5209_p11, %p5428_p5 }
 0xec0   : > { %p5211_p13 = pneg %p5210_p12 }
 0xf0c   : > { %v2532_v17 = vpop.xlane.xlu0 %2531 }
 0xf0d   : > { %v2539_v15 = vsub.f32 %v2527_v32, %v2532_v17 }
 0xf0f   : > { %v2542_v22 = vmul.f32 1.442695, %v2539_v15 }
 0xf10   : > { %v2535_v18 = vpop.xlane.xlu1 %2534 }
 0xf11   : > { %5146 = vpow2.f32 %v2542_v22  ;;  %v2540_v20 = vsub.f32 %v2528_v27, %v2535_v18  ;;  %v4879_v18 = vpack.c.bf16 %v5063_v29, %v5062_v7 }
 0xf13   : > { %v2544_v28 = vmul.f32 1.442695, %v2540_v20 }
 0xf19   : > { %v2770_v12 = vpop.xlane.xlu0 %2769 }
 0xf1a   : > { %v2777_v23 = vsub.f32 %v2765_v44, %v2770_v12 }
 0xf1b   : > { %v6198_v26 = vpop.eup %5146 }
 0xf1c   : > { %v2780_v30 = vmul.f32 1.442695, %v2777_v23  ;;  %v2548_v16 = vsel %vm982_vm6, %v6198_v26, 0.0 }
 0xf1d   : > { %2549 = vadd.xlane.f32.xlu1 %v2548_v16  ;;  %v2773_v31 = vpop.xlane.xlu1 %2772  ;;  %v2538_v35 = vpop.xlane.xlu0 %2537 }
 0xf1e   : > { %5148 = vpow2.f32 %v2780_v30  ;;  %v2778_v32 = vsub.f32 %v2766_v49, %v2773_v31  ;;  %v2541_v21 = vsub.f32 %v2529_v47, %v2538_v35 }
 0xf1f   : > { %5150 = vpow2.f32 %v2544_v28 }
 0xf20   : > { %v2782_v34 = vmul.f32 1.442695, %v2778_v32  ;;  %v2546_v37 = vmul.f32 1.442695, %v2541_v21 }
 0xf21   : > { %v2776_v38 = vpop.xlane.xlu0 %2775 }
 0xf22   : > { %5152 = vpow2.f32 %v2782_v34  ;;  %v2779_v27 = vsub.f32 %v2767_v54, %v2776_v38 }
 0xf23   : > { %5154 = vpow2.f32 %v2546_v37 }
 0xf24   : > { %v2784_v40 = vmul.f32 1.442695, %v2779_v27 }
 0xf25   : > { %v3008_v33 = vpop.xlane.xlu1 %3007 }
 0xf26   : > { %v3015_v41 = vsub.f32 %v3003_v58, %v3008_v33  ;;  %5156 = vpow2.f32 %v2784_v40 }
 0xf28   : > { %v6202_v42 = vpop.eup %5148  ;;  %v3018_v44 = vmul.f32 1.442695, %v3015_v41 }
 0xf29   : > { %v3011_v36 = vpop.xlane.xlu0 %3010  ;;  %v2786_v46 = vsel %vm982_vm6, %v6202_v42, 0.0  ;;  %v6206_v48 = vpop.eup %5150 }
 0xf2a   : > { %v3016_v47 = vsub.f32 %v3004_v5, %v3011_v36  ;;  %2787 = vadd.xlane.f32.xlu0 %v2786_v46  ;;  %5158 = vpow2.f32 %v3018_v44  ;;  %v2551_v57 = vsel %vm982_vm6, %v6206_v48, 0.0 }
 0xf2c   : > { %v6208_v49 = vpop.eup %5152  ;;  %v3020_v50 = vmul.f32 1.442695, %v3016_v47 }
 0xf2d   : > { %v2789_v52 = vsel %vm982_vm6, %v6208_v49, 0.0  ;;  %v6214_v60 = vpop.eup %5154  ;;  %v3014_v0 = vpop.xlane.xlu1 %3013 }
 0xf2e   : > { %5160 = vpow2.f32 %v3020_v50  ;;  %2790 = vadd.xlane.f32.xlu1 %v2789_v52  ;;  %2552 = vadd.xlane.f32.xlu0 %v2551_v57  ;;  %v2554_v54 = vsel %vm982_vm6, %v6214_v60, 0.0  ;;  %v3017_v19 = vsub.f32 %v6180_v1, %v3014_v0 }
 0xf30   : > { %v6218_v62 = vpop.eup %5156  ;;  %v3022_v24 = vmul.f32 1.442695, %v3017_v19 }
 0xf31   : > { %v2792_v63 = vsel %vm982_vm6, %v6218_v62, 0.0  ;;  %v3246_v5 = vpop.xlane.xlu0 %3245  ;;  %v5066_v1 = vpop.permute.xlu1 %5065 }
 0xf32   : > { %2555 = vadd.xlane.f32.xlu1 %v2554_v54  ;;  %v3253_v8 = vsub.f32 %v6186_v14, %v3246_v5  ;;  %5162 = vpow2.f32 %v3022_v24  ;;  %v5068_v31 = vunpack.i.h.bf16 %v5066_v1  ;;  %v5067_v35 = vunpack.i.l.bf16 %v5066_v1  ;;  %v4083_v24 = vld [vmem:[%s6583_s7 + $0x20] sm:$0xff] }
 0xf34   : > { %v6222_v43 = vpop.eup %5158  ;;  %v3256_v9 = vmul.f32 1.442695, %v3253_v8  ;;  %v4886_v37 = vpack.c.bf16 %v5068_v31, %v5067_v35 }
 0xf35   : > { %v3024_v51 = vsel %vm982_vm6, %v6222_v43, 0.0  ;;  %v3044_v17 = vpop.permute.xlu0 %3043 }
 0xf36   : > { %2793 = vadd.xlane.f32.xlu1 %v2792_v63  ;;  %5164 = vpow2.f32 %v3256_v9  ;;  %v4084_v9 = vld [vmem:[%s6583_s7 + $0x28] sm:$0xff] }
 0xf38   : > { %v6224_v58 = vpop.eup %5160 }
 0xf39   : > { %v3027_v2 = vsel %vm982_vm6, %v6224_v58, 0.0 }
 0xf3a   : > { %3025 = vadd.xlane.f32.xlu1 %v3024_v51  ;;  %3028 = vadd.xlane.f32.xlu0 %v3027_v2 }
 0xf3c   : > { %v6236_v10 = vpop.eup %5162 }
 0xf40   : > { %v6238_v13 = vpop.eup %5164 }
 0xf4b   : > { %3281 = vrot.lane.b32.xlu1 %v6060_v59, %s6663_s26  ;;  %v3030_v59 = vsel %vm982_vm6, %v6236_v10, 0.0 }
 0xf50   : > { %5070 = vrot.lane.b32.xlu0 %v6056_v53, %s6663_s26  ;;  %v3262_v53 = vsel %vm982_vm6, %v6238_v13, 0.0  ;;  %s6665_s26 = smov 16  }
 0xf6f   : > { %3031 = vadd.xlane.f32.xlu1 %v3030_v59  ;;  %3263 = vadd.xlane.f32.xlu0 %v3262_v53  ;;  %v4896_v59 = vpack.c.bf16 %v4084_v9, %v4083_v24  ;;  %v4086_v53 = vld [vmem:[%s6583_s7 + $0x38] sm:$0xff] }
 0xf71   : > { %4897 = vmatpush3.bf16.msra.mxu1 %v4896_v59 }
 0xf72   : > { %4898 = vmatprep.subr.bf16.mxu1 %v5272_v3 }
 0xf80   : > { %3141 = vrot.lane.b32.xlu1 %v6070_v61, %s6660_s20 }
 0xf85   : > { %3139 = vrot.lane.b32.xlu0 %v6076_v56, %s6660_s20  ;;  %s6664_s20 = smov 8  }
 0xfaa   : > { %v2550_v14 = vpop.xlane.xlu1 %2549 }
 0xfab   : > { %5166 = vrcp.f32 %v2550_v14 }
 0xfb5   : > { %v5167_v15 = vpop.eup %5166 }
 0xfb6   : > { %v2560_v22 = vmul.f32 %v5167_v15, %v6198_v26 }
 0xfb7   : > { %v2788_v20 = vpop.xlane.xlu0 %2787 }
 0xfb8   : > { %4595 = vmatmul.mubr.msk.f32.vlgmr.msra.gmra.mrb[54].mxu0 %vm982_vm6, %v2560_v22 }
 0xfb9   : > { %4880 = vmatpush3.bf16.msra.mxu0 %v4879_v18  ;;  %4597 = vmatprep.mubr.msk.f32.mxu0 %vm5273_vm0, %v5274_v6 }
 0xfba   : > { %4622 = vmatprep.subr.mxu0 %v5274_v6 }
 0xfbb   : > { %v2791_v61 = vpop.xlane.xlu1 %2790  ;;  %v2553_v56 = vpop.xlane.xlu0 %2552 }
 0xfbc   : > { %5168 = vrcp.f32 %v2553_v56 }
 0xfbd   : > { %4623 = vmatpush3.msra.mxu0 %v6194_v11 }
 0xfbe   : > { %4885 = vmatprep.subr.bf16.mxu0 %v5272_v3 }
 0xfbf   : > { %v2556_v25 = vpop.xlane.xlu1 %2555 }
 0xfc0   : > { %5170 = vrcp.f32 %v2556_v25 }
 0xfc1   : > { %5172 = vrcp.f32 %v2788_v20 }
 0xfc2   : > { %5174 = vrcp.f32 %v2791_v61 }
 0xfc3   : > { %v2794_v12 = vpop.xlane.xlu1 %2793 }
 0xfc4   : > { %5176 = vrcp.f32 %v2794_v12 }
 0xfc6   : > { %v5169_v23 = vpop.eup %5168 }
 0xfc7   : > { %v2561_v26 = vmul.f32 %v5169_v23, %v6206_v48  ;;  %v3026_v11 = vpop.xlane.xlu1 %3025  ;;  %v3029_v21 = vpop.xlane.xlu0 %3028 }
 0xfc8   : > { %5178 = vrcp.f32 %v3026_v11 }
 0xfc9   : > { %4598 = vmatmul.mubr.msk.f32.gmra.mrb[56].mxu0 %vm982_vm6, %v2561_v26  ;;  %5180 = vrcp.f32 %v3029_v21 }
 0xfca   : > { %v5171_v28 = vpop.eup %5170  ;;  %4600 = vmatprep.mubr.msk.f32.mxu0 %vm5273_vm0, %v5274_v6 }
 0xfcb   : > { %v2562_v30 = vmul.f32 %v5171_v28, %v6214_v60  ;;  %v5173_v16 = vpop.eup %5172  ;;  %v5071_v40 = vpop.permute.xlu0 %5070 }
 0xfcc   : > { %v2798_v32 = vmul.f32 %v5173_v16, %v6202_v42  ;;  %v5175_v34 = vpop.eup %5174  ;;  %v5073_v42 = vunpack.i.h.bf16 %v5071_v40  ;;  %v5072_v44 = vunpack.i.l.bf16 %v5071_v40 }
 0xfcd   : > { %4601 = vmatmul.mubr.msk.f32.gmra.mrb[58].mxu0 %vm982_vm6, %v2562_v30  ;;  %v2799_v38 = vmul.f32 %v5175_v34, %v6208_v49  ;;  %v3282_v49 = vpop.permute.xlu1 %3281 }
 0xfce   : > { %4624 = vmatprep.mubr.msk.f32.mxu0 %vm5273_vm0, %v5274_v6  ;;  %v5177_v27 = vpop.eup %5176  ;;  %v4893_v48 = vpack.c.bf16 %v5073_v42, %v5072_v44 }
 0xfcf   : > { %v2800_v33 = vmul.f32 %v5177_v27, %v6218_v62 }
 0xfd1   : > { %4625 = vmatmul.mubr.msk.f32.vlgmr.msra.gmra.mrb[60].mxu0 %vm982_vm6, %v2798_v32 }
 0xfd2   : > { %4887 = vmatpush3.bf16.msra.mxu0 %v4886_v37  ;;  %4627 = vmatprep.mubr.msk.f32.mxu0 %vm5273_vm0, %v5274_v6  ;;  %v5179_v41 = vpop.eup %5178 }
 0xfd3   : > { %4652 = vmatprep.subr.mxu0 %v5274_v6  ;;  %v3036_v36 = vmul.f32 %v5179_v41, %v6222_v43  ;;  %v5181_v46 = vpop.eup %5180 }
 0xfd4   : > { %v3037_v47 = vmul.f32 %v5181_v46, %v6224_v58 }
 0xfd5   : > { %4628 = vmatmul.mubr.msk.f32.gmra.mrb[62].mxu0 %vm982_vm6, %v2799_v38 }
 0xfd6   : > { %4653 = vmatpush3.msra.mxu0 %v3044_v17  ;;  %4630 = vmatprep.mubr.msk.f32.mxu0 %vm5273_vm0, %v5274_v6 }
 0xfd7   : > { %4892 = vmatprep.subr.bf16.mxu0 %v5272_v3 }
 0xfd9   : > { %4631 = vmatmul.mubr.msk.f32.gmra.mrb[64].mxu0 %vm982_vm6, %v2800_v33 }
 0xfda   : > { %4654 = vmatprep.mubr.msk.f32.mxu0 %vm5273_vm0, %v5274_v6 }
 0xfdd   : > { %4655 = vmatmul.mubr.msk.f32.vlgmr.msra.gmra.mrb[66].mxu0 %vm982_vm6, %v3036_v36 }
 0xfde   : > { %4894 = vmatpush3.bf16.msra.mxu0 %v4893_v48  ;;  %4657 = vmatprep.mubr.msk.f32.mxu0 %vm5273_vm0, %v5274_v6 }
 0xfdf   : > { %4682 = vmatprep.subr.mxu0 %v5274_v6 }
 0xfe1   : > { %4658 = vmatmul.mubr.msk.f32.gmra.mrb[68].mxu0 %vm982_vm6, %v3037_v47 }
 0xfe2   : > { %4683 = vmatpush3.msra.mxu0 %v3282_v49  ;;  %4660 = vmatprep.mubr.msk.f32.mxu0 %vm5273_vm0, %v5274_v6 }
 0xfe3   : > { %4901 = vmatprep.subr.bf16.mxu0 %v5272_v3 }
 0xffc   : > { %v3032_v50 = vpop.xlane.xlu1 %3031  ;;  %v3264_v52 = vpop.xlane.xlu0 %3263 }
 0xffd   : > { %5182 = vrcp.f32 %v3032_v50 }
 0xffe   : > { %5184 = vrcp.f32 %v3264_v52 }
0x1000   : > { %v3140_v57 = vpop.permute.xlu0 %3139  ;;  %v3142_v60 = vpop.permute.xlu1 %3141 }
0x1001   : > { %4673 = vmatmul.mubr.msk.f32.gmra.mrb[50].mxu1 %vm883_vm3, %v3140_v57  ;;  %v6351_v57 = vld [vmem:[%s6584_s8 + $0x1] ss:$0 sm:$0xff] }
0x1002   : > { %4675 = vmatprep.mubr.msk.f32.mxu1 %vm5273_vm0, %v5274_v6 }
0x1005   : > { %4676 = vmatmul.mubr.msk.f32.gmra.mrb[52].mxu1 %vm883_vm3, %v3142_v60 }
0x1006   : > { %4701 = vmatprep.mubr.msk.f32.mxu1 %vm5273_vm0, %v5274_v6 }
0x1007   : > { %v5183_v54 = vpop.eup %5182 }
0x1008   : > { %v3038_v62 = vmul.f32 %v5183_v54, %v6236_v10  ;;  %v5185_v63 = vpop.eup %5184  ;;  %v4085_v10 = vld [vmem:[%s6583_s7 + $0x30] sm:$0xff] }
0x1009   : > { %v3274_v43 = vmul.f32 %v5185_v63, %v6238_v13  ;;  %v4899_v1 = vpack.c.bf16 %v4086_v53, %v4085_v10 }
0x100a   : > { %4661 = vmatmul.mubr.msk.f32.gmra.mrb[70].mxu0 %vm982_vm6, %v3038_v62 }
0x100b   : > { %4684 = vmatprep.mubr.msk.f32.mxu0 %vm5273_vm0, %v5274_v6  ;;  %4900 = vmatpush3.bf16.msra.mxu1 %v4899_v1  ;;  %v4096_v1 = vld [vmem:[%s6587_s11 + $0x20] sm:$0xff] }
0x100c   : > { %4907 = vmatprep.subr.bf16.mxu1 %v5272_v3 }
0x100e   : > { %4685 = vmatmul.mubr.msk.f32.vlgmr.msra.gmra.mrb[72].mxu0 %vm982_vm6, %v3274_v43 }
0x100f   : > { %4687 = vmatprep.mubr.msk.f32.mxu0 %vm5273_vm0, %v5274_v6 }
0x108b   : > { %v2647_v58 = vpop.f32.mrb[54].mxu0 }
0x108c   : > { %v4596_v51 = vpop.f32.mrb[55].mxu0 }
0x109c   : > { %v6303_v2 = vpop.f32.mrb[56].mxu0 }
0x109d   : > { %v4599_v0 = vpop.f32.mrb[57].mxu0 }
0x10a0   : > { %v6305_v5 = vpop.f32.mrb[58].mxu0 }
0x10a1   : > { %v4602_v19 = vpop.f32.mrb[59].mxu0 }
0x10a4   : > { %v2885_v8 = vpop.f32.mrb[60].mxu0 }
0x10a5   : > { %3378 = vrot.lane.b32.xlu0 %v2885_v8, %s6664_s20  ;;  %v4626_v13 = vpop.f32.mrb[61].mxu0 }
0x10a8   : > { %v6320_v14 = vpop.f32.mrb[62].mxu0 }
0x10a9   : > { %v4629_v29 = vpop.f32.mrb[63].mxu0 }
0x10ac   : > { %v6323_v7 = vpop.f32.mrb[64].mxu0 }
0x10ad   : > { %v4632_v17 = vpop.f32.mrb[65].mxu0 }
0x10ae   : > { %v4099_v17 = vld [vmem:[%s6587_s11 + $0x38] sm:$0xff] }
0x10b0   : > { %v3123_v15 = vpop.f32.mrb[66].mxu0 }
0x10b1   : > { %3390 = vrot.lane.b32.xlu1 %v3123_v15, %s6665_s26  ;;  %v4656_v22 = vpop.f32.mrb[67].mxu0 }
0x10b4   : > { %v3128_v18 = vpop.f32.mrb[68].mxu0 }
0x10b5   : > { %v4659_v20 = vpop.f32.mrb[69].mxu0 }
0x10d4   : > { %v3232_v61 = vpop.f32.mrb[50].mxu1 }
0x10d5   : > { %v3242_v56 = vsel %vm709_vm5, %v3232_v61, -1e+30  ;;  %v4674_v25 = vpop.f32.mrb[51].mxu1 }
0x10d6   : > { %v3247_v12 = vsel %vm982_vm6, %v3242_v56, -inf }
0x10d7   : > { %3248 = vmax.xlane.f32.xlu1 %v3247_v12 }
0x10d8   : > { %v3237_v23 = vpop.f32.mrb[52].mxu1 }
0x10d9   : > { %v4677_v26 = vpop.f32.mrb[53].mxu1  ;;  %v3243_v31 = vsel %vm709_vm5, %v3237_v23, -1e+30 }
0x10da   : > { %v3250_v35 = vsel %vm982_vm6, %v3243_v31, -inf }
0x10dd   : > { %v6330_v28 = vpop.f32.mrb[70].mxu0 }
0x10de   : > { %v4662_v30 = vpop.f32.mrb[71].mxu0 }
0x10e1   : > { %v3361_v11 = vpop.f32.mrb[72].mxu0 }
0x10e2   : > { %3402 = vrot.lane.b32.xlu0 %v3361_v11, %s6666_s23  ;;  %v4686_v16 = vpop.f32.mrb[73].mxu0 }
0x1101   : > { %3251 = vmax.xlane.f32.xlu0 %v3250_v35 }
0x1117   : > { %v3379_v32 = vpop.permute.xlu0 %3378 }
0x1118   : > { %v3411_v34 = vsel %vm883_vm3, %v2647_v58, %v3379_v32  ;;  %v6403_v32 = vld [vmem:[%s6585_s9 + $0x1] ss:$0 sm:$0xff] }
0x1123   : > { %v3391_v21 = vpop.permute.xlu1 %3390 }
0x1124   : > { %v3414_v37 = vsel %vm1867_vm7, %v3411_v34, %v3391_v21 }
0x1154   : > { %v3403_v38 = vpop.permute.xlu0 %3402 }
0x1155   : > { %v3417_v27 = vsel %vm982_vm6, %v3414_v37, %v3403_v38  ;;  %v4105_v38 = vld [vmem:[%s6589_s13 + $0x80] sm:$0xff] }
0x1156   : > { %4702 = vmatmul.mubr.msk.f32.vlgmr.msra.gmra.mrb[54].mxu1 %vm712_vm2, %v3417_v27  ;;  %v4106_v27 = vld [vmem:[%s6589_s13 + $0x88] sm:$0xff] }
0x1157   : > { %4704 = vmatprep.mubr.msk.f32.mxu1 %vm5273_vm0, %v5274_v6 }
0x1164   : > { %v3249_v40 = vpop.xlane.xlu1 %3248 }
0x1165   : > { %v3254_v4 = vsub.f32 %v3242_v56, %v3249_v40  ;;  %v4908_v40 = vpack.c.bf16 %v4106_v27, %v4105_v38 }
0x1167   : > { %v3258_v33 = vmul.f32 1.442695, %v3254_v4  ;;  %4909 = vmatpush3.bf16.msra.mxu1 %v4908_v40  ;;  %v4107_v4 = vld [vmem:[%s6589_s13 + $0x90] sm:$0xff] }
0x1168   : > { %4910 = vmatprep.subr.bf16.mxu1 %v5272_v3 }
0x1169   : > { %5186 = vpow2.f32 %v3258_v33  ;;  %v4108_v33 = vld [vmem:[%s6589_s13 + $0x98] sm:$0xff] }
0x1173   : > { %v5187_v41 = vpop.eup %5186 }
0x1174   : > { %v3265_v42 = vsel %vm982_vm6, %v5187_v41, 0.0 }
0x1175   : > { %3266 = vadd.xlane.f32.xlu0 %v3265_v42  ;;  %v4109_v42 = vld [vmem:[%s6589_s13 + $0xa0] sm:$0xff] }
0x118e   : > { %v3252_v44 = vpop.xlane.xlu0 %3251 }
0x118f   : > { %v3255_v36 = vsub.f32 %v3243_v31, %v3252_v44  ;;  %v4110_v44 = vld [vmem:[%s6589_s13 + $0xa8] sm:$0xff] }
0x1191   : > { %v3260_v46 = vmul.f32 1.442695, %v3255_v36  ;;  %v4914_v36 = vpack.c.bf16 %v4110_v44, %v4109_v42 }
0x1193   : > { %5188 = vpow2.f32 %v3260_v46  ;;  %v4111_v46 = vld [vmem:[%s6589_s13 + $0xb0] sm:$0xff] }
0x119d   : > { %v5189_v48 = vpop.eup %5188 }
0x119e   : > { %v3268_v47 = vsel %vm982_vm6, %v5189_v48, 0.0 }
0x119f   : > { %3269 = vadd.xlane.f32.xlu1 %v3268_v47 }
0x11b0   : > { %3392 = vrot.lane.b32.xlu1 %v3128_v18, %s6665_s26 }
0x1202   : > { %v3267_v49 = vpop.xlane.xlu0 %3266 }
0x1203   : > { %5190 = vrcp.f32 %v3267_v49  ;;  %v4113_v49 = vld [vmem:[%s6589_s13 + $0xc0] sm:$0xff] }
0x120d   : > { %v5191_v50 = vpop.eup %5190 }
0x120e   : > { %v3275_v52 = vmul.f32 %v5191_v50, %v5187_v41  ;;  %v4911_v41 = vpack.c.bf16 %v4108_v33, %v4107_v4  ;;  %v4114_v50 = vld [vmem:[%s6589_s13 + $0xc8] sm:$0xff] }
0x1210   : > { %4688 = vmatmul.mubr.msk.f32.gmra.mrb[74].mxu0 %vm982_vm6, %v3275_v52  ;;  %4912 = vmatpush3.bf16.msra.mxu1 %v4911_v41  ;;  %v4920_v52 = vpack.c.bf16 %v4114_v50, %v4113_v49 }
0x1211   : > { %4690 = vmatprep.mubr.msk.f32.mxu0 %vm5273_vm0, %v5274_v6  ;;  %4913 = vmatprep.subr.bf16.mxu1 %v5272_v3 }
0x1214   : > { %4915 = vmatpush3.bf16.msra.mxu1 %v4914_v36 }
0x1215   : > { %4916 = vmatprep.subr.bf16.mxu1 %v5272_v3 }
0x1229   : > { %v3508_v60 = vpop.f32.mrb[54].mxu1 }
0x122a   : > { %v3509_v54 = vadd.f32 %v6351_v57, %v3508_v60  ;;  %v4703_v62 = vpop.f32.mrb[55].mxu1  ;;  %v4115_v60 = vld [vmem:[%s6589_s13 + $0xd0] sm:$0xff] }
0x122c   : > { %v6355_v63 = vadd.f32 %v3509_v54, %v6004_v45  ;;  %v3270_v43 = vpop.xlane.xlu1 %3269  ;;  %v4116_v54 = vld [vmem:[%s6589_s13 + $0xd8] sm:$0xff] }
0x122d   : > { %5192 = vrcp.f32 %v3270_v43  ;;  %v4923_v62 = vpack.c.bf16 %v4116_v54, %v4115_v60  ;;  %v4117_v43 = vld [vmem:[%s6589_s13 + $0xe0] sm:$0xff] }
0x122e   : > { %v3529_v58 = vsel %vm712_vm2, %v6355_v63, 0.0 }
0x122f   : > { %3530 = vadd.xlane.f32.xlu0 %v3529_v58  ;;  %v4118_v58 = vld [vmem:[%s6589_s13 + $0xe8] sm:$0xff] }
0x1230   : > { %v3393_v18 = vpop.permute.xlu1 %3392 }
0x1237   : > { %v5193_v51 = vpop.eup %5192 }
0x1238   : > { %v3276_v0 = vmul.f32 %v5193_v51, %v5189_v48  ;;  %v4112_v48 = vld [vmem:[%s6589_s13 + $0xb8] sm:$0xff]  ;;  %v4926_v51 = vpack.c.bf16 %v4118_v58, %v4117_v43  ;;  %v3825_v43 = vld [vmem:[%s6593_s17] sm:$0xff]  ;;  %v3827_v58 = vld [vmem:[%s6593_s17 + $0x10] sm:$0xff] }
0x1239   : > { %v4917_v47 = vpack.c.bf16 %v4112_v48, %v4111_v46 }
0x123a   : > { %4691 = vmatmul.mubr.msk.f32.gmra.mrb[76].mxu0 %vm982_vm6, %v3276_v0  ;;  %v4119_v0 = vld [vmem:[%s6589_s13 + $0xf0] sm:$0xff] }
0x123b   : > { %4718 = vmatprep.mubr.msk.f32.mxu0 %vm5273_vm0, %v5274_v6  ;;  %4918 = vmatpush3.bf16.msra.mxu1 %v4917_v47 }
0x123c   : > { %4919 = vmatprep.subr.bf16.mxu1 %v5272_v3 }
0x123f   : > { %4921 = vmatpush3.bf16.msra.mxu1 %v4920_v52 }
0x1240   : > { %4922 = vmatprep.subr.bf16.mxu1 %v5272_v3 }
0x1243   : > { %4924 = vmatpush3.bf16.msra.mxu1 %v4923_v62 }
0x1244   : > { %4925 = vmatprep.subr.bf16.mxu1 %v5272_v3 }
0x1245   : > { %3380 = vrot.lane.b32.xlu0 %v6320_v14, %s6664_s20  ;;  %v4097_v14 = vld [vmem:[%s6587_s11 + $0x28] sm:$0xff] }
0x1246   : > { %v4902_v29 = vpack.c.bf16 %v4097_v14, %v4096_v1 }
0x1247   : > { %4927 = vmatpush3.bf16.msra.mxu1 %v4926_v51  ;;  %v3828_v51 = vld [vmem:[%s6593_s17 + $0x18] sm:$0xff] }
0x1248   : > { %4903 = vmatpush3.bf16.msra.mxu0 %v4902_v29  ;;  %4928 = vmatprep.subr.bf16.mxu1 %v5272_v3 }
0x1249   : > { %3382 = vrot.lane.b32.xlu0 %v6323_v7, %s6664_s20  ;;  %4904 = vmatprep.subr.bf16.mxu0 %v5272_v3  ;;  %v4098_v7 = vld [vmem:[%s6587_s11 + $0x30] sm:$0xff]  ;;  %s4124_s20 = sshll.u32 %s5411_s1, 4  ;;  %s5289_s1 = smov [#allocation2]  }
0x124a   : > { %v4905_v15 = vpack.c.bf16 %v4099_v17, %v4098_v7  ;;  %v6479_v7 = vld [vmem:[%s6588_s12 + $0x1] ss:$0 sm:$0xff]  ;;  %s5212_s27 = sshll.u32 %s5289_s1, 4  ;;  %s5213_s27 = int_to_ptr.vmem [resolvable:$false] %s5212_s27 }
0x124b   : > { %s5214_s2 = scalar_lea.vmem %s5213_s27, 32  ;;  %p5215_p0 = scmp.lt.s32.totalorder %s6536_s22, %s5213_s27 }
0x124c   : > { %4906 = vmatpush3.bf16.msra.mxu0 %v4905_v15  ;;  %p5216_p1 = scmp.lt.s32.totalorder %s5214_s2, %s5208_s24 }
0x124d   : > { %4931 = vmatprep.subr.bf16.mxu0 %v5272_v3 }
0x124e   : > { %p5217_p2 = por %p5216_p1, %p5215_p0 }
0x1250   : > { %p5218_p3 = pnand %p5217_p2, %p5211_p13 }
0x12bc   : > { %v3531_v8 = vpop.xlane.xlu0 %3530 }
0x12bd   : > { %v3538_v24 = vmul.f32 0.03125, %v3531_v8 }
0x12bf   : > { %v3541_v9 = vsub.f32 %v6355_v63, %v3538_v24 }
0x12c0   : > { %v3381_v22 = vpop.permute.xlu0 %3380 }
0x12c1   : > { %v3544_v10 = vmul.f32 %v3541_v9, %v3541_v9  ;;  %v3412_v20 = vsel %vm883_vm3, %v6303_v2, %v3381_v22 }
0x12c2   : > { %v3415_v61 = vsel %vm1867_vm7, %v3412_v20, %v3393_v18 }
0x12c3   : > { %v3547_v13 = vsel %vm712_vm2, %v3544_v10, 0.0 }
0x12c4   : > { %v3383_v23 = vpop.permute.xlu0 %3382 }
0x12c5   : > { %v3413_v30 = vsel %vm883_vm3, %v6305_v5, %v3383_v23  ;;  %v6408_v5 = vld [vmem:[%s6586_s10 + $0x1] ss:$0 sm:$0xff] }
0x12e3   : > { %v3366_v45 = vpop.f32.mrb[74].mxu0 }
0x12e4   : > { %3404 = vrot.lane.b32.xlu1 %v3366_v45, %s6666_s23  ;;  %v4689_v19 = vpop.f32.mrb[75].mxu0  ;;  %v4120_v45 = vld [vmem:[%s6589_s13 + $0xf8] sm:$0xff] }
0x12e5   : > { %v4929_v19 = vpack.c.bf16 %v4120_v45, %v4119_v0  ;;  %v4935_v0 = vpack.c.bf16 %v3828_v51, %v3827_v58 }
0x12e7   : > { %4930 = vmatpush3.bf16.msra.mxu1 %v4929_v19 }
0x1308   : > { %3548 = vadd.xlane.f32.xlu1 %v3547_v13 }
0x130d   : > { %v3371_v59 = vpop.f32.mrb[76].mxu0 }
0x130e   : > { %3406 = vrot.lane.b32.xlu0 %v3371_v59, %s6666_s23  ;;  %v4692_v53 = vpop.f32.mrb[77].mxu0 }
0x1319   : > { %3394 = vrot.lane.b32.xlu1 %v6330_v28, %s6665_s26  ;;  %s6534_s26 = scalar_lea.hbm %s6595_s19, %s4124_s20 }
0x1356   : > { %v3405_v56 = vpop.permute.xlu1 %3404 }
0x1357   : > { %v3418_v25 = vsel %vm982_vm6, %v3415_v61, %v3405_v56 }
0x1358   : > { %4705 = vmatmul.mubr.msk.f32.gmra.mrb[56].mxu1 %vm712_vm2, %v3418_v25 }
0x1359   : > { %4707 = vmatprep.mubr.msk.f32.mxu1 %vm5273_vm0, %v5274_v6 }
0x1380   : > { %v3407_v16 = vpop.permute.xlu0 %3406 }
0x1395   : > { %v3549_v12 = vpop.xlane.xlu1 %3548 }
0x1396   : > { %v3556_v26 = vmul.f32 0.03125, %v3549_v12 }
0x1398   : > { %v3559_v28 = vadd.f32 1e-05, %v3556_v26 }
0x1399   : > { %v3395_v11 = vpop.permute.xlu1 %3394 }
0x139a   : > { %5194 = vrsqrt.f32 %v3559_v28  ;;  %v3416_v2 = vsel %vm1867_vm7, %v3413_v30, %v3395_v11 }
0x139b   : > { %v3419_v31 = vsel %vm982_vm6, %v3416_v2, %v3407_v16 }
0x139c   : > { %4708 = vmatmul.mubr.msk.f32.gmra.mrb[58].mxu1 %vm712_vm2, %v3419_v31 }
0x139d   : > { %4759 = vmatprep.mubr.msk.f32.mxu1 %vm5273_vm0, %v5274_v6 }
0x13a4   : > { %v5195_v35 = vpop.eup %5194 }
0x13a5   : > { %v3565_v21 = vmul.f32 %v5195_v35, %v3541_v9 }
0x13a7   : > { %v3574_v34 = vmul.f32 %v6403_v32, %v3565_v21 }
0x13a9   : > { %v3583_v37 = vadd.f32 %v6408_v5, %v3574_v34  ;;  %v4122_v34 = vld [vmem:[%s6590_s14 + $0x1] ss:$0 sm:$0xff] }
0x13ab   : > { %4719 = vmatmul.mubr.msk.f32.vlgmr.msra.gmra.mrb[78].mxu0 %vm712_vm2, %v3583_v37 }
0x13ac   : > { %4721 = vmatprep.mubr.msk.f32.mxu0 %vm5273_vm0, %v5274_v6 }
0x142b   : > { %v3513_v8 = vpop.f32.mrb[56].mxu1 }
0x142c   : > { %v3514_v24 = vadd.f32 %v6351_v57, %v3513_v8  ;;  %v4706_v9 = vpop.f32.mrb[57].mxu1 }
0x142e   : > { %v3523_v10 = vadd.f32 %v3514_v24, %v6009_v55 }
0x1430   : > { %v3532_v13 = vsel %vm712_vm2, %v3523_v10, 0.0 }
0x1431   : > { %3533 = vadd.xlane.f32.xlu1 %v3532_v13 }
0x146f   : > { %v3518_v59 = vpop.f32.mrb[58].mxu1 }
0x1470   : > { %v3519_v53 = vadd.f32 %v6351_v57, %v3518_v59  ;;  %v4709_v1 = vpop.f32.mrb[59].mxu1 }
0x1472   : > { %v3524_v14 = vadd.f32 %v3519_v53, %v6014_v39 }
0x1474   : > { %v3535_v29 = vsel %vm712_vm2, %v3524_v14, 0.0 }
0x1475   : > { %3536 = vadd.xlane.f32.xlu0 %v3535_v29 }
0x147e   : > { %v3674_v17 = vpop.f32.mrb[78].mxu0 }
0x147f   : > { %v3675_v55 = vadd.f32 %v6479_v7, %v3674_v17  ;;  %v4720_v15 = vpop.f32.mrb[79].mxu0 }
0x1481   : > { %v3691_v22 = vmul.f32 0.70710677, %v3675_v55  ;;  %v3688_v20 = vmul.f32 0.5, %v3675_v55 }
0x1483   : > { %5196 = verf.f32 %v3691_v22 }
0x148d   : > { %v5197_v18 = vpop.eup %5196 }
0x148e   : > { %v3697_v57 = vadd.f32 1.0, %v5197_v18 }
0x1490   : > { %v3700_v61 = vmul.f32 %v3697_v57, %v3688_v20 }
0x1492   : > { %4760 = vmatmul.mubr.f32.vlgmr.msra.gmra.mrb[60].mxu1 %v3700_v61  ;;  %v3808_v61 = vld [vmem:[%s6592_s16] sm:$0x1] }
0x1493   : > { %4762 = vmatprep.mubr.msk.f32.mxu1 %vm5273_vm0, %v5274_v6 }
0x14be   : > { %v3534_v39 = vpop.xlane.xlu1 %3533 }
0x14bf   : > { %v3539_v56 = vmul.f32 0.03125, %v3534_v39 }
0x14c1   : > { %v3542_v25 = vsub.f32 %v3523_v10, %v3539_v56 }
0x14c3   : > { %v3545_v12 = vmul.f32 %v3542_v25, %v3542_v25 }
0x14c5   : > { %v3550_v23 = vsel %vm712_vm2, %v3545_v12, 0.0 }
0x14c6   : > { %3551 = vadd.xlane.f32.xlu0 %v3550_v23 }
0x1502   : > { %v3537_v26 = vpop.xlane.xlu0 %3536 }
0x1503   : > { %v3540_v28 = vmul.f32 0.03125, %v3537_v26 }
0x1505   : > { %v3543_v30 = vsub.f32 %v3524_v14, %v3540_v28  ;;  %v3829_v28 = vld [vmem:[%s6594_s18] sm:$0x1] }
0x1507   : > { %v3546_v11 = vmul.f32 %v3543_v30, %v3543_v30 }
0x1509   : > { %v3553_v16 = vsel %vm712_vm2, %v3546_v11, 0.0 }
0x150a   : > { %3554 = vadd.xlane.f32.xlu1 %v3553_v16 }
0x1553   : > { %v3552_v2 = vpop.xlane.xlu0 %3551 }
0x1554   : > { %v3557_v31 = vmul.f32 0.03125, %v3552_v2 }
0x1556   : > { %v3560_v35 = vadd.f32 1e-05, %v3557_v31 }
0x1558   : > { %5198 = vrsqrt.f32 %v3560_v35 }
0x1562   : > { %v5199_v21 = vpop.eup %5198 }
0x1563   : > { %v3566_v37 = vmul.f32 %v5199_v21, %v3542_v25 }
0x1565   : > { %v3794_v38 = vpop.f32.mrb[60].mxu1  ;;  %v3575_v27 = vmul.f32 %v6403_v32, %v3566_v37 }
0x1566   : > { %v3795_v40 = vadd.f32 %v4122_v34, %v3794_v38  ;;  %v4761_v4 = vpop.f32.mrb[61].mxu1 }
0x1567   : > { %v3584_v33 = vadd.f32 %v6408_v5, %v3575_v27 }
0x1568   : > { %v3806_v41 = vadd.f32 %v3795_v40, %v6355_v63 }
0x1569   : > { %4722 = vmatmul.mubr.msk.f32.gmra.mrb[80].mxu0 %vm712_vm2, %v3584_v33 }
0x156a   : > { %v3810_v42 = vsel %vm3809_vm8, %v3806_v41, 0.0  ;;  %4724 = vmatprep.mubr.msk.f32.mxu0 %vm5273_vm0, %v5274_v6 }
0x156b   : > { %3811 = vadd.xlane.f32.xlu0 %v3810_v42 }
0x1597   : > { %v3555_v44 = vpop.xlane.xlu1 %3554 }
0x1598   : > { %v3558_v36 = vmul.f32 0.03125, %v3555_v44 }
0x159a   : > { %v3561_v46 = vadd.f32 1e-05, %v3558_v36 }
0x159c   : > { %5200 = vrsqrt.f32 %v3561_v46 }
0x15a6   : > { %v5201_v48 = vpop.eup %5200 }
0x15a7   : > { %v3567_v47 = vmul.f32 %v5201_v48, %v3543_v30 }
0x15a9   : > { %v3576_v49 = vmul.f32 %v6403_v32, %v3567_v47  ;;  %v3826_v32 = vld [vmem:[%s6593_s17 + $0x8] sm:$0xff] }
0x15ab   : > { %v3585_v50 = vadd.f32 %v6408_v5, %v3576_v49  ;;  %v4932_v5 = vpack.c.bf16 %v3826_v32, %v3825_v43 }
0x15ad   : > { %4725 = vmatmul.mubr.msk.f32.gmra.mrb[82].mxu0 %vm712_vm2, %v3585_v50 }
0x15ae   : > { %4776 = vmatprep.mubr.msk.f32.mxu0 %vm5273_vm0, %v5274_v6  ;;  %4933 = vmatpush3.bf16.msra.mxu0 %v4932_v5 }
0x15af   : > { %4934 = vmatprep.subr.bf16.mxu0 %v5272_v3 }
0x15b2   : > { %4936 = vmatpush3.bf16.msra.mxu0 %v4935_v0 }
0x15f8   : > { %v3812_v63 = vpop.xlane.xlu0 %3811 }
0x15f9   : > { %v3813_v52 = vmul.f32 0.03125, %v3812_v63 }
0x15fb   : > { %v3814_v60 = vsub.f32 %v3806_v41, %v3813_v52 }
0x15fd   : > { %v3815_v54 = vmul.f32 %v3814_v60, %v3814_v60 }
0x15ff   : > { %v3816_v62 = vsel %vm3809_vm8, %v3815_v54, 0.0 }
0x1600   : > { %3817 = vadd.xlane.f32.xlu1 %v3816_v62 }
0x163c   : > { %v3679_v45 = vpop.f32.mrb[80].mxu0 }
0x163d   : > { %v3680_v19 = vadd.f32 %v6479_v7, %v3679_v45  ;;  %v4723_v8 = vpop.f32.mrb[81].mxu0 }
0x163f   : > { %v3692_v24 = vmul.f32 0.70710677, %v3680_v19  ;;  %v3689_v10 = vmul.f32 0.5, %v3680_v19 }
0x1641   : > { %5202 = verf.f32 %v3692_v24 }
0x164b   : > { %v5203_v9 = vpop.eup %5202 }
0x164c   : > { %v3698_v13 = vadd.f32 1.0, %v5203_v9 }
0x164e   : > { %v3701_v3 = vmul.f32 %v3698_v13, %v3689_v10 }
0x1650   : > { %4763 = vmatmul.mubr.f32.gmra.mrb[62].mxu1 %v3701_v3 }
0x1651   : > { %4765 = vmatprep.mubr.msk.f32.mxu1 %vm5273_vm0, %v5274_v6  ;;  %v3807_v6 = vld [vmem:[%s6591_s15] sm:$0x1] }
0x1680   : > { %v3684_v59 = vpop.f32.mrb[82].mxu0 }
0x1681   : > { %v3685_v53 = vadd.f32 %v6479_v7, %v3684_v59  ;;  %v4726_v1 = vpop.f32.mrb[83].mxu0 }
0x1683   : > { %v3693_v14 = vmul.f32 0.70710677, %v3685_v53  ;;  %v3690_v15 = vmul.f32 0.5, %v3685_v53 }
0x1685   : > { %5204 = verf.f32 %v3693_v14 }
0x168d   : > { %v3818_v29 = vpop.xlane.xlu1 %3817 }
0x168e   : > { %v3819_v17 = vmul.f32 0.03125, %v3818_v29 }
0x168f   : > { %v5205_v55 = vpop.eup %5204 }
0x1690   : > { %v3699_v22 = vadd.f32 1.0, %v5205_v55  ;;  %v3820_v18 = vadd.f32 1e-05, %v3819_v17 }
0x1692   : > { %5206 = vrsqrt.f32 %v3820_v18  ;;  %v3702_v20 = vmul.f32 %v3699_v22, %v3690_v15 }
0x1694   : > { %4766 = vmatmul.mubr.f32.gmra.mrb[64].mxu1 %v3702_v20 }
0x169c   : > { %v5207_v57 = vpop.eup %5206 }
0x169d   : > { %v3822_v7 = vmul.f32 %v5207_v57, %v3814_v60 }
0x169f   : > { %v3823_v39 = vmul.f32 %v3822_v7, %v3807_v6 }
0x16a1   : > { %v3824_v56 = vadd.f32 %v3823_v39, %v3808_v61 }
0x16a3   : > { %4777 = vmatmul.mubr.msk.f32.vlgmr.msra.gmra.mrb[84].mxu0 %vm712_vm2, %v3824_v56 }
0x1723   : > { %v3799_v25 = vpop.f32.mrb[62].mxu1 }
0x1724   : > { %v4764_v12 = vpop.f32.mrb[63].mxu1 }
0x1767   : > { %v3803_v23 = vpop.f32.mrb[64].mxu1 }
0x1768   : > { %v4767_v26 = vpop.f32.mrb[65].mxu1 }
0x1776   : > { %v3899_v30 = vpop.f32.mrb[84].mxu0 }
0x1777   : > { %v3900_v11 = vadd.f32 %v3899_v30, %v3829_v28  ;;  %v4778_v16 = vpop.f32.mrb[85].mxu0 }
0x1779   : > { %3904 = vst.msk [vmem:[%s594_s29] sm:$0x1] %vm3903_vm9, %v3900_v11 }
0x177a   : > { %5221 = shalt.err (!%p5218_p3)
}
0x177b   : > { %s5222_s25 = scalar_lea.hbm %s6534_s26, 16  ;;  %s5226_s23 = scalar_lea.hbm %s6595_s19, 32 }
0x177c   : > { %p5223_p4 = scmp.ne.s32.totalorder %s6534_s26, %s5222_s25  ;;  %p5227_p9 = scmp.lt.u32.totalorder %s6534_s26, %s6595_s19 }
0x177d   : > { %p5228_p10 = scmp.lt.u32.totalorder %s5226_s23, %s5222_s25  ;;  %p5230_p12 = scmp.lt.u32.totalorder %s5222_s25, %s6534_s26 }
0x177e   : > { %p5224_p7 = pnand %p5223_p4, %p5428_p5 }
0x177f   : > { %p5229_p11 = por %p5228_p10, %p5227_p9 }
0x1780   : > { %p5225_p8 = pneg %p5224_p7 }
0x1781   : > { %p5231_p13 = por %p5230_p12, %p5229_p11 }
0x1783   : > { %p5232_p0 = pnand %p5231_p13, %p5225_p8 }
0x1785   : > { %5235 = shalt.err (!%p5232_p0)
}
0x1786   : > { %4938 = dma.vmem_to_hbm [thread:$0]  (%p5428_p5), %s6536_s22, 16, %s6534_s26, %s3906_s0  }
0x1787 PF: > { %s6667_s2 = sld [smem:[#allocation5_spill]]  ;;  %p4944_p1 = scmp.ge.s32.totalorder %s5270_s21, 2 }
0x1789   : > { %p4941_p2 = pnand %p4944_p1, %p5432_p6 }
0x178d   : > { %s3930_s27 = sand.u32 1, %s6667_s2  }
0x178e   : > { %s3931_s20 = scalar_lea.sflag [#allocation3], %s3930_s27 }
0x178f   : > { %5253 = dma.done.wait (!%p4941_p2), %s3931_s20, 16  }
0x1790   : > { %5255 = vsyncadd (!%p4941_p2), %s3931_s20, 4294967280  ;;  %s6669_s21 = sld [smem:[#allocation7_spill]]  ;;  %s6670_s25 = sld [smem:[#allocation6_spill]] }
0x1791   : > { %s6671_s20 = sld [smem:[#allocation8_spill]]  ;;  %s6672_s0 = smov %s5262_s30 }
0x1796   : > { %p29_p3 = scmp.ge.s32.totalorder %s6669_s21, 4   ;;  %s6673_s30 = smov %s6670_s25 }
0x1798   :  { %31 = sbr.rel (!%p29_p3) target bundleno = 8 (0x8), region = 143 }
0x179f   :  { %3935 = vsyncpa [#allocation3], 1 }
0x17a0   :  { %3937 = vsyncpa [#allocation3 + $0x1], 1 }

</bundles_post_ra>
